<compile_context>
chip_gen: v7x
topology: tpu7x:2x2x1
jax: 0.10.0
libtpu: 0.0.40
codegen_flags: <defaults>
</compile_context>

<pallas_src>
import functools

import jax
import jax.numpy as jnp
from jax import lax
from jax.experimental import pallas as pl
from jax.experimental.pallas import tpu as pltpu

# Module hyper-parameters (num_heads * head_size == n_embd).
N_EMBD = 384
NUM_HEADS = 6
HEAD_SIZE = N_EMBD // NUM_HEADS   # 64
BLOCK_SIZE = 256                  # causal-mask buffer size (T <= BLOCK_SIZE)


def _mha_kernel(x_ref, wqkv_ref, wp_ref, b_ref, o_ref, qkv_ref, acc_ref, *,
                num_heads, head_size, q_tile, approx_recip):
    """Fused multi-head causal attention + projection for a block of Bt rows.

    x_ref:    (Bt, T, C)    MXU-operand dtype (bf16 or f32)
    wqkv_ref: (C, 3C)       [Wq^T*scale | Wk^T | Wv^T], heads concatenated
    wp_ref:   (C, C)        W_proj^T
    b_ref:    (1, C)        f32 projection bias
    o_ref:    (Bt, T, C)    output
    qkv_ref:  (Bt*T, 3C)    VMEM scratch for the fused QKV result (cdt)
    acc_ref:  (q_tile, C)   f32 VMEM accumulator for the projected output
    """
    Bt, T, _ = x_ref.shape
    C = num_heads * head_size
    cdt = x_ref.dtype                       # MXU operand dtype

    # Single fused QKV matmul for all Bt rows: (Bt*T, C) @ (C, 3C) -> scratch.
    x2d = x_ref[...].reshape(Bt * T, C)
    qkv_ref[...] = jnp.dot(
        x2d, wqkv_ref[...], preferred_element_type=jnp.float32).astype(cdt)

    # Hoisted: bias broadcast (used to init the accumulator) and mask iotas.
    bias_b = jnp.broadcast_to(b_ref[...], (q_tile, C)).astype(jnp.float32)
    row_ids = lax.broadcasted_iota(jnp.int32, (q_tile, 1), 0)
    col_ids = lax.broadcasted_iota(jnp.int32, (q_tile, T), 1)

    n_tiles = T // q_tile
    for qt in range(n_tiles):                     # static unroll over q tiles
        r0 = qt * q_tile
        kv_len = r0 + q_tile                      # causal: later keys skipped
        # Mask built once per tile; shared by all Bt rows and all heads.
        mask = col_ids[:, :kv_len] <= (row_ids + r0)

        for b in range(Bt):                       # static unroll over rows
            base = b * T
            acc_ref[...] = bias_b                 # init accumulator with bias

            for h in range(num_heads):            # static; intermediates die
                c0 = h * head_size                # into the ref accumulate
                qh = qkv_ref[base + r0:base + r0 + q_tile, c0:c0 + head_size]
                kh = qkv_ref[base:base + kv_len, C + c0:C + c0 + head_size]
                vh = qkv_ref[base:base + kv_len,
                             2 * C + c0:2 * C + c0 + head_size]

                # q @ k^T as a transposed contraction (no materialized .T).
                s = lax.dot_general(qh, kh, (((1,), (1,)), ((), ())),
                                    preferred_element_type=jnp.float32)
                s = jnp.where(mask, s, -jnp.inf)

                m = jnp.max(s, axis=-1, keepdims=True)
                e = jnp.exp(s - m)
                denom = jnp.sum(e, axis=-1, keepdims=True)
                if approx_recip:
                    p = e * pl.reciprocal(denom, approx=True)
                else:
                    p = e / denom

                ho = jnp.dot(p.astype(cdt), vh,
                             preferred_element_type=jnp.float32)
                # Per-head projection accumulate (no concat of 64-wide pieces).
                acc_ref[...] += jnp.dot(
                    ho.astype(cdt), wp_ref[c0:c0 + head_size, :],
                    preferred_element_type=jnp.float32)

            o_ref[b, r0:r0 + q_tile, :] = acc_ref[...].astype(o_ref.dtype)


def _pick_batch_tile(B):
    """Rows per grid step: amortize per-step overhead but keep >= 2 grid steps
    (v7x has 2 TensorCores sharing the parallel grid axis)."""
    if B < 2:
        return 1
    cap = min(8, B // 2)
    for bt in range(cap, 0, -1):
        if B % bt == 0:
            return bt
    return 1


def multi_head_attention(x, wq, wk, wv, w_proj, b_proj, *,
                         mxu_dtype=jnp.bfloat16, out_dtype=None,
                         approx_recip=True):
    """x: (B, T, C) float32.
    wq/wk/wv: (H, head_size, C)   (PyTorch nn.Linear weight layout per head)
    w_proj:   (C, C)              (PyTorch Linear weight, y = z @ w_proj.T + b)
    b_proj:   (C,)
    mxu_dtype: dtype for MXU operands / qkv scratch (bf16 recommended on
               v5e/v6e/v7x; softmax, masking and accumulation stay float32).
    out_dtype: output dtype (defaults to x.dtype).
    approx_recip: use EUP approximate reciprocal for the softmax denominator.
    Returns (B, T, C) out_dtype.
    """
    B, T, C = x.shape
    H, hs, C_in = wq.shape
    assert H * hs == C and C_in == C
    assert T <= BLOCK_SIZE and T % 8 == 0
    if T > 128:
        assert T % 128 == 0

    out_dtype = x.dtype if out_dtype is None else out_dtype

    # NOTE: the module scales by C ** -0.5 (n_embd), not head_size ** -0.5;
    # replicated intentionally.  Fold the scale into Wq.
    scale = float(C) ** (-0.5)

    # y_h = x @ W_h^T -> stack heads along the output axis and pre-transpose so
    # the kernel does jnp.dot(x, w) with no in-kernel transposes.
    wq_t = (scale * wq).reshape(C, C).T          # (C_in, C_out)
    wk_t = wk.reshape(C, C).T
    wv_t = wv.reshape(C, C).T
    w_qkv = jnp.concatenate([wq_t, wk_t, wv_t], axis=1)   # (C, 3C)
    wp_t = w_proj.T                                        # (C, C)
    bias = b_proj.reshape(1, C).astype(jnp.float32)

    # Query tiling keeps (q_tile, kv_len) softmax intermediates small.
    q_tile = T if T <= 128 else 128
    Bt = _pick_batch_tile(B)

    kernel = functools.partial(_mha_kernel, num_heads=H, head_size=hs,
                               q_tile=q_tile, approx_recip=approx_recip)

    return pl.pallas_call(
        kernel,
        out_shape=jax.ShapeDtypeStruct((B, T, C), out_dtype),
        grid=(B // Bt,),
        in_specs=[
            pl.BlockSpec((Bt, T, C), lambda i: (i, 0, 0)),   # x rows
            pl.BlockSpec((C, 3 * C), lambda i: (0, 0)),      # fused QKV weight
            pl.BlockSpec((C, C), lambda i: (0, 0)),          # W_proj^T
            pl.BlockSpec((1, C), lambda i: (0, 0)),          # proj bias
        ],
        out_specs=pl.BlockSpec((Bt, T, C), lambda i: (i, 0, 0)),
        scratch_shapes=[
            pltpu.VMEM((Bt * T, 3 * C), mxu_dtype),          # fused QKV scratch
            pltpu.VMEM((q_tile, C), jnp.float32),            # proj accumulator
        ],
        compiler_params=pltpu.CompilerParams(
            dimension_semantics=("parallel",)),
    )(x.astype(mxu_dtype), w_qkv.astype(mxu_dtype), wp_t.astype(mxu_dtype),
      bias)


def _reference(x, wq, wk, wv, w_proj, b_proj):
    """Pure-JAX reference mirroring the PyTorch forward (eval mode)."""
    B, T, C = x.shape
    H, hs, _ = wq.shape
    outs = []
    for h in range(H):
        q = x @ wq[h].T
        k = x @ wk[h].T
        v = x @ wv[h].T
        wei = (q @ jnp.swapaxes(k, -2, -1)) * (C ** -0.5)
        mask = jnp.tril(jnp.ones((T, T)))
        wei = jnp.where(mask == 0, -jnp.inf, wei)
        wei = jax.nn.softmax(wei, axis=-1)
        outs.append(wei @ v)
    cat = jnp.concatenate(outs, axis=-1)
    return cat @ w_proj.T + b_proj


if __name__ == "__main__":
    key = jax.random.PRNGKey(0)
    k_x, k_q, k_k, k_v, k_p, k_b, k_x2 = jax.random.split(key, 7)

    # Small shapes consistent with the module.
    B, T = 2, 8
    x = jax.random.normal(k_x, (B, T, N_EMBD), dtype=jnp.float32)

    wq = 0.02 * jax.random.normal(k_q, (NUM_HEADS, HEAD_SIZE, N_EMBD), jnp.float32)
    wk = 0.02 * jax.random.normal(k_k, (NUM_HEADS, HEAD_SIZE, N_EMBD), jnp.float32)
    wv = 0.02 * jax.random.normal(k_v, (NUM_HEADS, HEAD_SIZE, N_EMBD), jnp.float32)
    w_proj = 0.02 * jax.random.normal(k_p, (N_EMBD, N_EMBD), jnp.float32)
    b_proj = 0.02 * jax.random.normal(k_b, (N_EMBD,), jnp.float32)

    ref = _reference(x, wq, wk, wv, w_proj, b_proj)

    # f32 MXU parity path (exact reciprocal): tight tolerance.
    out_f32 = multi_head_attention(x, wq, wk, wv, w_proj, b_proj,
                                   mxu_dtype=jnp.float32, approx_recip=False)
    out_f32 = jax.block_until_ready(out_f32)
    assert out_f32.shape == (B, T, N_EMBD)
    assert jnp.max(jnp.abs(out_f32 - ref)) < 2e-3, "f32 mismatch vs reference"

    # Default (bf16 MXU operands) path: looser tolerance.
    out_bf16 = multi_head_attention(x, wq, wk, wv, w_proj, b_proj)
    out_bf16 = jax.block_until_ready(out_bf16)
    assert jnp.max(jnp.abs(out_bf16 - ref)) < 3e-2, "bf16 mismatch vs reference"

    # Exercise the multi-row-per-grid-step and multi-q-tile paths.
    B2, T2 = 4, 256
    x2 = jax.random.normal(k_x2, (B2, T2, N_EMBD), dtype=jnp.float32)
    ref2 = _reference(x2, wq, wk, wv, w_proj, b_proj)
    out2 = multi_head_attention(x2, wq, wk, wv, w_proj, b_proj,
                                mxu_dtype=jnp.float32, approx_recip=False)
    out2 = jax.block_until_ready(out2)
    assert jnp.max(jnp.abs(out2 - ref2)) < 2e-3, "tiled path mismatch"

    print("KERNEL_OK")
</pallas_src>

<mosaic_0001>
module attributes {stable_mosaic.version = 11 : i64} {
  func.func @_mha_kernel(%arg0: i32, %arg1: memref<1x8x384xf32, #tpu.memory_space<vmem>>, %arg2: memref<384x1152xf32, #tpu.memory_space<vmem>>, %arg3: memref<384x384xf32, #tpu.memory_space<vmem>>, %arg4: memref<1x384xf32, #tpu.memory_space<vmem>>, %arg5: memref<1x8x384xf32, #tpu.memory_space<vmem>>, %arg6: memref<8x1152xf32, #tpu.memory_space<vmem>>, %arg7: memref<8x384xf32, #tpu.memory_space<vmem>>) attributes {dimension_semantics = [#tpu.dimension_semantics<parallel>], iteration_bounds = array<i64: 2>, scalar_prefetch = 0 : i64, scratch_operands = 2 : i64, tpu.core_type = #tpu.core_type<tc>, window_params = [{transform_indices = @transform_0, window_bounds = array<i64: 1, 8, 384>}, {pipeline_mode = #tpu.pipeline_mode<synchronous>, transform_indices = @transform_1, window_bounds = array<i64: 384, 1152>}, {pipeline_mode = #tpu.pipeline_mode<synchronous>, transform_indices = @transform_2, window_bounds = array<i64: 384, 384>}, {pipeline_mode = #tpu.pipeline_mode<synchronous>, transform_indices = @transform_3, window_bounds = array<i64: 1, 384>}, {transform_indices = @transform_4, window_bounds = array<i64: 1, 8, 384>}]} {
    %c0 = arith.constant 0 : index
    %c0_0 = arith.constant 0 : index
    %c0_1 = arith.constant 0 : index
    %0 = vector.load %arg1[%c0, %c0_0, %c0_1] : memref<1x8x384xf32, #tpu.memory_space<vmem>>, vector<1x8x384xf32>
    %1 = vector.shape_cast %0 : vector<1x8x384xf32> to vector<8x384xf32>
    %c0_2 = arith.constant 0 : index
    %c0_3 = arith.constant 0 : index
    %2 = vector.load %arg2[%c0_2, %c0_3] : memref<384x1152xf32, #tpu.memory_space<vmem>>, vector<384x1152xf32>
    %cst = arith.constant dense<0.000000e+00> : vector<8x1152xf32>
    %3 = tpu.matmul %1, %2, %cst {dimension_numbers = #tpu.dot_dimension_numbers<[1], [0], [0], [1], [0, 0, 1, 1], [], []>} : vector<8x384xf32>, vector<384x1152xf32>, vector<8x1152xf32> -> vector<8x1152xf32>
    %c0_4 = arith.constant 0 : index
    %c0_5 = arith.constant 0 : index
    %4 = vector.load %arg6[%c0_4, %c0_5] : memref<8x1152xf32, #tpu.memory_space<vmem>>, vector<8x1152xf32>
    tpu.vector_store %arg6[%c0_4, %c0_5], %3 {strides = array<i32>} : memref<8x1152xf32, #tpu.memory_space<vmem>>, vector<8x1152xf32>,
    %c0_6 = arith.constant 0 : index
    %c0_7 = arith.constant 0 : index
    %5 = vector.load %arg4[%c0_6, %c0_7] : memref<1x384xf32, #tpu.memory_space<vmem>>, vector<1x384xf32>
    %6 = vector.shape_cast %5 : vector<1x384xf32> to vector<1x384xf32>
    %7 = vector.broadcast %6 : vector<1x384xf32> to vector<8x384xf32>
    %8 = tpu.iota {dimensions = array<i32: 0>} : vector<8x1xi32>
    %9 = tpu.iota {dimensions = array<i32: 1>} : vector<8x8xi32>
    %c0_i32 = arith.constant 0 : i32
    %10 = vector.broadcast %c0_i32 : i32 to vector<8x1xi32>
    %11 = arith.addi %8, %10 : vector<8x1xi32>
    %12 = vector.broadcast %11 : vector<8x1xi32> to vector<8x8xi32>
    %13 = arith.cmpi sle, %9, %12 : vector<8x8xi32>
    %c0_8 = arith.constant 0 : index
    %c0_9 = arith.constant 0 : index
    %14 = vector.load %arg7[%c0_8, %c0_9] : memref<8x384xf32, #tpu.memory_space<vmem>>, vector<8x384xf32>
    tpu.vector_store %arg7[%c0_8, %c0_9], %7 {strides = array<i32>} : memref<8x384xf32, #tpu.memory_space<vmem>>, vector<8x384xf32>,
    %c0_10 = arith.constant 0 : index
    %c0_11 = arith.constant 0 : index
    %15 = vector.load %arg6[%c0_10, %c0_11] : memref<8x1152xf32, #tpu.memory_space<vmem>>, vector<8x64xf32>
    %c0_12 = arith.constant 0 : index
    %c384 = arith.constant 384 : index
    %16 = vector.load %arg6[%c0_12, %c384] : memref<8x1152xf32, #tpu.memory_space<vmem>>, vector<8x64xf32>
    %c0_13 = arith.constant 0 : index
    %c768 = arith.constant 768 : index
    %17 = vector.load %arg6[%c0_13, %c768] : memref<8x1152xf32, #tpu.memory_space<vmem>>, vector<8x64xf32>
    %cst_14 = arith.constant dense<0.000000e+00> : vector<8x8xf32>
    %18 = tpu.matmul %15, %16, %cst_14 {dimension_numbers = #tpu.dot_dimension_numbers<[1], [1], [0], [0], [0, 0, 1, 0], [], []>} : vector<8x64xf32>, vector<8x64xf32>, vector<8x8xf32> -> vector<8x8xf32>
    %cst_15 = arith.constant 0xFF800000 : f32
    %19 = vector.broadcast %cst_15 : f32 to vector<8x8xf32>
    %20 = arith.select %13, %18, %19 : vector<8x8xi1>, vector<8x8xf32>
    %cst_16 = arith.constant dense<0xFF800000> : vector<8xf32>
    %21 = vector.multi_reduction <maximumf>, %20, %cst_16 [1] : vector<8x8xf32> to vector<8xf32>
    %22 = vector.shape_cast %21 : vector<8xf32> to vector<8x1xf32>
    %23 = vector.broadcast %22 : vector<8x1xf32> to vector<8x8xf32>
    %24 = arith.subf %20, %23 : vector<8x8xf32>
    %25 = math.exp %24 : vector<8x8xf32>
    %cst_17 = arith.constant dense<0.000000e+00> : vector<8xf32>
    %26 = vector.multi_reduction <add>, %25, %cst_17 [1] : vector<8x8xf32> to vector<8xf32>
    %27 = vector.shape_cast %26 : vector<8xf32> to vector<8x1xf32>
    %28 = vector.broadcast %27 : vector<8x1xf32> to vector<8x8xf32>
    %29 = arith.divf %25, %28 : vector<8x8xf32>
    %cst_18 = arith.constant dense<0.000000e+00> : vector<8x64xf32>
    %30 = tpu.matmul %29, %17, %cst_18 {dimension_numbers = #tpu.dot_dimension_numbers<[1], [0], [0], [1], [0, 0, 1, 1], [], []>} : vector<8x8xf32>, vector<8x64xf32>, vector<8x64xf32> -> vector<8x64xf32>
    %c0_19 = arith.constant 0 : index
    %c0_20 = arith.constant 0 : index
    %31 = vector.load %arg7[%c0_19, %c0_20] : memref<8x384xf32, #tpu.memory_space<vmem>>, vector<8x384xf32>
    %c0_21 = arith.constant 0 : index
    %c0_22 = arith.constant 0 : index
    %32 = vector.load %arg3[%c0_21, %c0_22] : memref<384x384xf32, #tpu.memory_space<vmem>>, vector<64x384xf32>
    %cst_23 = arith.constant dense<0.000000e+00> : vector<8x384xf32>
    %33 = tpu.matmul %30, %32, %cst_23 {dimension_numbers = #tpu.dot_dimension_numbers<[1], [0], [0], [1], [0, 0, 1, 1], [], []>} : vector<8x64xf32>, vector<64x384xf32>, vector<8x384xf32> -> vector<8x384xf32>
    %34 = arith.addf %31, %33 : vector<8x384xf32>
    %c0_24 = arith.constant 0 : index
    %c0_25 = arith.constant 0 : index
    %35 = vector.load %arg7[%c0_24, %c0_25] : memref<8x384xf32, #tpu.memory_space<vmem>>, vector<8x384xf32>
    tpu.vector_store %arg7[%c0_24, %c0_25], %34 {strides = array<i32>} : memref<8x384xf32, #tpu.memory_space<vmem>>, vector<8x384xf32>,
    %c0_26 = arith.constant 0 : index
    %c64 = arith.constant 64 : index
    %36 = vector.load %arg6[%c0_26, %c64] : memref<8x1152xf32, #tpu.memory_space<vmem>>, vector<8x64xf32>
    %c0_27 = arith.constant 0 : index
    %c448 = arith.constant 448 : index
    %37 = vector.load %arg6[%c0_27, %c448] : memref<8x1152xf32, #tpu.memory_space<vmem>>, vector<8x64xf32>
    %c0_28 = arith.constant 0 : index
    %c832 = arith.constant 832 : index
    %38 = vector.load %arg6[%c0_28, %c832] : memref<8x1152xf32, #tpu.memory_space<vmem>>, vector<8x64xf32>
    %cst_29 = arith.constant dense<0.000000e+00> : vector<8x8xf32>
    %39 = tpu.matmul %36, %37, %cst_29 {dimension_numbers = #tpu.dot_dimension_numbers<[1], [1], [0], [0], [0, 0, 1, 0], [], []>} : vector<8x64xf32>, vector<8x64xf32>, vector<8x8xf32> -> vector<8x8xf32>
    %cst_30 = arith.constant 0xFF800000 : f32
    %40 = vector.broadcast %cst_30 : f32 to vector<8x8xf32>
    %41 = arith.select %13, %39, %40 : vector<8x8xi1>, vector<8x8xf32>
    %cst_31 = arith.constant dense<0xFF800000> : vector<8xf32>
    %42 = vector.multi_reduction <maximumf>, %41, %cst_31 [1] : vector<8x8xf32> to vector<8xf32>
    %43 = vector.shape_cast %42 : vector<8xf32> to vector<8x1xf32>
    %44 = vector.broadcast %43 : vector<8x1xf32> to vector<8x8xf32>
    %45 = arith.subf %41, %44 : vector<8x8xf32>
    %46 = math.exp %45 : vector<8x8xf32>
    %cst_32 = arith.constant dense<0.000000e+00> : vector<8xf32>
    %47 = vector.multi_reduction <add>, %46, %cst_32 [1] : vector<8x8xf32> to vector<8xf32>
    %48 = vector.shape_cast %47 : vector<8xf32> to vector<8x1xf32>
    %49 = vector.broadcast %48 : vector<8x1xf32> to vector<8x8xf32>
    %50 = arith.divf %46, %49 : vector<8x8xf32>
    %cst_33 = arith.constant dense<0.000000e+00> : vector<8x64xf32>
    %51 = tpu.matmul %50, %38, %cst_33 {dimension_numbers = #tpu.dot_dimension_numbers<[1], [0], [0], [1], [0, 0, 1, 1], [], []>} : vector<8x8xf32>, vector<8x64xf32>, vector<8x64xf32> -> vector<8x64xf32>
    %c0_34 = arith.constant 0 : index
    %c0_35 = arith.constant 0 : index
    %52 = vector.load %arg7[%c0_34, %c0_35] : memref<8x384xf32, #tpu.memory_space<vmem>>, vector<8x384xf32>
    %c64_36 = arith.constant 64 : index
    %c0_37 = arith.constant 0 : index
    %53 = vector.load %arg3[%c64_36, %c0_37] : memref<384x384xf32, #tpu.memory_space<vmem>>, vector<64x384xf32>
    %cst_38 = arith.constant dense<0.000000e+00> : vector<8x384xf32>
    %54 = tpu.matmul %51, %53, %cst_38 {dimension_numbers = #tpu.dot_dimension_numbers<[1], [0], [0], [1], [0, 0, 1, 1], [], []>} : vector<8x64xf32>, vector<64x384xf32>, vector<8x384xf32> -> vector<8x384xf32>
    %55 = arith.addf %52, %54 : vector<8x384xf32>
    %c0_39 = arith.constant 0 : index
    %c0_40 = arith.constant 0 : index
    %56 = vector.load %arg7[%c0_39, %c0_40] : memref<8x384xf32, #tpu.memory_space<vmem>>, vector<8x384xf32>
    tpu.vector_store %arg7[%c0_39, %c0_40], %55 {strides = array<i32>} : memref<8x384xf32, #tpu.memory_space<vmem>>, vector<8x384xf32>,
    %c0_41 = arith.constant 0 : index
    %c128 = arith.constant 128 : index
    %57 = vector.load %arg6[%c0_41, %c128] : memref<8x1152xf32, #tpu.memory_space<vmem>>, vector<8x64xf32>
    %c0_42 = arith.constant 0 : index
    %c512 = arith.constant 512 : index
    %58 = vector.load %arg6[%c0_42, %c512] : memref<8x1152xf32, #tpu.memory_space<vmem>>, vector<8x64xf32>
    %c0_43 = arith.constant 0 : index
    %c896 = arith.constant 896 : index
    %59 = vector.load %arg6[%c0_43, %c896] : memref<8x1152xf32, #tpu.memory_space<vmem>>, vector<8x64xf32>
    %cst_44 = arith.constant dense<0.000000e+00> : vector<8x8xf32>
    %60 = tpu.matmul %57, %58, %cst_44 {dimension_numbers = #tpu.dot_dimension_numbers<[1], [1], [0], [0], [0, 0, 1, 0], [], []>} : vector<8x64xf32>, vector<8x64xf32>, vector<8x8xf32> -> vector<8x8xf32>
    %cst_45 = arith.constant 0xFF800000 : f32
    %61 = vector.broadcast %cst_45 : f32 to vector<8x8xf32>
    %62 = arith.select %13, %60, %61 : vector<8x8xi1>, vector<8x8xf32>
    %cst_46 = arith.constant dense<0xFF800000> : vector<8xf32>
    %63 = vector.multi_reduction <maximumf>, %62, %cst_46 [1] : vector<8x8xf32> to vector<8xf32>
    %64 = vector.shape_cast %63 : vector<8xf32> to vector<8x1xf32>
    %65 = vector.broadcast %64 : vector<8x1xf32> to vector<8x8xf32>
    %66 = arith.subf %62, %65 : vector<8x8xf32>
    %67 = math.exp %66 : vector<8x8xf32>
    %cst_47 = arith.constant dense<0.000000e+00> : vector<8xf32>
    %68 = vector.multi_reduction <add>, %67, %cst_47 [1] : vector<8x8xf32> to vector<8xf32>
    %69 = vector.shape_cast %68 : vector<8xf32> to vector<8x1xf32>
    %70 = vector.broadcast %69 : vector<8x1xf32> to vector<8x8xf32>
    %71 = arith.divf %67, %70 : vector<8x8xf32>
    %cst_48 = arith.constant dense<0.000000e+00> : vector<8x64xf32>
    %72 = tpu.matmul %71, %59, %cst_48 {dimension_numbers = #tpu.dot_dimension_numbers<[1], [0], [0], [1], [0, 0, 1, 1], [], []>} : vector<8x8xf32>, vector<8x64xf32>, vector<8x64xf32> -> vector<8x64xf32>
    %c0_49 = arith.constant 0 : index
    %c0_50 = arith.constant 0 : index
    %73 = vector.load %arg7[%c0_49, %c0_50] : memref<8x384xf32, #tpu.memory_space<vmem>>, vector<8x384xf32>
    %c128_51 = arith.constant 128 : index
    %c0_52 = arith.constant 0 : index
    %74 = vector.load %arg3[%c128_51, %c0_52] : memref<384x384xf32, #tpu.memory_space<vmem>>, vector<64x384xf32>
    %cst_53 = arith.constant dense<0.000000e+00> : vector<8x384xf32>
    %75 = tpu.matmul %72, %74, %cst_53 {dimension_numbers = #tpu.dot_dimension_numbers<[1], [0], [0], [1], [0, 0, 1, 1], [], []>} : vector<8x64xf32>, vector<64x384xf32>, vector<8x384xf32> -> vector<8x384xf32>
    %76 = arith.addf %73, %75 : vector<8x384xf32>
    %c0_54 = arith.constant 0 : index
    %c0_55 = arith.constant 0 : index
    %77 = vector.load %arg7[%c0_54, %c0_55] : memref<8x384xf32, #tpu.memory_space<vmem>>, vector<8x384xf32>
    tpu.vector_store %arg7[%c0_54, %c0_55], %76 {strides = array<i32>} : memref<8x384xf32, #tpu.memory_space<vmem>>, vector<8x384xf32>,
    %c0_56 = arith.constant 0 : index
    %c192 = arith.constant 192 : index
    %78 = vector.load %arg6[%c0_56, %c192] : memref<8x1152xf32, #tpu.memory_space<vmem>>, vector<8x64xf32>
    %c0_57 = arith.constant 0 : index
    %c576 = arith.constant 576 : index
    %79 = vector.load %arg6[%c0_57, %c576] : memref<8x1152xf32, #tpu.memory_space<vmem>>, vector<8x64xf32>
    %c0_58 = arith.constant 0 : index
    %c960 = arith.constant 960 : index
    %80 = vector.load %arg6[%c0_58, %c960] : memref<8x1152xf32, #tpu.memory_space<vmem>>, vector<8x64xf32>
    %cst_59 = arith.constant dense<0.000000e+00> : vector<8x8xf32>
    %81 = tpu.matmul %78, %79, %cst_59 {dimension_numbers = #tpu.dot_dimension_numbers<[1], [1], [0], [0], [0, 0, 1, 0], [], []>} : vector<8x64xf32>, vector<8x64xf32>, vector<8x8xf32> -> vector<8x8xf32>
    %cst_60 = arith.constant 0xFF800000 : f32
    %82 = vector.broadcast %cst_60 : f32 to vector<8x8xf32>
    %83 = arith.select %13, %81, %82 : vector<8x8xi1>, vector<8x8xf32>
    %cst_61 = arith.constant dense<0xFF800000> : vector<8xf32>
    %84 = vector.multi_reduction <maximumf>, %83, %cst_61 [1] : vector<8x8xf32> to vector<8xf32>
    %85 = vector.shape_cast %84 : vector<8xf32> to vector<8x1xf32>
    %86 = vector.broadcast %85 : vector<8x1xf32> to vector<8x8xf32>
    %87 = arith.subf %83, %86 : vector<8x8xf32>
    %88 = math.exp %87 : vector<8x8xf32>
    %cst_62 = arith.constant dense<0.000000e+00> : vector<8xf32>
    %89 = vector.multi_reduction <add>, %88, %cst_62 [1] : vector<8x8xf32> to vector<8xf32>
    %90 = vector.shape_cast %89 : vector<8xf32> to vector<8x1xf32>
    %91 = vector.broadcast %90 : vector<8x1xf32> to vector<8x8xf32>
    %92 = arith.divf %88, %91 : vector<8x8xf32>
    %cst_63 = arith.constant dense<0.000000e+00> : vector<8x64xf32>
    %93 = tpu.matmul %92, %80, %cst_63 {dimension_numbers = #tpu.dot_dimension_numbers<[1], [0], [0], [1], [0, 0, 1, 1], [], []>} : vector<8x8xf32>, vector<8x64xf32>, vector<8x64xf32> -> vector<8x64xf32>
    %c0_64 = arith.constant 0 : index
    %c0_65 = arith.constant 0 : index
    %94 = vector.load %arg7[%c0_64, %c0_65] : memref<8x384xf32, #tpu.memory_space<vmem>>, vector<8x384xf32>
    %c192_66 = arith.constant 192 : index
    %c0_67 = arith.constant 0 : index
    %95 = vector.load %arg3[%c192_66, %c0_67] : memref<384x384xf32, #tpu.memory_space<vmem>>, vector<64x384xf32>
    %cst_68 = arith.constant dense<0.000000e+00> : vector<8x384xf32>
    %96 = tpu.matmul %93, %95, %cst_68 {dimension_numbers = #tpu.dot_dimension_numbers<[1], [0], [0], [1], [0, 0, 1, 1], [], []>} : vector<8x64xf32>, vector<64x384xf32>, vector<8x384xf32> -> vector<8x384xf32>
    %97 = arith.addf %94, %96 : vector<8x384xf32>
    %c0_69 = arith.constant 0 : index
    %c0_70 = arith.constant 0 : index
    %98 = vector.load %arg7[%c0_69, %c0_70] : memref<8x384xf32, #tpu.memory_space<vmem>>, vector<8x384xf32>
    tpu.vector_store %arg7[%c0_69, %c0_70], %97 {strides = array<i32>} : memref<8x384xf32, #tpu.memory_space<vmem>>, vector<8x384xf32>,
    %c0_71 = arith.constant 0 : index
    %c256 = arith.constant 256 : index
    %99 = vector.load %arg6[%c0_71, %c256] : memref<8x1152xf32, #tpu.memory_space<vmem>>, vector<8x64xf32>
    %c0_72 = arith.constant 0 : index
    %c640 = arith.constant 640 : index
    %100 = vector.load %arg6[%c0_72, %c640] : memref<8x1152xf32, #tpu.memory_space<vmem>>, vector<8x64xf32>
    %c0_73 = arith.constant 0 : index
    %c1024 = arith.constant 1024 : index
    %101 = vector.load %arg6[%c0_73, %c1024] : memref<8x1152xf32, #tpu.memory_space<vmem>>, vector<8x64xf32>
    %cst_74 = arith.constant dense<0.000000e+00> : vector<8x8xf32>
    %102 = tpu.matmul %99, %100, %cst_74 {dimension_numbers = #tpu.dot_dimension_numbers<[1], [1], [0], [0], [0, 0, 1, 0], [], []>} : vector<8x64xf32>, vector<8x64xf32>, vector<8x8xf32> -> vector<8x8xf32>
    %cst_75 = arith.constant 0xFF800000 : f32
    %103 = vector.broadcast %cst_75 : f32 to vector<8x8xf32>
    %104 = arith.select %13, %102, %103 : vector<8x8xi1>, vector<8x8xf32>
    %cst_76 = arith.constant dense<0xFF800000> : vector<8xf32>
    %105 = vector.multi_reduction <maximumf>, %104, %cst_76 [1] : vector<8x8xf32> to vector<8xf32>
    %106 = vector.shape_cast %105 : vector<8xf32> to vector<8x1xf32>
    %107 = vector.broadcast %106 : vector<8x1xf32> to vector<8x8xf32>
    %108 = arith.subf %104, %107 : vector<8x8xf32>
    %109 = math.exp %108 : vector<8x8xf32>
    %cst_77 = arith.constant dense<0.000000e+00> : vector<8xf32>
    %110 = vector.multi_reduction <add>, %109, %cst_77 [1] : vector<8x8xf32> to vector<8xf32>
    %111 = vector.shape_cast %110 : vector<8xf32> to vector<8x1xf32>
    %112 = vector.broadcast %111 : vector<8x1xf32> to vector<8x8xf32>
    %113 = arith.divf %109, %112 : vector<8x8xf32>
    %cst_78 = arith.constant dense<0.000000e+00> : vector<8x64xf32>
    %114 = tpu.matmul %113, %101, %cst_78 {dimension_numbers = #tpu.dot_dimension_numbers<[1], [0], [0], [1], [0, 0, 1, 1], [], []>} : vector<8x8xf32>, vector<8x64xf32>, vector<8x64xf32> -> vector<8x64xf32>
    %c0_79 = arith.constant 0 : index
    %c0_80 = arith.constant 0 : index
    %115 = vector.load %arg7[%c0_79, %c0_80] : memref<8x384xf32, #tpu.memory_space<vmem>>, vector<8x384xf32>
    %c256_81 = arith.constant 256 : index
    %c0_82 = arith.constant 0 : index
    %116 = vector.load %arg3[%c256_81, %c0_82] : memref<384x384xf32, #tpu.memory_space<vmem>>, vector<64x384xf32>
    %cst_83 = arith.constant dense<0.000000e+00> : vector<8x384xf32>
    %117 = tpu.matmul %114, %116, %cst_83 {dimension_numbers = #tpu.dot_dimension_numbers<[1], [0], [0], [1], [0, 0, 1, 1], [], []>} : vector<8x64xf32>, vector<64x384xf32>, vector<8x384xf32> -> vector<8x384xf32>
    %118 = arith.addf %115, %117 : vector<8x384xf32>
    %c0_84 = arith.constant 0 : index
    %c0_85 = arith.constant 0 : index
    %119 = vector.load %arg7[%c0_84, %c0_85] : memref<8x384xf32, #tpu.memory_space<vmem>>, vector<8x384xf32>
    tpu.vector_store %arg7[%c0_84, %c0_85], %118 {strides = array<i32>} : memref<8x384xf32, #tpu.memory_space<vmem>>, vector<8x384xf32>,
    %c0_86 = arith.constant 0 : index
    %c320 = arith.constant 320 : index
    %120 = vector.load %arg6[%c0_86, %c320] : memref<8x1152xf32, #tpu.memory_space<vmem>>, vector<8x64xf32>
    %c0_87 = arith.constant 0 : index
    %c704 = arith.constant 704 : index
    %121 = vector.load %arg6[%c0_87, %c704] : memref<8x1152xf32, #tpu.memory_space<vmem>>, vector<8x64xf32>
    %c0_88 = arith.constant 0 : index
    %c1088 = arith.constant 1088 : index
    %122 = vector.load %arg6[%c0_88, %c1088] : memref<8x1152xf32, #tpu.memory_space<vmem>>, vector<8x64xf32>
    %cst_89 = arith.constant dense<0.000000e+00> : vector<8x8xf32>
    %123 = tpu.matmul %120, %121, %cst_89 {dimension_numbers = #tpu.dot_dimension_numbers<[1], [1], [0], [0], [0, 0, 1, 0], [], []>} : vector<8x64xf32>, vector<8x64xf32>, vector<8x8xf32> -> vector<8x8xf32>
    %cst_90 = arith.constant 0xFF800000 : f32
    %124 = vector.broadcast %cst_90 : f32 to vector<8x8xf32>
    %125 = arith.select %13, %123, %124 : vector<8x8xi1>, vector<8x8xf32>
    %cst_91 = arith.constant dense<0xFF800000> : vector<8xf32>
    %126 = vector.multi_reduction <maximumf>, %125, %cst_91 [1] : vector<8x8xf32> to vector<8xf32>
    %127 = vector.shape_cast %126 : vector<8xf32> to vector<8x1xf32>
    %128 = vector.broadcast %127 : vector<8x1xf32> to vector<8x8xf32>
    %129 = arith.subf %125, %128 : vector<8x8xf32>
    %130 = math.exp %129 : vector<8x8xf32>
    %cst_92 = arith.constant dense<0.000000e+00> : vector<8xf32>
    %131 = vector.multi_reduction <add>, %130, %cst_92 [1] : vector<8x8xf32> to vector<8xf32>
    %132 = vector.shape_cast %131 : vector<8xf32> to vector<8x1xf32>
    %133 = vector.broadcast %132 : vector<8x1xf32> to vector<8x8xf32>
    %134 = arith.divf %130, %133 : vector<8x8xf32>
    %cst_93 = arith.constant dense<0.000000e+00> : vector<8x64xf32>
    %135 = tpu.matmul %134, %122, %cst_93 {dimension_numbers = #tpu.dot_dimension_numbers<[1], [0], [0], [1], [0, 0, 1, 1], [], []>} : vector<8x8xf32>, vector<8x64xf32>, vector<8x64xf32> -> vector<8x64xf32>
    %c0_94 = arith.constant 0 : index
    %c0_95 = arith.constant 0 : index
    %136 = vector.load %arg7[%c0_94, %c0_95] : memref<8x384xf32, #tpu.memory_space<vmem>>, vector<8x384xf32>
    %c320_96 = arith.constant 320 : index
    %c0_97 = arith.constant 0 : index
    %137 = vector.load %arg3[%c320_96, %c0_97] : memref<384x384xf32, #tpu.memory_space<vmem>>, vector<64x384xf32>
    %cst_98 = arith.constant dense<0.000000e+00> : vector<8x384xf32>
    %138 = tpu.matmul %135, %137, %cst_98 {dimension_numbers = #tpu.dot_dimension_numbers<[1], [0], [0], [1], [0, 0, 1, 1], [], []>} : vector<8x64xf32>, vector<64x384xf32>, vector<8x384xf32> -> vector<8x384xf32>
    %139 = arith.addf %136, %138 : vector<8x384xf32>
    %c0_99 = arith.constant 0 : index
    %c0_100 = arith.constant 0 : index
    %140 = vector.load %arg7[%c0_99, %c0_100] : memref<8x384xf32, #tpu.memory_space<vmem>>, vector<8x384xf32>
    tpu.vector_store %arg7[%c0_99, %c0_100], %139 {strides = array<i32>} : memref<8x384xf32, #tpu.memory_space<vmem>>, vector<8x384xf32>,
    %c0_101 = arith.constant 0 : index
    %c0_102 = arith.constant 0 : index
    %141 = vector.load %arg7[%c0_101, %c0_102] : memref<8x384xf32, #tpu.memory_space<vmem>>, vector<8x384xf32>
    %c0_103 = arith.constant 0 : index
    %c0_104 = arith.constant 0 : index
    %c0_105 = arith.constant 0 : index
    %142 = vector.load %arg5[%c0_103, %c0_104, %c0_105] : memref<1x8x384xf32, #tpu.memory_space<vmem>>, vector<1x8x384xf32>
    %143 = vector.shape_cast %142 : vector<1x8x384xf32> to vector<8x384xf32>
    %144 = vector.shape_cast %141 : vector<8x384xf32> to vector<1x8x384xf32>
    tpu.vector_store %arg5[%c0_103, %c0_104, %c0_105], %144 {strides = array<i32>} : memref<1x8x384xf32, #tpu.memory_space<vmem>>, vector<1x8x384xf32>,
    return
  }
  func.func @transform_0(%arg0: i32) -> (i32, i32, i32) {
    %c0_i32 = arith.constant 0 : i32
    %c0_i32_0 = arith.constant 0 : i32
    %c0_i32_1 = arith.constant 0 : i32
    return %arg0, %c0_i32, %c0_i32_0 : i32, i32, i32
  }
  func.func @transform_1(%arg0: i32) -> (i32, i32) {
    %c0_i32 = arith.constant 0 : i32
    %c0_i32_0 = arith.constant 0 : i32
    %c0_i32_1 = arith.constant 0 : i32
    return %c0_i32, %c0_i32_0 : i32, i32
  }
  func.func @transform_2(%arg0: i32) -> (i32, i32) {
    %c0_i32 = arith.constant 0 : i32
    %c0_i32_0 = arith.constant 0 : i32
    %c0_i32_1 = arith.constant 0 : i32
    return %c0_i32, %c0_i32_0 : i32, i32
  }
  func.func @transform_3(%arg0: i32) -> (i32, i32) {
    %c0_i32 = arith.constant 0 : i32
    %c0_i32_0 = arith.constant 0 : i32
    %c0_i32_1 = arith.constant 0 : i32
    return %c0_i32, %c0_i32_0 : i32, i32
  }
  func.func @transform_4(%arg0: i32) -> (i32, i32, i32) {
    %c0_i32 = arith.constant 0 : i32
    %c0_i32_0 = arith.constant 0 : i32
    %c0_i32_1 = arith.constant 0 : i32
    return %arg0, %c0_i32, %c0_i32_0 : i32, i32, i32
  }
}

</mosaic_0001>

<bundles_post_ra>
// kernel: tpu_custom_call.1
= control target key start
LH: loop header
LB: loop body
LE: loop exit
PB: predicated region body
PF: predicated region fallthrough
CT: control target
= control target key end

     0   :  { %9 = vsyncpa [#allocation5], 0  ;;  %s5464_s0 = inlined_call_operand.hbm [shape: f32[2,8,384], index: 0, kind: input, shape index: {}]   ;;  %s5465_s1 = inlined_call_operand.hbm [shape: f32[384,1152], index: 1, kind: input, shape index: {}]   ;;  %s5466_s2 = inlined_call_operand.hbm [shape: f32[384,384], index: 2, kind: input, shape index: {}]   ;;  %s5467_s3 = inlined_call_operand.hbm [shape: f32[1,384], index: 3, kind: input, shape index: {}]   ;;  %s5468_s4 = inlined_call_operand.hbm [shape: f32[2,8,384], index: 4, kind: output, shape index: {}]  }
   0x1   :  { %11 = vsyncpa [#allocation5 + $0x1], 0 }
   0x2   :  { %12 = vsyncpa [#allocation8], 0 }
   0x3   :  { %13 = vsyncpa [#allocation11], 0 }
   0x4   :  { %14 = vsyncpa [#allocation6], 0 }
   0x5   :  { %16 = vsyncpa [#allocation6 + $0x1], 0  ;;  %s4990_s15 = smov 0   ;;  %s4992_s16 = smov 0  }
   0x6   :  { %s4994_s17 = smov 0   ;;  %s4996_s18 = smov 0  }
   0x7 LB: > { %s5011_s19 = sadd.s32 4294967295, %s4950_s18   ;;  %s3625_s20 = sadd.s32 4294967294, %s4950_s18   ;;  %s4950_s18 = sphi %s4996_s18, %s5493_s18   ;;  %s4946_s17 = sphi %s4994_s17, %s5492_s17   ;;  %s4942_s16 = sphi %s4992_s16, %s5491_s16   ;;  %s4938_s15 = sphi %s4990_s15, %s5490_s15  }
   0x8   : > { %p42_p0 = scmp.ne.s32.totalorder %s4942_s16, %s4938_s15  ;;  %p5469_p1 = scmp.eq.s32.totalorder %s5011_s19, 0 }
   0x9   : > { %p135_p3 = scmp.eq.s32.totalorder %s3625_s20, 1  ;;  %p3626_p5 = scmp.ge.s32.totalorder %s4950_s18, 1 }
   0xa   : > { %p5020_p4 = por %p5469_p1, %p42_p0  ;;  %p142_p7 = scmp.lt.s32.totalorder %s4950_s18, 3 }
   0xb   : > { %p5025_p6 = por %p135_p3, %p42_p0  ;;  %s4952_s24 = smov [#allocation7]  }
   0xc   : > { %s5472_s21 = scalar_select %p5020_p4, 1, 0 }
   0xd   : > { %s5473_s22 = scalar_select %p5025_p6, 1, 0 }
   0xe   : > { %p5030_p8 = pnand %p3626_p5, %p142_p7  ;;  %s154_s25 = sshll.u32 %s4952_s24, 4  ;;  %s5034_s25 = int_to_ptr.vmem [resolvable:$true] %s154_s25 }
   0xf   : > { %s4953_s27 = smov [#allocation9]   ;;  %s4762_s5 = scalar_lea.hbm %s5465_s1, 55296 }
  0x10   : > { %s5474_s23 = scalar_select %p5030_p8, 1, 0 }
  0x11   : > { %p4667_p9 = pneg %p5030_p8  ;;  %s167_s28 = sshll.u32 %s4953_s27, 4  ;;  %s5045_s28 = int_to_ptr.vmem [resolvable:$true] %s167_s28 }
  0x12   : > { %p4763_p12 = scmp.ne.s32.totalorder %s5465_s1, %s4762_s5  ;;  %p4769_p5 = scmp.lt.u32.totalorder %s4762_s5, %s5465_s1 }
  0x13   : > { %p5041_p11 = pnand %p4667_p9, %p5469_p1 }
  0x15   : > { %p5055_p13 = pneg %p5041_p11 }
  0x17   : > { %p4765_p0 = pnand %p5055_p13, %p4763_p12 }
  0x19   : > { %p4766_p3 = pneg %p4765_p0 }
  0x1b   : > { %p4771_p7 = pnand %p4769_p5, %p4766_p3 }
  0x1d   : > { %4774 = shalt.err (!%p4771_p7)
}
  0x1e   : > { %s4775_s11 = scalar_lea.vmem %s5034_s25, 55296  ;;  %p4783_p2 = scmp.lt.s32.totalorder %s5034_s25, %s5034_s25 }
  0x1f   : > { %p4776_p9 = scmp.ne.s32.totalorder %s5034_s25, %s4775_s11  ;;  %p4784_p6 = scmp.lt.s32.totalorder %s4775_s11, %s4775_s11 }
  0x21   : > { %p4778_p10 = pnand %p4776_p9, %p5055_p13  ;;  %p4785_p12 = por %p4784_p6, %p4783_p2 }
  0x23   : > { %p4779_p1 = pneg %p4778_p10 }
  0x25   : > { %p4786_p0 = pnand %p4785_p12, %p4779_p1 }
  0x27   : > { %4789 = shalt.err (!%p4786_p0)
}
  0x28   : > { %s4954_s12 = smov 1152   ;;  %s4955_s13 = smov 72  }
  0x29   : > { %4670 = dma.hbm_to_vmem [thread:$0]  (!%p5041_p11), %s5465_s1, 55296, %s5034_s25, [#allocation8], %s4954_s12, %s4954_s12, %s4955_s13  }
  0x2a   : > { %s4790_s29 = scalar_lea.hbm %s5466_s2, 18432 }
  0x2b   : > { %p4791_p2 = scmp.ne.s32.totalorder %s5466_s2, %s4790_s29  ;;  %p4797_p10 = scmp.lt.u32.totalorder %s4790_s29, %s5466_s2 }
  0x2d   : > { %p4793_p1 = pnand %p4791_p2, %p5055_p13 }
  0x2f   : > { %p4794_p6 = pneg %p4793_p1 }
  0x31   : > { %p4799_p3 = pnand %p4797_p10, %p4794_p6 }
  0x33   : > { %4802 = shalt.err (!%p4799_p3)
}
  0x34   : > { %s4803_s25 = scalar_lea.vmem %s5045_s28, 18432  ;;  %p4811_p12 = scmp.lt.s32.totalorder %s5045_s28, %s5045_s28 }
  0x35   : > { %p4804_p5 = scmp.ne.s32.totalorder %s5045_s28, %s4803_s25  ;;  %p4812_p0 = scmp.lt.s32.totalorder %s4803_s25, %s4803_s25 }
  0x37   : > { %p4806_p7 = pnand %p4804_p5, %p5055_p13  ;;  %p4813_p2 = por %p4812_p0, %p4811_p12 }
  0x39   : > { %p4807_p9 = pneg %p4806_p7 }
  0x3b   : > { %p4814_p1 = pnand %p4813_p2, %p4807_p9 }
  0x3d   : > { %4817 = shalt.err (!%p4814_p1)
}
  0x3e   : > { %s4956_s9 = smov 384   ;;  %s4957_s10 = smov 24  }
  0x3f   : > { %4673 = dma.hbm_to_vmem [thread:$0]  (!%p5041_p11), %s5466_s2, 18432, %s5045_s28, [#allocation8], %s4956_s9, %s4956_s9, %s4957_s10  }
  0x40   : > { %s4958_s13 = smov [#allocation10]   ;;  %s5100_s20 = sadd.s32 1, %s4950_s18  }
  0x41   : > { %s181_s14 = sshll.u32 %s4958_s13, 4  ;;  %s4818_s29 = scalar_lea.hbm %s5467_s3, 48  ;;  %s182_s14 = int_to_ptr.vmem [resolvable:$true] %s181_s14 }
  0x42   : > { %p4819_p6 = scmp.ne.s32.totalorder %s5467_s3, %s4818_s29  ;;  %p4825_p5 = scmp.lt.u32.totalorder %s4818_s29, %s5467_s3 }
  0x44   : > { %p4821_p10 = pnand %p4819_p6, %p5055_p13 }
  0x46   : > { %p4822_p3 = pneg %p4821_p10 }
  0x48   : > { %p4827_p7 = pnand %p4825_p5, %p4822_p3 }
  0x4a   : > { %4830 = shalt.err (!%p4827_p7)
}
  0x4b   : > { %s4831_s28 = scalar_lea.vmem %s182_s14, 48  ;;  %s4838_s25 = scalar_lea.vmem %s182_s14, 64 }
  0x4c   : > { %p4832_p9 = scmp.ne.s32.totalorder %s182_s14, %s4831_s28  ;;  %p4839_p2 = scmp.lt.s32.totalorder %s182_s14, %s182_s14 }
  0x4d   : > { %p4840_p1 = scmp.lt.s32.totalorder %s4838_s25, %s4831_s28 }
  0x4e   : > { %p4834_p12 = pnand %p4832_p9, %p5055_p13 }
  0x4f   : > { %p4841_p4 = por %p4840_p1, %p4839_p2 }
  0x50   : > { %p4835_p0 = pneg %p4834_p12 }
  0x52   : > { %p4842_p8 = pnand %p4841_p4, %p4835_p0 }
  0x54   : > { %4845 = shalt.err (!%p4842_p8)
}
  0x55   : > { %4676 = dma.hbm_to_vmem [thread:$0]  (!%p5041_p11), %s5467_s3, 48, %s182_s14, [#allocation11]  }
  0x56   : > { %s26_s8 = ssub.s32 %s4950_s18, %s5100_s20  ;;  %s29_s11 = sadd.s32 1, %s4946_s17 }
  0x57   : > { %p27_p4 = scmp.eq.s32.totalorder %s26_s8, 0  ;;  %p36_p8 = scmp.ne.s32.totalorder %s4946_s17, %s4942_s16 }
  0x58   : > { %p37_p13 = scmp.eq.s32.totalorder %s4950_s18, 0  ;;  %p4688_p6 = scmp.lt.s32.totalorder %s4950_s18, 2 }
  0x59   : > { %s5128_s26 = scalar_select %p27_p4, %s4946_s17, %s29_s11  }
  0x5a   : > { %p38_p10 = por %p37_p13, %p36_p8  ;;  %p5477_p3 = scmp.eq.s32.totalorder %s5011_s19, 1 }
  0x5b   : > { %s192_s13 = sand.u32 1, %s4946_s17   ;;  %s4648_s24 = smul.u32 384, %s4950_s18 }
  0x5c   : > { %p5132_p5 = por %p5477_p3, %p36_p8  ;;  %s4647_s27 = smul.u32 24, %s192_s13 }
  0x5d   : > { %p5138_p7 = pnand %p4688_p6, %p38_p10  ;;  %s5145_s5 = scalar_lea.hbm %s5464_s0, %s4648_s24 }
  0x5e   : > { %s196_s6 = scalar_lea.vmem [#allocation4], %s4647_s27  ;;  %s193_s28 = scalar_lea.sflag [#allocation5], %s192_s13 }
  0x5f   : > { %s204_s7 = sshll.u32 %s196_s6, 4  ;;  %s4846_s25 = scalar_lea.hbm %s5145_s5, 384  ;;  %s5147_s7 = int_to_ptr.vmem [resolvable:$true] %s204_s7 }
  0x60   : > { %p4847_p11 = scmp.ne.s32.totalorder %s5145_s5, %s4846_s25  ;;  %p4848_p9 = pneg %p5138_p7 }
  0x61   : > { %s4851_s8 = scalar_lea.hbm %s5464_s0, 768  ;;  %p4852_p2 = scmp.lt.u32.totalorder %s5145_s5, %s5464_s0 }
  0x62   : > { %p4849_p12 = pnand %p4848_p9, %p4847_p11  ;;  %p4853_p1 = scmp.lt.u32.totalorder %s4851_s8, %s4846_s25 }
  0x63   : > { %p4855_p8 = scmp.lt.u32.totalorder %s4846_s25, %s5145_s5 }
  0x64   : > { %p4850_p0 = pneg %p4849_p12  ;;  %p4854_p4 = por %p4853_p1, %p4852_p2 }
  0x66   : > { %p4856_p13 = por %p4855_p8, %p4854_p4 }
  0x68   : > { %p4857_p6 = pnand %p4856_p13, %p4850_p0 }
  0x6a   : > { %4860 = shalt.err (!%p4857_p6)
}
  0x6b   : > { %s4861_s13 = scalar_lea.vmem %s5147_s7, 384  ;;  %s4959_s27 = smov [#allocation4]  }
  0x6c   : > { %p4862_p10 = scmp.ne.s32.totalorder %s5147_s7, %s4861_s13  ;;  %s4866_s14 = sshll.u32 %s4959_s27, 4  ;;  %s4867_s14 = int_to_ptr.vmem [resolvable:$false] %s4866_s14 }
  0x6d   : > { %s4868_s30 = scalar_lea.vmem %s4867_s14, 768  ;;  %p4869_p12 = scmp.lt.s32.totalorder %s5147_s7, %s4867_s14 }
  0x6e   : > { %p4864_p3 = pnand %p4862_p10, %p4848_p9  ;;  %p4870_p2 = scmp.lt.s32.totalorder %s4868_s30, %s4861_s13 }
  0x70   : > { %p4865_p11 = pneg %p4864_p3  ;;  %p4871_p1 = por %p4870_p2, %p4869_p12 }
  0x72   : > { %p4872_p4 = pnand %p4871_p1, %p4865_p11 }
  0x74   : > { %4875 = shalt.err (!%p4872_p4)
}
  0x75   : > { %4680 = dma.hbm_to_vmem [thread:$0]  (!%p5138_p7), %s5145_s5, 384, %s5147_s7, %s193_s28  }
  0x76   : > { %p5480_p0 = scmp.ne.s32.totalorder %s5474_s23, 0 }
  0x77   : > { %s5177_s6 = sand.u32 (!%p5480_p0), 1, %s4942_s16   ;;  %p5481_p9 = scmp.ne.s32.totalorder (!%p5480_p0), %s5472_s21, 0 }
  0x78   : > { %213 = sbr.rel (%p5480_p0) target bundleno = 5133 (0x140d), region = 36  ;;  %s216_s9 = scalar_lea.sflag (!%p5480_p0), [#allocation5], %s5177_s6 }
  0x79   : > { %s4649_s25 = smul.u32 (!%p5480_p0), 24, %s5177_s6 }
  0x7b   : > { %s5183_s10 = scalar_lea.vmem (!%p5480_p0), [#allocation4], %s4649_s25 }
  0x7f   : > { %4921 = dma.done.wait (%p5481_p9), %s216_s9, 384  }
  0x80   : > { %4923 = vsyncadd (%p5481_p9), %s216_s9, 4294966912  ;;  %p5482_p7 = scmp.eq.s32.totalorder %s5011_s19, 0 }
  0x82   : > { %4925 = dma.done.wait (%p5482_p7), [#allocation8], 73728   ;;  %p5483_p8 = pmov %p5482_p7 }
  0x83   : > { %p5484_p13 = pmov %p5482_p7 }
  0x84   : > { %4927 = vsyncadd (%p5483_p8), [#allocation8], 4294893568 }
  0x85   : > { %4929 = dma.done.wait (%p5484_p13), [#allocation11], 48   ;;  %p5485_p6 = pmov %p5482_p7 }
  0x86   : > { %v260_v0 = vld [vmem:[#allocation7 + $0x8] sm:$0xff]  ;;  %v269_v1 = vld [vmem:[#allocation7 + $0x50] sm:$0xff]  ;;  %v262_v2 = vld [vmem:[#allocation7 + $0x18] sm:$0xff]  ;;  %vm4962_vm0 = vmmov 0   ;;  %vm1436_vm1 = vcmask 523264   ;;  %s4963_s21 = smov 64  }
  0x87   : > { %4931 = vsyncadd (%p5485_p6), [#allocation11], 4294967248  ;;  %v4008_v3 = vpack.c.bf16 %v269_v1, %v260_v0  ;;  %v271_v4 = vld [vmem:[#allocation7 + $0x60] sm:$0xff]  ;;  %v268_v6 = vld [vmem:[#allocation7 + $0x48] sm:$0xff]  ;;  %vm1514_vm3 = vcmask 64512   ;;  %s4650_s23 = smul.u32 384, %s5011_s19 }
  0x88   : > { %v259_v5 = vld [vmem:[#allocation7] sm:$0xff]  ;;  %v4104_v7 = vpack.c.bf16 %v271_v4, %v262_v2  ;;  %v261_v9 = vld [vmem:[#allocation7 + $0x10] sm:$0xff]  ;;  %v270_v10 = vld [vmem:[#allocation7 + $0x58] sm:$0xff]  ;;  %s255_s29 = scalar_lea.vmem [#allocation12], %s4649_s25  ;;  %s3512_s19 = scalar_lea.sflag [#allocation6], %s5177_s6 }
  0x89   : > { %v4010_v8 = vpack.c.bf16 %v268_v6, %v259_v5  ;;  %v278_v11 = vld [vmem:[#allocation7 + $0x98] sm:$0xff]  ;;  %4009 = vmatprep.subr.bf16.mxu0 %v4008_v3  ;;  %v4106_v12 = vpack.c.bf16 %v270_v10, %v261_v9  ;;  %v287_v13 = vld [vmem:[#allocation7 + $0xe0] sm:$0xff]  ;;  %v280_v14 = vld [vmem:[#allocation7 + $0xa8] sm:$0xff]  ;;  %s3526_s5 = sshll.u32 %s255_s29, 4  ;;  %s5420_s8 = scalar_lea.hbm %s5468_s4, %s4650_s23  ;;  %s5422_s5 = int_to_ptr.vmem [resolvable:$true] %s3526_s5 }
  0x8a   : > { %v289_v15 = vld [vmem:[#allocation7 + $0xf0] sm:$0xff]  ;;  %4105 = vmatprep.subr.bf16.mxu1 %v4104_v7  ;;  %v4012_v16 = vpack.c.bf16 %v287_v13, %v278_v11  ;;  %v286_v19 = vld [vmem:[#allocation7 + $0xd8] sm:$0xff]  ;;  %v279_v20 = vld [vmem:[#allocation7 + $0xa0] sm:$0xff]  ;;  %s4876_s11 = scalar_lea.vmem %s5422_s5, 384  ;;  %s4964_s24 = smov [#allocation12]  }
  0x8b   : > { %4011 = vmatpush1.bf16.msra.mxu0 %v4010_v8  ;;  %v4108_v17 = vpack.c.bf16 %v289_v15, %v280_v14  ;;  %v277_v18 = vld [vmem:[#allocation7 + $0x90] sm:$0xff]  ;;  %4107 = vmatpush1.bf16.msra.mxu1 %v4106_v12  ;;  %v288_v22 = vld [vmem:[#allocation7 + $0xe8] sm:$0xff]  ;;  %v298_v27 = vld [vmem:[#allocation7 + $0x138] sm:$0xff]  ;;  %p4877_p10 = scmp.ne.s32.totalorder %s5422_s5, %s4876_s11  ;;  %s4880_s13 = sshll.u32 %s4964_s24, 4  ;;  %s4881_s13 = int_to_ptr.vmem [resolvable:$false] %s4880_s13 }
  0x8c   : > { %v4014_v21 = vpack.c.bf16 %v286_v19, %v277_v18  ;;  %v296_v23 = vld [vmem:[#allocation7 + $0x128] sm:$0xff]  ;;  %v305_v24 = vld [vmem:[#allocation7 + $0x170] sm:$0xff]  ;;  %4013 = vmatprep.subr.bf16.mxu0 %v4012_v16  ;;  %v4110_v25 = vpack.c.bf16 %v288_v22, %v279_v20  ;;  %v307_v28 = vld [vmem:[#allocation7 + $0x180] sm:$0xff]  ;;  %s4882_s27 = scalar_lea.vmem %s4881_s13, 768  ;;  %p4883_p12 = scmp.lt.s32.totalorder %s5422_s5, %s4881_s13 }
  0x8d   : > { %4109 = vmatprep.subr.bf16.mxu1 %v4108_v17  ;;  %v4016_v26 = vpack.c.bf16 %v305_v24, %v296_v23  ;;  %v295_v29 = vld [vmem:[#allocation7 + $0x120] sm:$0xff]  ;;  %v4112_v30 = vpack.c.bf16 %v307_v28, %v298_v27  ;;  %v304_v31 = vld [vmem:[#allocation7 + $0x168] sm:$0xff]  ;;  %v297_v32 = vld [vmem:[#allocation7 + $0x130] sm:$0xff]  ;;  %p4878_p3 = pnand %p4877_p10, %p5132_p5  ;;  %p4884_p2 = scmp.lt.s32.totalorder %s4882_s27, %s4876_s11 }
  0x8e   : > { %v306_v33 = vld [vmem:[#allocation7 + $0x178] sm:$0xff]  ;;  %v4018_v34 = vpack.c.bf16 %v304_v31, %v295_v29  ;;  %v323_v36 = vld [vmem:[#allocation7 + $0x200] sm:$0xff]  ;;  %v316_v37 = vld [vmem:[#allocation7 + $0x1c8] sm:$0xff] }
  0x8f   : > { %4015 = vmatpush1.bf16.msra.mxu0 %v4014_v21  ;;  %v314_v35 = vld [vmem:[#allocation7 + $0x1b8] sm:$0xff]  ;;  %4111 = vmatpush1.bf16.msra.mxu1 %v4110_v25  ;;  %v4114_v38 = vpack.c.bf16 %v306_v33, %v297_v32  ;;  %v325_v40 = vld [vmem:[#allocation7 + $0x210] sm:$0xff]  ;;  %v315_v44 = vld [vmem:[#allocation7 + $0x1c0] sm:$0xff]  ;;  %p4879_p11 = pneg %p4878_p3  ;;  %p4885_p1 = por %p4884_p2, %p4883_p12 }
  0x90   : > { %4017 = vmatprep.subr.bf16.mxu0 %v4016_v26  ;;  %v4020_v39 = vpack.c.bf16 %v323_v36, %v314_v35  ;;  %v313_v41 = vld [vmem:[#allocation7 + $0x1b0] sm:$0xff]  ;;  %v322_v42 = vld [vmem:[#allocation7 + $0x1f8] sm:$0xff]  ;;  %4113 = vmatprep.subr.bf16.mxu1 %v4112_v30  ;;  %v4116_v43 = vpack.c.bf16 %v325_v40, %v316_v37  ;;  %v324_v45 = vld [vmem:[#allocation7 + $0x208] sm:$0xff] }
  0x91   : > { %v332_v46 = vld [vmem:[#allocation7 + $0x248] sm:$0xff]  ;;  %v341_v47 = vld [vmem:[#allocation7 + $0x290] sm:$0xff]  ;;  %v334_v48 = vld [vmem:[#allocation7 + $0x258] sm:$0xff]  ;;  %v4022_v50 = vpack.c.bf16 %v322_v42, %v313_v41  ;;  %v4118_v51 = vpack.c.bf16 %v324_v45, %v315_v44  ;;  %p4886_p4 = pnand %p4885_p1, %p4879_p11 }
  0x92   : > { %v343_v49 = vld [vmem:[#allocation7 + $0x2a0] sm:$0xff]  ;;  %v4024_v52 = vpack.c.bf16 %v341_v47, %v332_v46  ;;  %v340_v54 = vld [vmem:[#allocation7 + $0x288] sm:$0xff]  ;;  %v333_v55 = vld [vmem:[#allocation7 + $0x250] sm:$0xff] }
  0x93   : > { %4019 = vmatpush1.bf16.msra.mxu0 %v4018_v34  ;;  %4115 = vmatpush1.bf16.msra.mxu1 %v4114_v38  ;;  %v331_v53 = vld [vmem:[#allocation7 + $0x240] sm:$0xff]  ;;  %v4120_v56 = vpack.c.bf16 %v343_v49, %v334_v48  ;;  %v342_v57 = vld [vmem:[#allocation7 + $0x298] sm:$0xff]  ;;  %v352_v60 = vld [vmem:[#allocation7 + $0x2e8] sm:$0xff] }
  0x94   : > { %4021 = vmatprep.subr.bf16.mxu0 %v4020_v39  ;;  %4117 = vmatprep.subr.bf16.mxu1 %v4116_v43  ;;  %v350_v58 = vld [vmem:[#allocation7 + $0x2d8] sm:$0xff]  ;;  %v359_v59 = vld [vmem:[#allocation7 + $0x320] sm:$0xff]  ;;  %v361_v61 = vld [vmem:[#allocation7 + $0x330] sm:$0xff]  ;;  %v4026_v62 = vpack.c.bf16 %v340_v54, %v331_v53  ;;  %v4122_v63 = vpack.c.bf16 %v342_v57, %v333_v55 }
  0x95   : > { %v4028_v0 = vpack.c.bf16 %v359_v59, %v350_v58  ;;  %v349_v1 = vld [vmem:[#allocation7 + $0x2d0] sm:$0xff]  ;;  %v358_v2 = vld [vmem:[#allocation7 + $0x318] sm:$0xff]  ;;  %v351_v3 = vld [vmem:[#allocation7 + $0x2e0] sm:$0xff]  ;;  %v4124_v4 = vpack.c.bf16 %v361_v61, %v352_v60 }
  0x96   : > { %v360_v5 = vld [vmem:[#allocation7 + $0x328] sm:$0xff]  ;;  %v377_v7 = vld [vmem:[#allocation7 + $0x3b0] sm:$0xff]  ;;  %v370_v8 = vld [vmem:[#allocation7 + $0x378] sm:$0xff]  ;;  %v4030_v10 = vpack.c.bf16 %v358_v2, %v349_v1 }
  0x97   : > { %4023 = vmatpush1.bf16.msra.mxu0 %v4022_v50  ;;  %4119 = vmatpush1.bf16.msra.mxu1 %v4118_v51  ;;  %v368_v6 = vld [vmem:[#allocation7 + $0x368] sm:$0xff]  ;;  %v379_v9 = vld [vmem:[#allocation7 + $0x3c0] sm:$0xff]  ;;  %v4126_v11 = vpack.c.bf16 %v360_v5, %v351_v3  ;;  %v369_v15 = vld [vmem:[#allocation7 + $0x370] sm:$0xff] }
  0x98   : > { %4025 = vmatprep.subr.bf16.mxu0 %v4024_v52  ;;  %4121 = vmatprep.subr.bf16.mxu1 %v4120_v56  ;;  %v4032_v12 = vpack.c.bf16 %v377_v7, %v368_v6  ;;  %v367_v13 = vld [vmem:[#allocation7 + $0x360] sm:$0xff]  ;;  %v376_v14 = vld [vmem:[#allocation7 + $0x3a8] sm:$0xff]  ;;  %v4128_v16 = vpack.c.bf16 %v379_v9, %v370_v8  ;;  %v378_v17 = vld [vmem:[#allocation7 + $0x3b8] sm:$0xff] }
  0x99   : > { %v386_v18 = vld [vmem:[#allocation7 + $0x3f8] sm:$0xff]  ;;  %v395_v19 = vld [vmem:[#allocation7 + $0x440] sm:$0xff]  ;;  %v388_v20 = vld [vmem:[#allocation7 + $0x408] sm:$0xff]  ;;  %v4034_v22 = vpack.c.bf16 %v376_v14, %v367_v13  ;;  %v4130_v23 = vpack.c.bf16 %v378_v17, %v369_v15 }
  0x9a   : > { %v397_v21 = vld [vmem:[#allocation7 + $0x450] sm:$0xff]  ;;  %v4036_v24 = vpack.c.bf16 %v395_v19, %v386_v18  ;;  %v394_v26 = vld [vmem:[#allocation7 + $0x438] sm:$0xff]  ;;  %v387_v27 = vld [vmem:[#allocation7 + $0x400] sm:$0xff] }
  0x9b   : > { %4027 = vmatpush1.bf16.msra.mxu0 %v4026_v62  ;;  %4123 = vmatpush1.bf16.msra.mxu1 %v4122_v63  ;;  %v385_v25 = vld [vmem:[#allocation7 + $0x3f0] sm:$0xff]  ;;  %v4132_v28 = vpack.c.bf16 %v397_v21, %v388_v20  ;;  %v396_v29 = vld [vmem:[#allocation7 + $0x448] sm:$0xff]  ;;  %v406_v32 = vld [vmem:[#allocation7 + $0x498] sm:$0xff] }
  0x9c   : > { %4029 = vmatprep.subr.bf16.mxu0 %v4028_v0  ;;  %4125 = vmatprep.subr.bf16.mxu1 %v4124_v4  ;;  %v404_v30 = vld [vmem:[#allocation7 + $0x488] sm:$0xff]  ;;  %v413_v31 = vld [vmem:[#allocation7 + $0x4d0] sm:$0xff]  ;;  %v415_v33 = vld [vmem:[#allocation7 + $0x4e0] sm:$0xff]  ;;  %v4038_v34 = vpack.c.bf16 %v394_v26, %v385_v25  ;;  %v4134_v35 = vpack.c.bf16 %v396_v29, %v387_v27 }
  0x9d   : > { %v4040_v36 = vpack.c.bf16 %v413_v31, %v404_v30  ;;  %v403_v37 = vld [vmem:[#allocation7 + $0x480] sm:$0xff]  ;;  %v412_v38 = vld [vmem:[#allocation7 + $0x4c8] sm:$0xff]  ;;  %v405_v39 = vld [vmem:[#allocation7 + $0x490] sm:$0xff]  ;;  %v4136_v40 = vpack.c.bf16 %v415_v33, %v406_v32 }
  0x9e   : > { %v414_v41 = vld [vmem:[#allocation7 + $0x4d8] sm:$0xff]  ;;  %v431_v43 = vld [vmem:[#allocation7 + $0x560] sm:$0xff]  ;;  %v424_v44 = vld [vmem:[#allocation7 + $0x528] sm:$0xff]  ;;  %v4042_v46 = vpack.c.bf16 %v412_v38, %v403_v37 }
  0x9f   : > { %4031 = vmatpush1.bf16.msra.mxu0 %v4030_v10  ;;  %4127 = vmatpush1.bf16.msra.mxu1 %v4126_v11  ;;  %v422_v42 = vld [vmem:[#allocation7 + $0x518] sm:$0xff]  ;;  %v433_v45 = vld [vmem:[#allocation7 + $0x570] sm:$0xff]  ;;  %v4138_v47 = vpack.c.bf16 %v414_v41, %v405_v39  ;;  %v423_v51 = vld [vmem:[#allocation7 + $0x520] sm:$0xff] }
  0xa0   : > { %4033 = vmatprep.subr.bf16.mxu0 %v4032_v12  ;;  %4129 = vmatprep.subr.bf16.mxu1 %v4128_v16  ;;  %v4044_v48 = vpack.c.bf16 %v431_v43, %v422_v42  ;;  %v421_v49 = vld [vmem:[#allocation7 + $0x510] sm:$0xff]  ;;  %v430_v50 = vld [vmem:[#allocation7 + $0x558] sm:$0xff]  ;;  %v4140_v52 = vpack.c.bf16 %v433_v45, %v424_v44  ;;  %v432_v53 = vld [vmem:[#allocation7 + $0x568] sm:$0xff] }
  0xa1   : > { %v440_v54 = vld [vmem:[#allocation7 + $0x5a8] sm:$0xff]  ;;  %v449_v55 = vld [vmem:[#allocation7 + $0x5f0] sm:$0xff]  ;;  %v442_v56 = vld [vmem:[#allocation7 + $0x5b8] sm:$0xff]  ;;  %v4046_v58 = vpack.c.bf16 %v430_v50, %v421_v49  ;;  %v4142_v59 = vpack.c.bf16 %v432_v53, %v423_v51 }
  0xa2   : > { %v451_v57 = vld [vmem:[#allocation7 + $0x600] sm:$0xff]  ;;  %v4048_v60 = vpack.c.bf16 %v449_v55, %v440_v54  ;;  %v448_v62 = vld [vmem:[#allocation7 + $0x5e8] sm:$0xff]  ;;  %v441_v63 = vld [vmem:[#allocation7 + $0x5b0] sm:$0xff] }
  0xa3   : > { %4035 = vmatpush1.bf16.msra.mxu0 %v4034_v22  ;;  %4131 = vmatpush1.bf16.msra.mxu1 %v4130_v23  ;;  %v439_v61 = vld [vmem:[#allocation7 + $0x5a0] sm:$0xff]  ;;  %v4144_v0 = vpack.c.bf16 %v451_v57, %v442_v56  ;;  %v450_v1 = vld [vmem:[#allocation7 + $0x5f8] sm:$0xff]  ;;  %v460_v4 = vld [vmem:[#allocation7 + $0x648] sm:$0xff] }
  0xa4   : > { %4037 = vmatprep.subr.bf16.mxu0 %v4036_v24  ;;  %4133 = vmatprep.subr.bf16.mxu1 %v4132_v28  ;;  %v458_v2 = vld [vmem:[#allocation7 + $0x638] sm:$0xff]  ;;  %v467_v3 = vld [vmem:[#allocation7 + $0x680] sm:$0xff]  ;;  %v469_v5 = vld [vmem:[#allocation7 + $0x690] sm:$0xff]  ;;  %v4050_v6 = vpack.c.bf16 %v448_v62, %v439_v61  ;;  %v4146_v8 = vpack.c.bf16 %v450_v1, %v441_v63 }
  0xa5   : > { %v457_v7 = vld [vmem:[#allocation7 + $0x630] sm:$0xff]  ;;  %v4052_v9 = vpack.c.bf16 %v467_v3, %v458_v2  ;;  %v466_v10 = vld [vmem:[#allocation7 + $0x678] sm:$0xff]  ;;  %v459_v11 = vld [vmem:[#allocation7 + $0x640] sm:$0xff]  ;;  %v4148_v13 = vpack.c.bf16 %v469_v5, %v460_v4 }
  0xa6   : > { %v468_v12 = vld [vmem:[#allocation7 + $0x688] sm:$0xff]  ;;  %v485_v15 = vld [vmem:[#allocation7 + $0x710] sm:$0xff]  ;;  %v478_v17 = vld [vmem:[#allocation7 + $0x6d8] sm:$0xff]  ;;  %v4054_v19 = vpack.c.bf16 %v466_v10, %v457_v7 }
  0xa7   : > { %4039 = vmatpush1.bf16.msra.mxu0 %v4038_v34  ;;  %4135 = vmatpush1.bf16.msra.mxu1 %v4134_v35  ;;  %v476_v14 = vld [vmem:[#allocation7 + $0x6c8] sm:$0xff]  ;;  %v5198_v16 = vld [vmem:[%s5183_s10 + $0x8] sm:$0xff]  ;;  %v487_v18 = vld [vmem:[#allocation7 + $0x720] sm:$0xff]  ;;  %v4150_v20 = vpack.c.bf16 %v468_v12, %v459_v11 }
  0xa8   : > { %4041 = vmatprep.subr.bf16.mxu0 %v4040_v36  ;;  %4137 = vmatprep.subr.bf16.mxu1 %v4136_v40  ;;  %v4056_v21 = vpack.c.bf16 %v485_v15, %v476_v14  ;;  %v475_v22 = vld [vmem:[#allocation7 + $0x6c0] sm:$0xff]  ;;  %v484_v23 = vld [vmem:[#allocation7 + $0x708] sm:$0xff]  ;;  %v477_v24 = vld [vmem:[#allocation7 + $0x6d0] sm:$0xff]  ;;  %v4152_v25 = vpack.c.bf16 %v487_v18, %v478_v17 }
  0xa9   : > { %755 = vmatprep.mubr.f32.mxu0 %v5198_v16  ;;  %897 = vmatprep.mubr.f32.mxu1 %v5198_v16  ;;  %v486_v26 = vld [vmem:[#allocation7 + $0x718] sm:$0xff]  ;;  %v503_v28 = vld [vmem:[#allocation7 + $0x7a0] sm:$0xff]  ;;  %v496_v29 = vld [vmem:[#allocation7 + $0x768] sm:$0xff]  ;;  %v4058_v31 = vpack.c.bf16 %v484_v23, %v475_v22 }
  0xaa   : > { %v494_v27 = vld [vmem:[#allocation7 + $0x758] sm:$0xff]  ;;  %v505_v30 = vld [vmem:[#allocation7 + $0x7b0] sm:$0xff]  ;;  %v4154_v32 = vpack.c.bf16 %v486_v26, %v477_v24  ;;  %v495_v36 = vld [vmem:[#allocation7 + $0x760] sm:$0xff] }
  0xab   : > { %4043 = vmatpush1.bf16.msra.mxu0 %v4042_v46  ;;  %4139 = vmatpush1.bf16.msra.mxu1 %v4138_v47  ;;  %v4060_v33 = vpack.c.bf16 %v503_v28, %v494_v27  ;;  %v493_v34 = vld [vmem:[#allocation7 + $0x750] sm:$0xff]  ;;  %v502_v35 = vld [vmem:[#allocation7 + $0x798] sm:$0xff]  ;;  %v4156_v37 = vpack.c.bf16 %v505_v30, %v496_v29  ;;  %v504_v38 = vld [vmem:[#allocation7 + $0x7a8] sm:$0xff] }
  0xac   : > { %4045 = vmatprep.subr.bf16.mxu0 %v4044_v48  ;;  %4141 = vmatprep.subr.bf16.mxu1 %v4140_v52  ;;  %v512_v39 = vld [vmem:[#allocation7 + $0x7e8] sm:$0xff]  ;;  %v521_v40 = vld [vmem:[#allocation7 + $0x830] sm:$0xff]  ;;  %v514_v41 = vld [vmem:[#allocation7 + $0x7f8] sm:$0xff]  ;;  %v4062_v43 = vpack.c.bf16 %v502_v35, %v493_v34  ;;  %v4158_v44 = vpack.c.bf16 %v504_v38, %v495_v36 }
  0xad   : > { %v523_v42 = vld [vmem:[#allocation7 + $0x840] sm:$0xff]  ;;  %v4064_v45 = vpack.c.bf16 %v521_v40, %v512_v39  ;;  %v520_v47 = vld [vmem:[#allocation7 + $0x828] sm:$0xff]  ;;  %v513_v48 = vld [vmem:[#allocation7 + $0x7f0] sm:$0xff]  ;;  %v4960_v39 = vmov 0.0  }
  0xae   : > { %v511_v46 = vld [vmem:[#allocation7 + $0x7e0] sm:$0xff]  ;;  %v4160_v49 = vpack.c.bf16 %v523_v42, %v514_v41  ;;  %v522_v50 = vld [vmem:[#allocation7 + $0x838] sm:$0xff]  ;;  %v532_v53 = vld [vmem:[#allocation7 + $0x888] sm:$0xff] }
  0xaf   : > { %4047 = vmatpush1.bf16.msra.mxu0 %v4046_v58  ;;  %4143 = vmatpush1.bf16.msra.mxu1 %v4142_v59  ;;  %v530_v51 = vld [vmem:[#allocation7 + $0x878] sm:$0xff]  ;;  %v539_v52 = vld [vmem:[#allocation7 + $0x8c0] sm:$0xff]  ;;  %v541_v54 = vld [vmem:[#allocation7 + $0x8d0] sm:$0xff]  ;;  %v4066_v55 = vpack.c.bf16 %v520_v47, %v511_v46  ;;  %v4162_v56 = vpack.c.bf16 %v522_v50, %v513_v48 }
  0xb0   : > { %4049 = vmatprep.subr.bf16.mxu0 %v4048_v60  ;;  %4145 = vmatprep.subr.bf16.mxu1 %v4144_v0  ;;  %v4068_v57 = vpack.c.bf16 %v539_v52, %v530_v51  ;;  %v529_v58 = vld [vmem:[#allocation7 + $0x870] sm:$0xff]  ;;  %v538_v59 = vld [vmem:[#allocation7 + $0x8b8] sm:$0xff]  ;;  %v531_v60 = vld [vmem:[#allocation7 + $0x880] sm:$0xff]  ;;  %v4164_v61 = vpack.c.bf16 %v541_v54, %v532_v53 }
  0xb1   : > { %v540_v62 = vld [vmem:[#allocation7 + $0x8c8] sm:$0xff]  ;;  %v557_v0 = vld [vmem:[#allocation7 + $0x950] sm:$0xff]  ;;  %v550_v1 = vld [vmem:[#allocation7 + $0x918] sm:$0xff]  ;;  %v4070_v3 = vpack.c.bf16 %v538_v59, %v529_v58 }
  0xb2   : > { %v548_v63 = vld [vmem:[#allocation7 + $0x908] sm:$0xff]  ;;  %v559_v2 = vld [vmem:[#allocation7 + $0x960] sm:$0xff]  ;;  %v4166_v4 = vpack.c.bf16 %v540_v62, %v531_v60  ;;  %v558_v10 = vld [vmem:[#allocation7 + $0x958] sm:$0xff] }
  0xb3   : > { %4051 = vmatpush1.bf16.msra.mxu0 %v4050_v6  ;;  %4147 = vmatpush1.bf16.msra.mxu1 %v4146_v8  ;;  %v4072_v5 = vpack.c.bf16 %v557_v0, %v548_v63  ;;  %v547_v6 = vld [vmem:[#allocation7 + $0x900] sm:$0xff]  ;;  %v556_v7 = vld [vmem:[#allocation7 + $0x948] sm:$0xff]  ;;  %v549_v8 = vld [vmem:[#allocation7 + $0x910] sm:$0xff] }
  0xb4   : > { %4053 = vmatprep.subr.bf16.mxu0 %v4052_v9  ;;  %4149 = vmatprep.subr.bf16.mxu1 %v4148_v13  ;;  %v4168_v9 = vpack.c.bf16 %v559_v2, %v550_v1  ;;  %v566_v11 = vld [vmem:[#allocation7 + $0x998] sm:$0xff]  ;;  %v575_v12 = vld [vmem:[#allocation7 + $0x9e0] sm:$0xff]  ;;  %v568_v13 = vld [vmem:[#allocation7 + $0x9a8] sm:$0xff]  ;;  %v4074_v17 = vpack.c.bf16 %v556_v7, %v547_v6  ;;  %v4170_v18 = vpack.c.bf16 %v558_v10, %v549_v8 }
  0xb5   : > { %v577_v14 = vld [vmem:[#allocation7 + $0x9f0] sm:$0xff]  ;;  %v567_v22 = vld [vmem:[#allocation7 + $0x9a0] sm:$0xff]  ;;  %v576_v24 = vld [vmem:[#allocation7 + $0x9e8] sm:$0xff] }
  0xb6   : > { %v5203_v15 = vld [vmem:[%s5183_s10] sm:$0xff]  ;;  %v4172_v23 = vpack.c.bf16 %v577_v14, %v568_v13  ;;  %v586_v27 = vld [vmem:[#allocation7 + $0xa38] sm:$0xff]  ;;  %v595_v28 = vld [vmem:[#allocation7 + $0xa80] sm:$0xff]  ;;  %v4174_v30 = vpack.c.bf16 %v576_v24, %v567_v22 }
  0xb7   : > { %4055 = vmatpush1.bf16.msra.mxu0 %v4054_v19  ;;  %4151 = vmatpush1.bf16.msra.mxu1 %v4150_v20  ;;  %v4076_v19 = vpack.c.bf16 %v575_v12, %v566_v11  ;;  %v565_v20 = vld [vmem:[#allocation7 + $0x990] sm:$0xff]  ;;  %v4176_v35 = vpack.c.bf16 %v595_v28, %v586_v27  ;;  %v594_v36 = vld [vmem:[#allocation7 + $0xa78] sm:$0xff]  ;;  %v611_v38 = vld [vmem:[#allocation7 + $0xb00] sm:$0xff] }
  0xb8   : > { %4057 = vmatprep.subr.bf16.mxu0 %v4056_v21  ;;  %4153 = vmatprep.subr.bf16.mxu1 %v4152_v25  ;;  %v574_v21 = vld [vmem:[#allocation7 + $0x9d8] sm:$0xff]  ;;  %v584_v25 = vld [vmem:[#allocation7 + $0xa28] sm:$0xff]  ;;  %v593_v26 = vld [vmem:[#allocation7 + $0xa70] sm:$0xff] }
  0xb9   : > { %v4078_v29 = vpack.c.bf16 %v574_v21, %v565_v20  ;;  %v585_v34 = vld [vmem:[#allocation7 + $0xa30] sm:$0xff]  ;;  %v604_v40 = vld [vmem:[#allocation7 + $0xac8] sm:$0xff]  ;;  %v610_v46 = vld [vmem:[#allocation7 + $0xaf8] sm:$0xff] }
  0xba   : > { %v613_v41 = vld [vmem:[#allocation7 + $0xb10] sm:$0xff]  ;;  %v603_v47 = vld [vmem:[#allocation7 + $0xac0] sm:$0xff]  ;;  %v620_v50 = vld [vmem:[#allocation7 + $0xb48] sm:$0xff] }
  0xbb   : > { %4059 = vmatpush1.bf16.msra.mxu0 %v4058_v31  ;;  %4155 = vmatpush1.bf16.msra.mxu1 %v4154_v32  ;;  %v4080_v31 = vpack.c.bf16 %v593_v26, %v584_v25  ;;  %v583_v32 = vld [vmem:[#allocation7 + $0xa20] sm:$0xff]  ;;  %v4180_v48 = vpack.c.bf16 %v613_v41, %v604_v40  ;;  %v629_v51 = vld [vmem:[#allocation7 + $0xb90] sm:$0xff]  ;;  %v622_v52 = vld [vmem:[#allocation7 + $0xb58] sm:$0xff] }
  0xbc   : > { %4061 = vmatprep.subr.bf16.mxu0 %v4060_v33  ;;  %4157 = vmatprep.subr.bf16.mxu1 %v4156_v37  ;;  %v592_v33 = vld [vmem:[#allocation7 + $0xa68] sm:$0xff]  ;;  %v602_v37 = vld [vmem:[#allocation7 + $0xab8] sm:$0xff]  ;;  %v631_v53 = vld [vmem:[#allocation7 + $0xba0] sm:$0xff] }
  0xbd   : > { %v4082_v42 = vpack.c.bf16 %v592_v33, %v583_v32  ;;  %v628_v58 = vld [vmem:[#allocation7 + $0xb88] sm:$0xff]  ;;  %v621_v59 = vld [vmem:[#allocation7 + $0xb50] sm:$0xff]  ;;  %v4184_v60 = vpack.c.bf16 %v631_v53, %v622_v52  ;;  %v638_v62 = vld [vmem:[#allocation7 + $0xbd8] sm:$0xff] }
  0xbe   : > { %v647_v63 = vld [vmem:[#allocation7 + $0xc20] sm:$0xff]  ;;  %v640_v0 = vld [vmem:[#allocation7 + $0xbe8] sm:$0xff]  ;;  %v649_v1 = vld [vmem:[#allocation7 + $0xc30] sm:$0xff] }
  0xbf   : > { %4063 = vmatpush1.bf16.msra.mxu0 %v4062_v43  ;;  %4159 = vmatpush1.bf16.msra.mxu1 %v4158_v44  ;;  %v4178_v43 = vpack.c.bf16 %v594_v36, %v585_v34  ;;  %v4084_v44 = vpack.c.bf16 %v611_v38, %v602_v37  ;;  %v646_v6 = vld [vmem:[#allocation7 + $0xc18] sm:$0xff]  ;;  %v639_v7 = vld [vmem:[#allocation7 + $0xbe0] sm:$0xff]  ;;  %v4188_v8 = vpack.c.bf16 %v649_v1, %v640_v0  ;;  %v656_v10 = vld [vmem:[#allocation7 + $0xc68] sm:$0xff] }
  0xc0   : > { %4065 = vmatprep.subr.bf16.mxu0 %v4064_v45  ;;  %4161 = vmatprep.subr.bf16.mxu1 %v4160_v49  ;;  %v601_v45 = vld [vmem:[#allocation7 + $0xab0] sm:$0xff]  ;;  %v612_v49 = vld [vmem:[#allocation7 + $0xb08] sm:$0xff]  ;;  %v658_v12 = vld [vmem:[#allocation7 + $0xc78] sm:$0xff] }
  0xc1   : > { %v4086_v54 = vpack.c.bf16 %v610_v46, %v601_v45  ;;  %v665_v11 = vld [vmem:[#allocation7 + $0xcb0] sm:$0xff]  ;;  %v667_v13 = vld [vmem:[#allocation7 + $0xcc0] sm:$0xff]  ;;  %v664_v20 = vld [vmem:[#allocation7 + $0xca8] sm:$0xff] }
  0xc2   : > { %v657_v21 = vld [vmem:[#allocation7 + $0xc70] sm:$0xff]  ;;  %v4192_v22 = vpack.c.bf16 %v667_v13, %v658_v12  ;;  %v674_v24 = vld [vmem:[#allocation7 + $0xcf8] sm:$0xff]  ;;  %v683_v25 = vld [vmem:[#allocation7 + $0xd40] sm:$0xff] }
  0xc3   : > { %4067 = vmatpush1.bf16.msra.mxu0 %v4066_v55  ;;  %4163 = vmatpush1.bf16.msra.mxu1 %v4162_v56  ;;  %v4182_v55 = vpack.c.bf16 %v612_v49, %v603_v47  ;;  %v4088_v56 = vpack.c.bf16 %v629_v51, %v620_v50  ;;  %v676_v26 = vld [vmem:[#allocation7 + $0xd08] sm:$0xff]  ;;  %v685_v27 = vld [vmem:[#allocation7 + $0xd50] sm:$0xff]  ;;  %v682_v32 = vld [vmem:[#allocation7 + $0xd38] sm:$0xff] }
  0xc4   : > { %4069 = vmatprep.subr.bf16.mxu0 %v4068_v57  ;;  %4165 = vmatprep.subr.bf16.mxu1 %v4164_v61  ;;  %v619_v57 = vld [vmem:[#allocation7 + $0xb40] sm:$0xff]  ;;  %v630_v61 = vld [vmem:[#allocation7 + $0xb98] sm:$0xff]  ;;  %v4196_v34 = vpack.c.bf16 %v685_v27, %v676_v26  ;;  %v264_v36 = vld [vmem:[#allocation7 + $0x28] sm:$0xff] }
  0xc5   : > { %v4090_v2 = vpack.c.bf16 %v628_v58, %v619_v57  ;;  %v675_v33 = vld [vmem:[#allocation7 + $0xd00] sm:$0xff]  ;;  %v273_v37 = vld [vmem:[#allocation7 + $0x70] sm:$0xff]  ;;  %v266_v38 = vld [vmem:[#allocation7 + $0x38] sm:$0xff] }
  0xc6   : > { %v275_v40 = vld [vmem:[#allocation7 + $0x80] sm:$0xff]  ;;  %v272_v45 = vld [vmem:[#allocation7 + $0x68] sm:$0xff]  ;;  %v282_v46 = vld [vmem:[#allocation7 + $0xb8] sm:$0xff] }
  0xc7   : > { %4071 = vmatpush1.bf16.msra.mxu0 %v4070_v3  ;;  %4167 = vmatpush1.bf16.msra.mxu1 %v4166_v4  ;;  %v4186_v3 = vpack.c.bf16 %v630_v61, %v621_v59  ;;  %v4092_v4 = vpack.c.bf16 %v647_v63, %v638_v62  ;;  %v291_v47 = vld [vmem:[#allocation7 + $0x100] sm:$0xff]  ;;  %v265_v49 = vld [vmem:[#allocation7 + $0x30] sm:$0xff]  ;;  %v274_v50 = vld [vmem:[#allocation7 + $0x78] sm:$0xff] }
  0xc8   : > { %4073 = vmatprep.subr.bf16.mxu0 %v4072_v5  ;;  %4169 = vmatprep.subr.bf16.mxu1 %v4168_v9  ;;  %v637_v5 = vld [vmem:[#allocation7 + $0xbd0] sm:$0xff]  ;;  %v648_v9 = vld [vmem:[#allocation7 + $0xc28] sm:$0xff]  ;;  %v5210_v53 = vld [vmem:[%s5183_s10 + $0x10] sm:$0xff]  ;;  %v4298_v59 = vpack.c.bf16 %v274_v50, %v265_v49 }
  0xc9   : > { %v4094_v14 = vpack.c.bf16 %v646_v6, %v637_v5  ;;  %v284_v51 = vld [vmem:[#allocation7 + $0xc8] sm:$0xff]  ;;  %v293_v52 = vld [vmem:[#allocation7 + $0x110] sm:$0xff]  ;;  %v290_v57 = vld [vmem:[#allocation7 + $0xf8] sm:$0xff] }
  0xca   : > { %756 = vmatmul.mubr.f32.vlgmr.msra.gmra.mrb[0].mxu0 %v5203_v15  ;;  %898 = vmatmul.mubr.f32.vlgmr.msra.gmra.mrb[0].mxu1 %v5203_v15  ;;  %v300_v58 = vld [vmem:[#allocation7 + $0x148] sm:$0xff]  ;;  %v4300_v61 = vpack.c.bf16 %v293_v52, %v284_v51  ;;  %v283_v62 = vld [vmem:[#allocation7 + $0xc0] sm:$0xff]  ;;  %v302_v0 = vld [vmem:[#allocation7 + $0x158] sm:$0xff] }
  0xcb   : > { %4075 = vmatpush1.bf16.msra.mxu0 %v4074_v17  ;;  %4171 = vmatpush1.bf16.msra.mxu1 %v4170_v18  ;;  %v4190_v17 = vpack.c.bf16 %v648_v9, %v639_v7  ;;  %v4096_v18 = vpack.c.bf16 %v665_v11, %v656_v10  ;;  %v292_v63 = vld [vmem:[#allocation7 + $0x108] sm:$0xff]  ;;  %v311_v1 = vld [vmem:[#allocation7 + $0x1a0] sm:$0xff]  ;;  %v318_v6 = vld [vmem:[#allocation7 + $0x1d8] sm:$0xff] }
  0xcc   : > { %4077 = vmatprep.subr.bf16.mxu0 %v4076_v19  ;;  %4173 = vmatprep.subr.bf16.mxu1 %v4172_v23  ;;  %v655_v19 = vld [vmem:[#allocation7 + $0xc60] sm:$0xff]  ;;  %v666_v23 = vld [vmem:[#allocation7 + $0xcb8] sm:$0xff]  ;;  %v308_v5 = vld [vmem:[#allocation7 + $0x188] sm:$0xff]  ;;  %v4302_v7 = vpack.c.bf16 %v292_v63, %v283_v62  ;;  %v4304_v9 = vpack.c.bf16 %v311_v1, %v302_v0 }
  0xcd   : > { %826 = vmatprep.mubr.f32.mxu0 %v4960_v39  ;;  %968 = vmatprep.mubr.f32.mxu1 %v4960_v39  ;;  %v4098_v28 = vpack.c.bf16 %v664_v20, %v655_v19  ;;  %v301_v10 = vld [vmem:[#allocation7 + $0x150] sm:$0xff]  ;;  %v310_v11 = vld [vmem:[#allocation7 + $0x198] sm:$0xff]  ;;  %v320_v12 = vld [vmem:[#allocation7 + $0x1e8] sm:$0xff] }
  0xce   : > { %v329_v13 = vld [vmem:[#allocation7 + $0x230] sm:$0xff]  ;;  %v326_v19 = vld [vmem:[#allocation7 + $0x218] sm:$0xff]  ;;  %v336_v20 = vld [vmem:[#allocation7 + $0x268] sm:$0xff] }
  0xcf   : > { %4079 = vmatpush1.bf16.msra.mxu0 %v4078_v29  ;;  %4175 = vmatpush1.bf16.msra.mxu1 %v4174_v30  ;;  %v4194_v29 = vpack.c.bf16 %v666_v23, %v657_v21  ;;  %v4100_v30 = vpack.c.bf16 %v683_v25, %v674_v24  ;;  %v4306_v21 = vpack.c.bf16 %v310_v11, %v301_v10  ;;  %v319_v24 = vld [vmem:[#allocation7 + $0x1e0] sm:$0xff]  ;;  %v328_v25 = vld [vmem:[#allocation7 + $0x228] sm:$0xff]  ;;  %v338_v26 = vld [vmem:[#allocation7 + $0x278] sm:$0xff] }
  0xd0   : > { %4081 = vmatprep.subr.bf16.mxu0 %v4080_v31  ;;  %4177 = vmatprep.subr.bf16.mxu1 %v4176_v35  ;;  %v673_v31 = vld [vmem:[#allocation7 + $0xcf0] sm:$0xff]  ;;  %v684_v35 = vld [vmem:[#allocation7 + $0xd48] sm:$0xff]  ;;  %v4308_v23 = vpack.c.bf16 %v329_v13, %v320_v12  ;;  %v347_v27 = vld [vmem:[#allocation7 + $0x2c0] sm:$0xff] }
  0xd1   : > { %v4102_v41 = vpack.c.bf16 %v682_v32, %v673_v31  ;;  %v354_v31 = vld [vmem:[#allocation7 + $0x2f8] sm:$0xff]  ;;  %v4310_v32 = vpack.c.bf16 %v328_v25, %v319_v24  ;;  %v364_v49 = vld [vmem:[#allocation7 + $0x348] sm:$0xff]  ;;  %v383_v51 = vld [vmem:[#allocation7 + $0x3e0] sm:$0xff] }
  0xd2   : > { %v374_v50 = vld [vmem:[#allocation7 + $0x398] sm:$0xff]  ;;  %v392_v63 = vld [vmem:[#allocation7 + $0x428] sm:$0xff]  ;;  %v401_v0 = vld [vmem:[#allocation7 + $0x470] sm:$0xff] }
  0xd3   : > { %4083 = vmatpush1.bf16.msra.mxu0 %v4082_v42  ;;  %4179 = vmatpush1.bf16.msra.mxu1 %v4178_v43  ;;  %v4198_v42 = vpack.c.bf16 %v684_v35, %v675_v33  ;;  %v4200_v43 = vpack.c.bf16 %v273_v37, %v264_v36  ;;  %v363_v33 = vld [vmem:[#allocation7 + $0x340] sm:$0xff]  ;;  %v337_v35 = vld [vmem:[#allocation7 + $0x270] sm:$0xff]  ;;  %v346_v36 = vld [vmem:[#allocation7 + $0x2b8] sm:$0xff] }
  0xd4   : > { %4085 = vmatprep.subr.bf16.mxu0 %v4084_v44  ;;  %4181 = vmatprep.subr.bf16.mxu1 %v4180_v48  ;;  %v263_v44 = vld [vmem:[#allocation7 + $0x20] sm:$0xff]  ;;  %v4296_v48 = vpack.c.bf16 %v275_v40, %v266_v38  ;;  %v356_v37 = vld [vmem:[#allocation7 + $0x308] sm:$0xff]  ;;  %v365_v38 = vld [vmem:[#allocation7 + $0x350] sm:$0xff] }
  0xd5   : > { %v382_v62 = vld [vmem:[#allocation7 + $0x3d8] sm:$0xff]  ;;  %v400_v10 = vld [vmem:[#allocation7 + $0x468] sm:$0xff]  ;;  %v419_v12 = vld [vmem:[#allocation7 + $0x500] sm:$0xff] }
  0xd6   : > { %v410_v11 = vld [vmem:[#allocation7 + $0x4b8] sm:$0xff]  ;;  %v428_v25 = vld [vmem:[#allocation7 + $0x548] sm:$0xff] }
  0xd7   : > { %4087 = vmatpush1.bf16.msra.mxu0 %v4086_v54  ;;  %4183 = vmatpush1.bf16.msra.mxu1 %v4182_v55  ;;  %v4202_v54 = vpack.c.bf16 %v272_v45, %v263_v44  ;;  %v4204_v55 = vpack.c.bf16 %v291_v47, %v282_v46  ;;  %v372_v44 = vld [vmem:[#allocation7 + $0x388] sm:$0xff]  ;;  %v4314_v45 = vpack.c.bf16 %v346_v36, %v337_v35  ;;  %v381_v46 = vld [vmem:[#allocation7 + $0x3d0] sm:$0xff]  ;;  %v418_v24 = vld [vmem:[#allocation7 + $0x4f8] sm:$0xff] }
  0xd8   : > { %4089 = vmatprep.subr.bf16.mxu0 %v4088_v56  ;;  %4185 = vmatprep.subr.bf16.mxu1 %v4184_v60  ;;  %v281_v56 = vld [vmem:[#allocation7 + $0xb0] sm:$0xff]  ;;  %v4316_v47 = vpack.c.bf16 %v365_v38, %v356_v37  ;;  %v436_v35 = vld [vmem:[#allocation7 + $0x588] sm:$0xff]  ;;  %v446_v36 = vld [vmem:[#allocation7 + $0x5d8] sm:$0xff] }
  0xd9   : > { %v309_v60 = vld [vmem:[#allocation7 + $0x190] sm:$0xff]  ;;  %v455_v37 = vld [vmem:[#allocation7 + $0x620] sm:$0xff] }
  0xdb   : > { %4091 = vmatpush1.bf16.msra.mxu0 %v4090_v2  ;;  %4187 = vmatpush1.bf16.msra.mxu1 %v4186_v3  ;;  %v4206_v2 = vpack.c.bf16 %v290_v57, %v281_v56  ;;  %v4208_v3 = vpack.c.bf16 %v309_v60, %v300_v58  ;;  %v380_v56 = vld [vmem:[#allocation7 + $0x3c8] sm:$0xff]  ;;  %v390_v57 = vld [vmem:[#allocation7 + $0x418] sm:$0xff]  ;;  %v4320_v60 = vpack.c.bf16 %v383_v51, %v374_v50  ;;  %v473_v50 = vld [vmem:[#allocation7 + $0x6b0] sm:$0xff] }
  0xdc   : > { %4093 = vmatprep.subr.bf16.mxu0 %v4092_v4  ;;  %4189 = vmatprep.subr.bf16.mxu1 %v4188_v8  ;;  %v299_v4 = vld [vmem:[#allocation7 + $0x140] sm:$0xff] }
  0xdd   : > { %v327_v8 = vld [vmem:[#allocation7 + $0x220] sm:$0xff] }
  0xdf   : > { %4095 = vmatpush1.bf16.msra.mxu0 %v4094_v14  ;;  %4191 = vmatpush1.bf16.msra.mxu1 %v4190_v17  ;;  %v4210_v14 = vpack.c.bf16 %v308_v5, %v299_v4  ;;  %v4212_v17 = vpack.c.bf16 %v327_v8, %v318_v6  ;;  %v398_v4 = vld [vmem:[#allocation7 + $0x458] sm:$0xff]  ;;  %v408_v5 = vld [vmem:[#allocation7 + $0x4a8] sm:$0xff]  ;;  %v4324_v8 = vpack.c.bf16 %v401_v0, %v392_v63  ;;  %v491_v63 = vld [vmem:[#allocation7 + $0x740] sm:$0xff] }
  0xe0   : > { %4097 = vmatprep.subr.bf16.mxu0 %v4096_v18  ;;  %4193 = vmatprep.subr.bf16.mxu1 %v4192_v22  ;;  %v317_v18 = vld [vmem:[#allocation7 + $0x1d0] sm:$0xff] }
  0xe1   : > { %v345_v22 = vld [vmem:[#allocation7 + $0x2b0] sm:$0xff] }
  0xe3   : > { %4099 = vmatpush1.bf16.msra.mxu0 %v4098_v28  ;;  %4195 = vmatpush1.bf16.msra.mxu1 %v4194_v29  ;;  %v4214_v28 = vpack.c.bf16 %v326_v19, %v317_v18  ;;  %v335_v29 = vld [vmem:[#allocation7 + $0x260] sm:$0xff]  ;;  %v416_v18 = vld [vmem:[#allocation7 + $0x4e8] sm:$0xff]  ;;  %v426_v19 = vld [vmem:[#allocation7 + $0x538] sm:$0xff] }
  0xe4   : > { %4101 = vmatprep.subr.bf16.mxu0 %v4100_v30  ;;  %4197 = vmatprep.subr.bf16.mxu1 %v4196_v34  ;;  %v344_v30 = vld [vmem:[#allocation7 + $0x2a8] sm:$0xff]  ;;  %v4312_v34 = vpack.c.bf16 %v347_v27, %v338_v26  ;;  %v437_v26 = vld [vmem:[#allocation7 + $0x590] sm:$0xff] }
  0xe5   : > { %v4218_v40 = vpack.c.bf16 %v344_v30, %v335_v29  ;;  %v434_v29 = vld [vmem:[#allocation7 + $0x578] sm:$0xff]  ;;  %v444_v30 = vld [vmem:[#allocation7 + $0x5c8] sm:$0xff] }
  0xe7   : > { %4103 = vmatpush1.bf16.msra.mxu0 %v4102_v41  ;;  %4199 = vmatpush1.bf16.msra.mxu1 %v4198_v42  ;;  %v4220_v41 = vpack.c.bf16 %v363_v33, %v354_v31  ;;  %v353_v42 = vld [vmem:[#allocation7 + $0x2f0] sm:$0xff]  ;;  %v4332_v33 = vpack.c.bf16 %v437_v26, %v428_v25  ;;  %v527_v25 = vld [vmem:[#allocation7 + $0x860] sm:$0xff] }
  0xe8   : > { %4201 = vmatprep.subr.bf16.mxu0 %v4200_v43  ;;  %4297 = vmatprep.subr.bf16.mxu1 %v4296_v48  ;;  %v362_v43 = vld [vmem:[#allocation7 + $0x338] sm:$0xff]  ;;  %v355_v48 = vld [vmem:[#allocation7 + $0x300] sm:$0xff] }
  0xe9   : > { %v4222_v52 = vpack.c.bf16 %v362_v43, %v353_v42  ;;  %v4318_v58 = vpack.c.bf16 %v364_v49, %v355_v48  ;;  %v452_v42 = vld [vmem:[#allocation7 + $0x608] sm:$0xff]  ;;  %v462_v43 = vld [vmem:[#allocation7 + $0x658] sm:$0xff] }
  0xea   : > { %827 = vmatmul.mubr.f32.vlgmr.msra.gmra.mrb[0].mxu0 %v5210_v53  ;;  %969 = vmatmul.mubr.f32.vlgmr.msra.gmra.mrb[0].mxu1 %v5210_v53  ;;  %v454_v48 = vld [vmem:[#allocation7 + $0x618] sm:$0xff]  ;;  %v464_v49 = vld [vmem:[#allocation7 + $0x668] sm:$0xff] }
  0xeb   : > { %4203 = vmatpush1.bf16.msra.mxu0 %v4202_v54  ;;  %4299 = vmatpush1.bf16.msra.mxu1 %v4298_v59  ;;  %v4224_v54 = vpack.c.bf16 %v381_v46, %v372_v44  ;;  %v399_v59 = vld [vmem:[#allocation7 + $0x460] sm:$0xff]  ;;  %v4336_v46 = vpack.c.bf16 %v455_v37, %v446_v36  ;;  %v545_v36 = vld [vmem:[#allocation7 + $0x8f0] sm:$0xff] }
  0xec   : > { %4205 = vmatprep.subr.bf16.mxu0 %v4204_v55  ;;  %4301 = vmatprep.subr.bf16.mxu1 %v4300_v61  ;;  %v371_v55 = vld [vmem:[#allocation7 + $0x380] sm:$0xff]  ;;  %v373_v61 = vld [vmem:[#allocation7 + $0x390] sm:$0xff] }
  0xed   : > { %1039 = vmatprep.mubr.f32.mxu0 %v5198_v16  ;;  %1181 = vmatprep.mubr.f32.mxu1 %v5198_v16  ;;  %v4216_v16 = vpack.c.bf16 %v345_v22, %v336_v20  ;;  %v4226_v1 = vpack.c.bf16 %v380_v56, %v371_v55  ;;  %v4322_v6 = vpack.c.bf16 %v382_v62, %v373_v61  ;;  %v470_v55 = vld [vmem:[#allocation7 + $0x698] sm:$0xff]  ;;  %v480_v56 = vld [vmem:[#allocation7 + $0x6e8] sm:$0xff] }
  0xee   : > { %v4328_v22 = vpack.c.bf16 %v419_v12, %v410_v11  ;;  %v472_v61 = vld [vmem:[#allocation7 + $0x6a8] sm:$0xff]  ;;  %v482_v62 = vld [vmem:[#allocation7 + $0x6f8] sm:$0xff]  ;;  %v509_v11 = vld [vmem:[#allocation7 + $0x7d0] sm:$0xff] }
  0xef   : > { %4207 = vmatpush1.bf16.msra.mxu0 %v4206_v2  ;;  %4303 = vmatpush1.bf16.msra.mxu1 %v4302_v7  ;;  %v4228_v2 = vpack.c.bf16 %v399_v59, %v390_v57  ;;  %v417_v7 = vld [vmem:[#allocation7 + $0x4f0] sm:$0xff]  ;;  %v4340_v59 = vpack.c.bf16 %v473_v50, %v464_v49  ;;  %v563_v49 = vld [vmem:[#allocation7 + $0x980] sm:$0xff] }
  0xf0   : > { %4209 = vmatprep.subr.bf16.mxu0 %v4208_v3  ;;  %4305 = vmatprep.subr.bf16.mxu1 %v4304_v9  ;;  %v389_v3 = vld [vmem:[#allocation7 + $0x410] sm:$0xff]  ;;  %v391_v9 = vld [vmem:[#allocation7 + $0x420] sm:$0xff] }
  0xf1   : > { %v4230_v13 = vpack.c.bf16 %v398_v4, %v389_v3  ;;  %v4326_v20 = vpack.c.bf16 %v400_v10, %v391_v9  ;;  %v488_v3 = vld [vmem:[#allocation7 + $0x728] sm:$0xff]  ;;  %v498_v4 = vld [vmem:[#allocation7 + $0x778] sm:$0xff] }
  0xf2   : > { %v490_v9 = vld [vmem:[#allocation7 + $0x738] sm:$0xff]  ;;  %v500_v10 = vld [vmem:[#allocation7 + $0x788] sm:$0xff] }
  0xf3   : > { %4211 = vmatpush1.bf16.msra.mxu0 %v4210_v14  ;;  %4307 = vmatpush1.bf16.msra.mxu1 %v4306_v21  ;;  %v4232_v14 = vpack.c.bf16 %v417_v7, %v408_v5  ;;  %v435_v21 = vld [vmem:[#allocation7 + $0x580] sm:$0xff]  ;;  %v4344_v7 = vpack.c.bf16 %v491_v63, %v482_v62  ;;  %v572_v62 = vld [vmem:[#allocation7 + $0x9c8] sm:$0xff]  ;;  %v581_v63 = vld [vmem:[#allocation7 + $0xa10] sm:$0xff] }
  0xf4   : > { %4213 = vmatprep.subr.bf16.mxu0 %v4212_v17  ;;  %4309 = vmatprep.subr.bf16.mxu1 %v4308_v23  ;;  %v407_v17 = vld [vmem:[#allocation7 + $0x4a0] sm:$0xff]  ;;  %v409_v23 = vld [vmem:[#allocation7 + $0x4b0] sm:$0xff] }
  0xf5   : > { %v4234_v27 = vpack.c.bf16 %v416_v18, %v407_v17  ;;  %v4330_v31 = vpack.c.bf16 %v418_v24, %v409_v23  ;;  %v506_v17 = vld [vmem:[#allocation7 + $0x7b8] sm:$0xff]  ;;  %v516_v18 = vld [vmem:[#allocation7 + $0x808] sm:$0xff] }
  0xf6   : > { %v508_v23 = vld [vmem:[#allocation7 + $0x7c8] sm:$0xff]  ;;  %v518_v24 = vld [vmem:[#allocation7 + $0x818] sm:$0xff] }
  0xf7   : > { %4215 = vmatpush1.bf16.msra.mxu0 %v4214_v28  ;;  %4311 = vmatpush1.bf16.msra.mxu1 %v4310_v32  ;;  %v4236_v28 = vpack.c.bf16 %v435_v21, %v426_v19  ;;  %v453_v32 = vld [vmem:[#allocation7 + $0x610] sm:$0xff]  ;;  %v4348_v21 = vpack.c.bf16 %v509_v11, %v500_v10  ;;  %v590_v10 = vld [vmem:[#allocation7 + $0xa58] sm:$0xff]  ;;  %v599_v11 = vld [vmem:[#allocation7 + $0xaa0] sm:$0xff] }
  0xf8   : > { %4217 = vmatprep.subr.bf16.mxu0 %v4216_v16  ;;  %4313 = vmatprep.subr.bf16.mxu1 %v4312_v34  ;;  %v425_v16 = vld [vmem:[#allocation7 + $0x530] sm:$0xff]  ;;  %v427_v34 = vld [vmem:[#allocation7 + $0x540] sm:$0xff] }
  0xf9   : > { %v4238_v38 = vpack.c.bf16 %v434_v29, %v425_v16  ;;  %v4334_v44 = vpack.c.bf16 %v436_v35, %v427_v34  ;;  %v524_v16 = vld [vmem:[#allocation7 + $0x848] sm:$0xff]  ;;  %v534_v29 = vld [vmem:[#allocation7 + $0x898] sm:$0xff] }
  0xfa   : > { %v526_v34 = vld [vmem:[#allocation7 + $0x858] sm:$0xff]  ;;  %v536_v35 = vld [vmem:[#allocation7 + $0x8a8] sm:$0xff] }
  0xfb   : > { %4219 = vmatpush1.bf16.msra.mxu0 %v4218_v40  ;;  %4315 = vmatpush1.bf16.msra.mxu1 %v4314_v45  ;;  %v4240_v40 = vpack.c.bf16 %v453_v32, %v444_v30  ;;  %v471_v45 = vld [vmem:[#allocation7 + $0x6a0] sm:$0xff]  ;;  %v4352_v32 = vpack.c.bf16 %v527_v25, %v518_v24  ;;  %v608_v24 = vld [vmem:[#allocation7 + $0xae8] sm:$0xff]  ;;  %v617_v25 = vld [vmem:[#allocation7 + $0xb30] sm:$0xff] }
  0xfc   : > { %4221 = vmatprep.subr.bf16.mxu0 %v4220_v41  ;;  %4317 = vmatprep.subr.bf16.mxu1 %v4316_v47  ;;  %v443_v41 = vld [vmem:[#allocation7 + $0x5c0] sm:$0xff]  ;;  %v445_v47 = vld [vmem:[#allocation7 + $0x5d0] sm:$0xff] }
  0xfd   : > { %v4242_v51 = vpack.c.bf16 %v452_v42, %v443_v41  ;;  %v4338_v57 = vpack.c.bf16 %v454_v48, %v445_v47  ;;  %v542_v41 = vld [vmem:[#allocation7 + $0x8d8] sm:$0xff]  ;;  %v552_v42 = vld [vmem:[#allocation7 + $0x928] sm:$0xff] }
  0xfe   : > { %v544_v47 = vld [vmem:[#allocation7 + $0x8e8] sm:$0xff]  ;;  %v554_v48 = vld [vmem:[#allocation7 + $0x938] sm:$0xff] }
  0xff   : > { %4223 = vmatpush1.bf16.msra.mxu0 %v4222_v52  ;;  %4319 = vmatpush1.bf16.msra.mxu1 %v4318_v58  ;;  %v4244_v52 = vpack.c.bf16 %v471_v45, %v462_v43  ;;  %v489_v58 = vld [vmem:[#allocation7 + $0x730] sm:$0xff]  ;;  %v4356_v45 = vpack.c.bf16 %v545_v36, %v536_v35  ;;  %v635_v35 = vld [vmem:[#allocation7 + $0xbc0] sm:$0xff] }
 0x100   : > { %4225 = vmatprep.subr.bf16.mxu0 %v4224_v54  ;;  %4321 = vmatprep.subr.bf16.mxu1 %v4320_v60  ;;  %v461_v54 = vld [vmem:[#allocation7 + $0x650] sm:$0xff]  ;;  %v463_v60 = vld [vmem:[#allocation7 + $0x660] sm:$0xff] }
 0x101   : > { %v4246_v0 = vpack.c.bf16 %v470_v55, %v461_v54  ;;  %v4342_v5 = vpack.c.bf16 %v472_v61, %v463_v60  ;;  %v560_v54 = vld [vmem:[#allocation7 + $0x968] sm:$0xff]  ;;  %v562_v60 = vld [vmem:[#allocation7 + $0x978] sm:$0xff] }
 0x103   : > { %4227 = vmatpush1.bf16.msra.mxu0 %v4226_v1  ;;  %4323 = vmatpush1.bf16.msra.mxu1 %v4322_v6  ;;  %v4248_v1 = vpack.c.bf16 %v489_v58, %v480_v56  ;;  %v507_v6 = vld [vmem:[#allocation7 + $0x7c0] sm:$0xff]  ;;  %v570_v56 = vld [vmem:[#allocation7 + $0x9b8] sm:$0xff]  ;;  %v4360_v58 = vpack.c.bf16 %v563_v49, %v554_v48  ;;  %v653_v48 = vld [vmem:[#allocation7 + $0xc50] sm:$0xff] }
 0x104   : > { %4229 = vmatprep.subr.bf16.mxu0 %v4228_v2  ;;  %4325 = vmatprep.subr.bf16.mxu1 %v4324_v8  ;;  %v479_v2 = vld [vmem:[#allocation7 + $0x6e0] sm:$0xff]  ;;  %v481_v8 = vld [vmem:[#allocation7 + $0x6f0] sm:$0xff] }
 0x105   : > { %v4250_v12 = vpack.c.bf16 %v488_v3, %v479_v2  ;;  %v4346_v19 = vpack.c.bf16 %v490_v9, %v481_v8  ;;  %v578_v2 = vld [vmem:[#allocation7 + $0x9f8] sm:$0xff]  ;;  %v588_v3 = vld [vmem:[#allocation7 + $0xa48] sm:$0xff] }
 0x106   : > { %v580_v8 = vld [vmem:[#allocation7 + $0xa08] sm:$0xff] }
 0x107   : > { %4231 = vmatpush1.bf16.msra.mxu0 %v4230_v13  ;;  %4327 = vmatpush1.bf16.msra.mxu1 %v4326_v20  ;;  %v4252_v13 = vpack.c.bf16 %v507_v6, %v498_v4  ;;  %v525_v20 = vld [vmem:[#allocation7 + $0x850] sm:$0xff]  ;;  %v4364_v6 = vpack.c.bf16 %v581_v63, %v572_v62  ;;  %v659_v63 = vld [vmem:[#allocation7 + $0xc80] sm:$0xff] }
 0x108   : > { %4233 = vmatprep.subr.bf16.mxu0 %v4232_v14  ;;  %4329 = vmatprep.subr.bf16.mxu1 %v4328_v22  ;;  %v497_v14 = vld [vmem:[#allocation7 + $0x770] sm:$0xff]  ;;  %v499_v22 = vld [vmem:[#allocation7 + $0x780] sm:$0xff] }
 0x109   : > { %v4254_v26 = vpack.c.bf16 %v506_v17, %v497_v14  ;;  %v4350_v30 = vpack.c.bf16 %v508_v23, %v499_v22  ;;  %v597_v4 = vld [vmem:[#allocation7 + $0xa90] sm:$0xff]  ;;  %v596_v14 = vld [vmem:[#allocation7 + $0xa88] sm:$0xff]  ;;  %v606_v17 = vld [vmem:[#allocation7 + $0xad8] sm:$0xff] }
 0x10a   : > { %v598_v22 = vld [vmem:[#allocation7 + $0xa98] sm:$0xff] }
 0x10b   : > { %4235 = vmatpush1.bf16.msra.mxu0 %v4234_v27  ;;  %4331 = vmatpush1.bf16.msra.mxu1 %v4330_v31  ;;  %v4256_v27 = vpack.c.bf16 %v525_v20, %v516_v18  ;;  %v543_v31 = vld [vmem:[#allocation7 + $0x8e0] sm:$0xff]  ;;  %v4368_v20 = vpack.c.bf16 %v599_v11, %v590_v10  ;;  %v677_v11 = vld [vmem:[#allocation7 + $0xd10] sm:$0xff] }
 0x10c   : > { %4237 = vmatprep.subr.bf16.mxu0 %v4236_v28  ;;  %4333 = vmatprep.subr.bf16.mxu1 %v4332_v33  ;;  %v515_v28 = vld [vmem:[#allocation7 + $0x800] sm:$0xff]  ;;  %v517_v33 = vld [vmem:[#allocation7 + $0x810] sm:$0xff] }
 0x10d   : > { %v4258_v37 = vpack.c.bf16 %v524_v16, %v515_v28  ;;  %v4354_v43 = vpack.c.bf16 %v526_v34, %v517_v33  ;;  %v615_v18 = vld [vmem:[#allocation7 + $0xb20] sm:$0xff]  ;;  %v614_v28 = vld [vmem:[#allocation7 + $0xb18] sm:$0xff]  ;;  %v624_v16 = vld [vmem:[#allocation7 + $0xb68] sm:$0xff] }
 0x10e   : > { %v626_v34 = vld [vmem:[#allocation7 + $0xb78] sm:$0xff] }
 0x10f   : > { %4239 = vmatpush1.bf16.msra.mxu0 %v4238_v38  ;;  %4335 = vmatpush1.bf16.msra.mxu1 %v4334_v44  ;;  %v4260_v38 = vpack.c.bf16 %v543_v31, %v534_v29  ;;  %v561_v44 = vld [vmem:[#allocation7 + $0x970] sm:$0xff]  ;;  %v607_v31 = vld [vmem:[#allocation7 + $0xae0] sm:$0xff] }
 0x110   : > { %4241 = vmatprep.subr.bf16.mxu0 %v4240_v40  ;;  %4337 = vmatprep.subr.bf16.mxu1 %v4336_v46  ;;  %v533_v40 = vld [vmem:[#allocation7 + $0x890] sm:$0xff]  ;;  %v535_v46 = vld [vmem:[#allocation7 + $0x8a0] sm:$0xff] }
 0x111   : > { %v4262_v50 = vpack.c.bf16 %v542_v41, %v533_v40  ;;  %v4358_v55 = vpack.c.bf16 %v544_v47, %v535_v46  ;;  %v642_v40 = vld [vmem:[#allocation7 + $0xbf8] sm:$0xff]  ;;  %v651_v41 = vld [vmem:[#allocation7 + $0xc40] sm:$0xff]  ;;  %v644_v47 = vld [vmem:[#allocation7 + $0xc08] sm:$0xff] }
 0x112   : > { %v4284_v49 = vpack.c.bf16 %v651_v41, %v642_v40  ;;  %v4760_v40 = vld [vmem:[%s5183_s10 + $0x8] sm:$0xff] }
 0x113   : > { %4243 = vmatpush1.bf16.msra.mxu0 %v4242_v51  ;;  %4339 = vmatpush1.bf16.msra.mxu1 %v4338_v57  ;;  %v4264_v51 = vpack.c.bf16 %v561_v44, %v552_v42  ;;  %v579_v57 = vld [vmem:[#allocation7 + $0xa00] sm:$0xff]  ;;  %v625_v44 = vld [vmem:[#allocation7 + $0xb70] sm:$0xff] }
 0x114   : > { %4245 = vmatprep.subr.bf16.mxu0 %v4244_v52  ;;  %4341 = vmatprep.subr.bf16.mxu1 %v4340_v59  ;;  %v551_v52 = vld [vmem:[#allocation7 + $0x920] sm:$0xff]  ;;  %v553_v59 = vld [vmem:[#allocation7 + $0x930] sm:$0xff] }
 0x115   : > { %v4266_v61 = vpack.c.bf16 %v560_v54, %v551_v52  ;;  %v660_v52 = vld [vmem:[#allocation7 + $0xc88] sm:$0xff]  ;;  %v669_v54 = vld [vmem:[#allocation7 + $0xcd0] sm:$0xff] }
 0x116   : > { %v4288_v62 = vpack.c.bf16 %v669_v54, %v660_v52  ;;  %v330_v52 = vld [vmem:[#allocation7 + $0x238] sm:$0xff]  ;;  %v483_v54 = vld [vmem:[#allocation7 + $0x700] sm:$0xff] }
 0x117   : > { %4247 = vmatpush1.bf16.msra.mxu0 %v4246_v0  ;;  %4343 = vmatpush1.bf16.msra.mxu1 %v4342_v5  ;;  %v4268_v0 = vpack.c.bf16 %v579_v57, %v570_v56  ;;  %v4362_v5 = vpack.c.bf16 %v562_v60, %v553_v59  ;;  %v4380_v56 = vpack.c.bf16 %v653_v48, %v644_v47  ;;  %v643_v57 = vld [vmem:[#allocation7 + $0xc00] sm:$0xff]  ;;  %v662_v60 = vld [vmem:[#allocation7 + $0xc98] sm:$0xff]  ;;  %v600_v48 = vld [vmem:[#allocation7 + $0xaa8] sm:$0xff] }
 0x118   : > { %4249 = vmatprep.subr.bf16.mxu0 %v4248_v1  ;;  %4345 = vmatprep.subr.bf16.mxu1 %v4344_v7  ;;  %v569_v1 = vld [vmem:[#allocation7 + $0x9b0] sm:$0xff]  ;;  %v571_v7 = vld [vmem:[#allocation7 + $0x9c0] sm:$0xff] }
 0x119   : > { %v4270_v9 = vpack.c.bf16 %v578_v2, %v569_v1  ;;  %v678_v1 = vld [vmem:[#allocation7 + $0xd18] sm:$0xff]  ;;  %v687_v2 = vld [vmem:[#allocation7 + $0xd60] sm:$0xff] }
 0x11a   : > { %v4292_v10 = vpack.c.bf16 %v687_v2, %v678_v1  ;;  %v591_v47 = vld [vmem:[#allocation7 + $0xa60] sm:$0xff] }
 0x11b   : > { %4251 = vmatpush1.bf16.msra.mxu0 %v4250_v12  ;;  %4347 = vmatpush1.bf16.msra.mxu1 %v4346_v19  ;;  %v4272_v12 = vpack.c.bf16 %v597_v4, %v588_v3  ;;  %v4366_v19 = vpack.c.bf16 %v580_v8, %v571_v7  ;;  %v680_v8 = vld [vmem:[#allocation7 + $0xd28] sm:$0xff]  ;;  %v627_v2 = vld [vmem:[#allocation7 + $0xb80] sm:$0xff] }
 0x11c   : > { %4253 = vmatprep.subr.bf16.mxu0 %v4252_v13  ;;  %4349 = vmatprep.subr.bf16.mxu1 %v4348_v21  ;;  %v587_v13 = vld [vmem:[#allocation7 + $0xa40] sm:$0xff]  ;;  %v589_v21 = vld [vmem:[#allocation7 + $0xa50] sm:$0xff] }
 0x11d   : > { %v4274_v23 = vpack.c.bf16 %v596_v14, %v587_v13  ;;  %v4370_v29 = vpack.c.bf16 %v598_v22, %v589_v21  ;;  %v411_v13 = vld [vmem:[#allocation7 + $0x4c0] sm:$0xff]  ;;  %v420_v14 = vld [vmem:[#allocation7 + $0x508] sm:$0xff] }
 0x11e   : > { %v4392_v22 = vpack.c.bf16 %v420_v14, %v411_v13 }
 0x11f   : > { %4255 = vmatpush1.bf16.msra.mxu0 %v4254_v26  ;;  %4351 = vmatpush1.bf16.msra.mxu1 %v4350_v30  ;;  %v4276_v26 = vpack.c.bf16 %v615_v18, %v606_v17  ;;  %v4372_v30 = vpack.c.bf16 %v617_v25, %v608_v24  ;;  %v276_v24 = vld [vmem:[#allocation7 + $0x88] sm:$0xff]  ;;  %v429_v25 = vld [vmem:[#allocation7 + $0x550] sm:$0xff] }
 0x120   : > { %4257 = vmatprep.subr.bf16.mxu0 %v4256_v27  ;;  %4353 = vmatprep.subr.bf16.mxu1 %v4352_v32  ;;  %v605_v27 = vld [vmem:[#allocation7 + $0xad0] sm:$0xff]  ;;  %v616_v32 = vld [vmem:[#allocation7 + $0xb28] sm:$0xff] }
 0x121   : > { %v4278_v33 = vpack.c.bf16 %v614_v28, %v605_v27  ;;  %v4374_v42 = vpack.c.bf16 %v616_v32, %v607_v31  ;;  %v555_v28 = vld [vmem:[#allocation7 + $0x940] sm:$0xff]  ;;  %v294_v31 = vld [vmem:[#allocation7 + $0x118] sm:$0xff] }
 0x122   : > { %v447_v32 = vld [vmem:[#allocation7 + $0x5e0] sm:$0xff] }
 0x123   : > { %4259 = vmatpush1.bf16.msra.mxu0 %v4258_v37  ;;  %4355 = vmatpush1.bf16.msra.mxu1 %v4354_v43  ;;  %v623_v37 = vld [vmem:[#allocation7 + $0xb60] sm:$0xff]  ;;  %v4376_v43 = vpack.c.bf16 %v635_v35, %v626_v34  ;;  %v4961_v35 = vmov 0.0|0.0  }
 0x124   : > { %4261 = vmatprep.subr.bf16.mxu0 %v4260_v38  ;;  %4357 = vmatprep.subr.bf16.mxu1 %v4356_v45  ;;  %v632_v38 = vld [vmem:[#allocation7 + $0xba8] sm:$0xff]  ;;  %v634_v45 = vld [vmem:[#allocation7 + $0xbb8] sm:$0xff] }
 0x125   : > { %v4282_v46 = vpack.c.bf16 %v632_v38, %v623_v37  ;;  %v582_v37 = vld [vmem:[#allocation7 + $0xa18] sm:$0xff] }
 0x127   : > { %4263 = vmatpush1.bf16.msra.mxu0 %v4262_v50  ;;  %4359 = vmatpush1.bf16.msra.mxu1 %v4358_v55  ;;  %v641_v50 = vld [vmem:[#allocation7 + $0xbf0] sm:$0xff]  ;;  %v4378_v55 = vpack.c.bf16 %v634_v45, %v625_v44  ;;  %v474_v45 = vld [vmem:[#allocation7 + $0x6b8] sm:$0xff] }
 0x128   : > { %4265 = vmatprep.subr.bf16.mxu0 %v4264_v51  ;;  %4361 = vmatprep.subr.bf16.mxu1 %v4360_v58  ;;  %v650_v51 = vld [vmem:[#allocation7 + $0xc38] sm:$0xff]  ;;  %v652_v58 = vld [vmem:[#allocation7 + $0xc48] sm:$0xff]  ;;  %v465_v44 = vld [vmem:[#allocation7 + $0x670] sm:$0xff] }
 0x129   : > { %v4286_v59 = vpack.c.bf16 %v650_v51, %v641_v50  ;;  %v4382_v3 = vpack.c.bf16 %v652_v58, %v643_v57  ;;  %v4404_v50 = vpack.c.bf16 %v474_v45, %v465_v44  ;;  %v321_v51 = vld [vmem:[#allocation7 + $0x1f0] sm:$0xff]  ;;  %v618_v58 = vld [vmem:[#allocation7 + $0xb38] sm:$0xff] }
 0x12a   : > { %1040 = vmatmul.mubr.f32.vlgmr.msra.gmra.mrb[2].mxu0 %v5203_v15  ;;  %1182 = vmatmul.mubr.f32.vlgmr.msra.gmra.mrb[2].mxu1 %v5203_v15  ;;  %v633_v15 = vld [vmem:[#allocation7 + $0xbb0] sm:$0xff] }
 0x12b   : > { %4267 = vmatpush1.bf16.msra.mxu0 %v4266_v61  ;;  %1110 = vmatprep.mubr.f32.mxu0 %v4960_v39  ;;  %v4280_v36 = vpack.c.bf16 %v633_v15, %v624_v16  ;;  %v671_v61 = vld [vmem:[#allocation7 + $0xce0] sm:$0xff]  ;;  %v564_v16 = vld [vmem:[#allocation7 + $0x988] sm:$0xff]  ;;  %v609_v57 = vld [vmem:[#allocation7 + $0xaf0] sm:$0xff] }
 0x12c   : > { %4269 = vmatprep.subr.bf16.mxu0 %v4268_v0  ;;  %4363 = vmatpush1.bf16.msra.mxu1 %v4362_v5  ;;  %v668_v0 = vld [vmem:[#allocation7 + $0xcc8] sm:$0xff]  ;;  %v4384_v4 = vpack.c.bf16 %v671_v61, %v662_v60  ;;  %v661_v5 = vld [vmem:[#allocation7 + $0xc90] sm:$0xff]  ;;  %v4425_v34 = vpack.c.bf16 %v564_v16, %v555_v28  ;;  %v339_v61 = vld [vmem:[#allocation7 + $0x280] sm:$0xff]  ;;  %v4434_v1 = vpack.c.bf16 %v618_v58, %v609_v57 }
 0x12d   : > { %1252 = vmatprep.mubr.f32.mxu1 %v4960_v39  ;;  %4365 = vmatprep.subr.bf16.mxu1 %v4364_v6  ;;  %v670_v6 = vld [vmem:[#allocation7 + $0xcd8] sm:$0xff]  ;;  %v4290_v7 = vpack.c.bf16 %v668_v0, %v659_v63  ;;  %v501_v63 = vld [vmem:[#allocation7 + $0x790] sm:$0xff] }
 0x12e   : > { %v4386_v17 = vpack.c.bf16 %v670_v6, %v661_v5  ;;  %v510_v0 = vld [vmem:[#allocation7 + $0x7d8] sm:$0xff]  ;;  %v357_v6 = vld [vmem:[#allocation7 + $0x310] sm:$0xff] }
 0x12f   : > { %4271 = vmatpush1.bf16.msra.mxu0 %v4270_v9  ;;  %v689_v9 = vld [vmem:[#allocation7 + $0xd70] sm:$0xff]  ;;  %v4412_v5 = vpack.c.bf16 %v510_v0, %v501_v63  ;;  %v1602_v63 = vld [vmem:[#allocation9] sm:$0xff] }
 0x130   : > { %4273 = vmatprep.subr.bf16.mxu0 %v4272_v12  ;;  %4367 = vmatpush1.bf16.msra.mxu1 %v4366_v19  ;;  %v686_v12 = vld [vmem:[#allocation7 + $0xd58] sm:$0xff]  ;;  %v4388_v18 = vpack.c.bf16 %v689_v9, %v680_v8  ;;  %v679_v19 = vld [vmem:[#allocation7 + $0xd20] sm:$0xff]  ;;  %v528_v9 = vld [vmem:[#allocation7 + $0x868] sm:$0xff] }
 0x131   : > { %4369 = vmatprep.subr.bf16.mxu1 %v4368_v20  ;;  %v688_v20 = vld [vmem:[#allocation7 + $0xd68] sm:$0xff]  ;;  %v4294_v21 = vpack.c.bf16 %v686_v12, %v677_v11  ;;  %v519_v8 = vld [vmem:[#allocation7 + $0x820] sm:$0xff]  ;;  %v645_v11 = vld [vmem:[#allocation7 + $0xc10] sm:$0xff] }
 0x132   : > { %v4390_v27 = vpack.c.bf16 %v688_v20, %v679_v19  ;;  %v654_v12 = vld [vmem:[#allocation7 + $0xc58] sm:$0xff]  ;;  %v4416_v14 = vpack.c.bf16 %v528_v9, %v519_v8  ;;  %v537_v19 = vld [vmem:[#allocation7 + $0x8b0] sm:$0xff]  ;;  %v1615_v8 = vld [vmem:[#allocation9 + $0x68] sm:$0xff] }
 0x133   : > { %4275 = vmatpush1.bf16.msra.mxu0 %v4274_v23  ;;  %v267_v23 = vld [vmem:[#allocation7 + $0x40] sm:$0xff]  ;;  %v546_v20 = vld [vmem:[#allocation7 + $0x8f8] sm:$0xff]  ;;  %v681_v16 = vld [vmem:[#allocation7 + $0xd30] sm:$0xff] }
 0x134   : > { %4277 = vmatprep.subr.bf16.mxu0 %v4276_v26  ;;  %4371 = vmatpush1.bf16.msra.mxu1 %v4370_v29  ;;  %v438_v26 = vld [vmem:[#allocation7 + $0x598] sm:$0xff]  ;;  %v4394_v15 = vpack.c.bf16 %v276_v24, %v267_v23  ;;  %v672_v23 = vld [vmem:[#allocation7 + $0xce8] sm:$0xff]  ;;  %v1618_v9 = vld [vmem:[#allocation9 + $0x80] sm:$0xff] }
 0x135   : > { %4373 = vmatprep.subr.bf16.mxu1 %v4372_v30  ;;  %v4396_v29 = vpack.c.bf16 %v438_v26, %v429_v25  ;;  %v285_v30 = vld [vmem:[#allocation7 + $0xd0] sm:$0xff]  ;;  %v4420_v25 = vpack.c.bf16 %v546_v20, %v537_v19 }
 0x136   : > { %v4398_v38 = vpack.c.bf16 %v294_v31, %v285_v30  ;;  %v393_v26 = vld [vmem:[#allocation7 + $0x430] sm:$0xff] }
 0x137   : > { %4279 = vmatpush1.bf16.msra.mxu0 %v4278_v33  ;;  %v456_v33 = vld [vmem:[#allocation7 + $0x628] sm:$0xff]  ;;  %v1620_v20 = vld [vmem:[#allocation9 + $0x90] sm:$0xff] }
 0x138   : > { %4281 = vmatprep.subr.bf16.mxu0 %v4280_v36  ;;  %4375 = vmatpush1.bf16.msra.mxu1 %v4374_v42  ;;  %v573_v36 = vld [vmem:[#allocation7 + $0x9d0] sm:$0xff]  ;;  %v4400_v41 = vpack.c.bf16 %v456_v33, %v447_v32  ;;  %v303_v42 = vld [vmem:[#allocation7 + $0x160] sm:$0xff] }
 0x139   : > { %4377 = vmatprep.subr.bf16.mxu1 %v4376_v43  ;;  %v312_v43 = vld [vmem:[#allocation7 + $0x1a8] sm:$0xff] }
 0x13a   : > { %v4761_v31 = vld [vmem:[%s5183_s10] sm:$0xff] }
 0x13b   : > { %4283 = vmatpush1.bf16.msra.mxu0 %v4282_v46  ;;  %v4428_v46 = vpack.c.bf16 %v582_v37, %v573_v36 }
 0x13c   : > { %4285 = vmatprep.subr.bf16.mxu0 %v4284_v49  ;;  %4379 = vmatpush1.bf16.msra.mxu1 %v4378_v55  ;;  %v4402_v49 = vpack.c.bf16 %v312_v43, %v303_v42  ;;  %v492_v55 = vld [vmem:[#allocation7 + $0x748] sm:$0xff] }
 0x13d   : > { %4381 = vmatprep.subr.bf16.mxu1 %v4380_v56  ;;  %v4431_v56 = vpack.c.bf16 %v600_v48, %v591_v47  ;;  %v4408_v60 = vpack.c.bf16 %v492_v55, %v483_v54  ;;  %v1410_v47 = vlaneseq }
 0x13f   : > { %4287 = vmatpush1.bf16.msra.mxu0 %v4286_v59  ;;  %v4406_v59 = vpack.c.bf16 %v330_v52, %v321_v51  ;;  %v5262_v48 = vshrl.u32 %v1410_v47, 7 }
 0x140   : > { %4289 = vmatprep.subr.bf16.mxu0 %v4288_v62  ;;  %4383 = vmatpush1.bf16.msra.mxu1 %v4382_v3  ;;  %v348_v62 = vld [vmem:[#allocation7 + $0x2c8] sm:$0xff] }
 0x141   : > { %4385 = vmatprep.subr.bf16.mxu1 %v4384_v4  ;;  %v636_v3 = vld [vmem:[#allocation7 + $0xbc8] sm:$0xff]  ;;  %v4410_v4 = vpack.c.bf16 %v348_v62, %v339_v61  ;;  %v1606_v62 = vld [vmem:[#allocation9 + $0x20] sm:$0xff] }
 0x142   : > { %v1603_v61 = vld [vmem:[#allocation9 + $0x8] sm:$0xff] }
 0x143   : > { %4291 = vmatpush1.bf16.msra.mxu0 %v4290_v7  ;;  %v366_v7 = vld [vmem:[#allocation7 + $0x358] sm:$0xff]  ;;  %v4448_v0 = vpack.c.bf16 %v1606_v62, %v1603_v61  ;;  %v1952_v61 = vld [vmem:[#allocation9 + $0xc8] sm:$0xff]  ;;  %v1955_v62 = vld [vmem:[#allocation9 + $0xe0] sm:$0xff] }
 0x144   : > { %4293 = vmatprep.subr.bf16.mxu0 %v4292_v10  ;;  %4387 = vmatpush1.bf16.msra.mxu1 %v4386_v17  ;;  %v4437_v10 = vpack.c.bf16 %v636_v3, %v627_v2  ;;  %v4414_v13 = vpack.c.bf16 %v366_v7, %v357_v6  ;;  %v375_v17 = vld [vmem:[#allocation7 + $0x3a0] sm:$0xff]  ;;  %v1609_v2 = vld [vmem:[#allocation9 + $0x38] sm:$0xff]  ;;  %v1612_v3 = vld [vmem:[#allocation9 + $0x50] sm:$0xff] }
 0x145   : > { %4389 = vmatprep.subr.bf16.mxu1 %v4388_v18  ;;  %v384_v18 = vld [vmem:[#allocation7 + $0x3e8] sm:$0xff]  ;;  %v1608_v6 = vld [vmem:[#allocation9 + $0x30] sm:$0xff] }
 0x146   : > { %v4418_v24 = vpack.c.bf16 %v384_v18, %v375_v17  ;;  %v1611_v7 = vld [vmem:[#allocation9 + $0x48] sm:$0xff]  ;;  %v1624_v17 = vld [vmem:[#allocation9 + $0xb0] sm:$0xff] }
 0x147   : > { %4295 = vmatpush1.bf16.msra.mxu0 %v4294_v21  ;;  %v4440_v21 = vpack.c.bf16 %v654_v12, %v645_v11  ;;  %v4456_v11 = vpack.c.bf16 %v1618_v9, %v1615_v8  ;;  %v1614_v12 = vld [vmem:[#allocation9 + $0x60] sm:$0xff] }
 0x148   : > { %4393 = vmatprep.subr.bf16.mxu0 %v4392_v22  ;;  %4391 = vmatpush1.bf16.msra.mxu1 %v4390_v27  ;;  %v663_v22 = vld [vmem:[#allocation7 + $0xca0] sm:$0xff]  ;;  %v402_v27 = vld [vmem:[#allocation7 + $0x478] sm:$0xff] }
 0x149   : > { %4424 = vmatprep.subr.bf16.mxu1 %v4961_v35  ;;  %v4443_v28 = vpack.c.bf16 %v672_v23, %v663_v22  ;;  %v1967_v8 = vld [vmem:[#allocation9 + $0x140] sm:$0xff] }
 0x14a   : > { %1111 = vmatmul.mubr.f32.vlgmr.msra.gmra.mrb[2].mxu0 %v5210_v53 }
 0x14b   : > { %4395 = vmatpush3.bf16.msra.mxu0 %v4394_v15  ;;  %1323 = vmatprep.mubr.f32.mxu0 %v4760_v40  ;;  %v690_v15 = vld [vmem:[#allocation7 + $0xd78] sm:$0xff] }
 0x14c   : > { %4397 = vmatprep.subr.bf16.mxu0 %v4396_v29  ;;  %1253 = vmatmul.mubr.f32.vlgmr.msra.gmra.mrb[2].mxu1 %v5210_v53  ;;  %v4422_v29 = vpack.c.bf16 %v402_v27, %v393_v26  ;;  %v4446_v30 = vpack.c.bf16 %v690_v15, %v681_v16  ;;  %v1610_v16 = vld [vmem:[#allocation9 + $0x40] sm:$0xff]  ;;  %v1613_v15 = vld [vmem:[#allocation9 + $0x58] sm:$0xff] }
 0x14d   : > { %4426 = vmatpush3.bf16.msra.mxu1 %v4425_v34  ;;  %3831 = vmatprep.mubr.msk.f32.mxu1 %vm4962_vm0, %v4960_v39 }
 0x14e   : > { %4427 = vmatprep.subr.bf16.mxu1 %v4961_v35 }
 0x14f   : > { %4399 = vmatpush3.bf16.msra.mxu0 %v4398_v38 }
 0x150   : > { %4401 = vmatprep.subr.bf16.mxu0 %v4400_v41 }
 0x151   : > { %4429 = vmatpush3.bf16.msra.mxu1 %v4428_v46 }
 0x152   : > { %4430 = vmatprep.subr.bf16.mxu1 %v4961_v35 }
 0x153   : > { %4403 = vmatpush3.bf16.msra.mxu0 %v4402_v49  ;;  %v1428_v49 = vand.u32 127, %v1410_v47 }
 0x154   : > { %4405 = vmatprep.subr.bf16.mxu0 %v4404_v50 }
 0x155   : > { %4432 = vmatpush3.bf16.msra.mxu1 %v4431_v56  ;;  %vm5265_vm2 = vcmp.le.s32.totalorder %v1428_v49, %v5262_v48 }
 0x156   : > { %4433 = vmatprep.subr.bf16.mxu1 %v4961_v35 }
 0x157   : > { %4407 = vmatpush3.bf16.msra.mxu0 %v4406_v59 }
 0x158   : > { %4409 = vmatprep.subr.bf16.mxu0 %v4408_v60 }
 0x159   : > { %4435 = vmatpush3.bf16.msra.mxu1 %v4434_v1  ;;  %v1605_v1 = vld [vmem:[#allocation9 + $0x18] sm:$0xff] }
 0x15a   : > { %4436 = vmatprep.subr.bf16.mxu1 %v4961_v35 }
 0x15b   : > { %4411 = vmatpush3.bf16.msra.mxu0 %v4410_v4  ;;  %v4450_v4 = vpack.c.bf16 %v1605_v1, %v1602_v63  ;;  %v1951_v63 = vld [vmem:[#allocation9 + $0xc0] sm:$0xff]  ;;  %v1954_v1 = vld [vmem:[#allocation9 + $0xd8] sm:$0xff] }
 0x15c   : > { %4413 = vmatprep.subr.bf16.mxu0 %v4412_v5  ;;  %v4452_v5 = vpack.c.bf16 %v1612_v3, %v1609_v2  ;;  %v1958_v2 = vld [vmem:[#allocation9 + $0xf8] sm:$0xff]  ;;  %v1961_v3 = vld [vmem:[#allocation9 + $0x110] sm:$0xff] }
 0x15d   : > { %4438 = vmatpush3.bf16.msra.mxu1 %v4437_v10  ;;  %v4454_v10 = vpack.c.bf16 %v1611_v7, %v1608_v6  ;;  %v1960_v6 = vld [vmem:[#allocation9 + $0x108] sm:$0xff] }
 0x15e   : > { %4439 = vmatprep.subr.bf16.mxu1 %v4961_v35  ;;  %v1964_v7 = vld [vmem:[#allocation9 + $0x128] sm:$0xff] }
 0x15f   : > { %4415 = vmatpush3.bf16.msra.mxu0 %v4414_v13  ;;  %v1617_v13 = vld [vmem:[#allocation9 + $0x78] sm:$0xff] }
 0x160   : > { %4417 = vmatprep.subr.bf16.mxu0 %v4416_v14  ;;  %v1621_v14 = vld [vmem:[#allocation9 + $0x98] sm:$0xff]  ;;  %v4458_v18 = vpack.c.bf16 %v1617_v13, %v1614_v12 }
 0x161   : > { %4441 = vmatpush3.bf16.msra.mxu1 %v4440_v21  ;;  %v4460_v19 = vpack.c.bf16 %v1624_v17, %v1621_v14  ;;  %v1623_v21 = vld [vmem:[#allocation9 + $0xa8] sm:$0xff]  ;;  %v1966_v12 = vld [vmem:[#allocation9 + $0x138] sm:$0xff]  ;;  %v1973_v14 = vld [vmem:[#allocation9 + $0x170] sm:$0xff] }
 0x162   : > { %4442 = vmatprep.subr.bf16.mxu1 %v4961_v35  ;;  %v4462_v22 = vpack.c.bf16 %v1623_v21, %v1620_v20  ;;  %v1970_v13 = vld [vmem:[#allocation9 + $0x158] sm:$0xff]  ;;  %v1972_v20 = vld [vmem:[#allocation9 + $0x168] sm:$0xff] }
 0x163   : > { %4419 = vmatpush3.bf16.msra.mxu0 %v4418_v24  ;;  %v1604_v24 = vld [vmem:[#allocation9 + $0x10] sm:$0xff] }
 0x164   : > { %4421 = vmatprep.subr.bf16.mxu0 %v4420_v25  ;;  %v1607_v25 = vld [vmem:[#allocation9 + $0x28] sm:$0xff] }
 0x165   : > { %4444 = vmatpush3.bf16.msra.mxu1 %v4443_v28  ;;  %v4465_v27 = vpack.c.bf16 %v1607_v25, %v1604_v24  ;;  %v1956_v24 = vld [vmem:[#allocation9 + $0xe8] sm:$0xff] }
 0x166   : > { %4445 = vmatprep.subr.bf16.mxu1 %v4961_v35 }
 0x167   : > { %4423 = vmatpush3.bf16.msra.mxu0 %v4422_v29  ;;  %v4468_v29 = vpack.c.bf16 %v1613_v15, %v1610_v16  ;;  %v1962_v16 = vld [vmem:[#allocation9 + $0x118] sm:$0xff] }
 0x168   : > { %3834 = vmatprep.subr.mxu0 %v4960_v39 }
 0x169   : > { %4447 = vmatpush3.bf16.msra.mxu1 %v4446_v30  ;;  %v1616_v30 = vld [vmem:[#allocation9 + $0x70] sm:$0xff] }
 0x16a   : > { %1324 = vmatmul.mubr.f32.vlgmr.msra.gmra.mrb[4].mxu0 %v4761_v31  ;;  %3839 = vmatprep.subr.mxu1 %v4960_v39  ;;  %v1619_v31 = vld [vmem:[#allocation9 + $0x88] sm:$0xff] }
 0x16b   : > { %3836 = vmatprep.mubr.msk.f32.mxu0 %vm4962_vm0, %v4960_v39 }
 0x16c   : > { %3832 = vmatmul.mubr.f32.vlgmr.msra.gmra.mrb[4].mxu1 %v5210_v53 }
 0x16d   : > { %3841 = vmatprep.mubr.msk.f32.mxu1 %vm4962_vm0, %v4960_v39 }
 0x1bd   : > { %v828_v32 = vpop.f32.mrb[0].mxu0  ;;  %v5241_v33 = vpop.f32.mrb[0].mxu1 }
 0x1be   : > { %v5243_v34 = vpop.f32.mrb[1].mxu0  ;;  %v972_v36 = vpop.f32.mrb[1].mxu1 }
 0x1bf   : > { %1783 = vrot.lane.b32.xlu1 %v972_v36, %s4963_s21  ;;  %3835 = vmatpush3.xpose.msk.msra.mxu0 %vm1436_vm1, %v972_v36  ;;  %v1622_v36 = vld [vmem:[#allocation9 + $0xa0] sm:$0xff] }
 0x1c0   : > { %4449 = vmatprep.subr.bf16.mxu0 %v4448_v0  ;;  %v4476_v0 = vpack.c.bf16 %v1955_v62, %v1952_v61  ;;  %v2295_v61 = vld [vmem:[#allocation9 + $0x198] sm:$0xff] }
 0x1c1   : > { %v2299_v62 = vld [vmem:[#allocation9 + $0x1b8] sm:$0xff] }
 0x1c2   : > { %3837 = vmatmul.mubr.msk.f32.vlgmr.msra.gmra.mrb[6].mxu0 %vm1436_vm1, %v828_v32 }
 0x1c3   : > { %1780 = vrot.lane.b32.xlu1 %v828_v32, %s4963_s21  ;;  %1693 = vmatprep.mubr.f32.mxu0 %v4960_v39  ;;  %v4471_v32 = vpack.c.bf16 %v1619_v31, %v1616_v30  ;;  %v1968_v30 = vld [vmem:[#allocation9 + $0x148] sm:$0xff] }
 0x1c4   : > { %4451 = vmatpush1.bf16.msra.mxu0 %v4450_v4  ;;  %v4480_v4 = vpack.c.bf16 %v1961_v3, %v1958_v2  ;;  %v2301_v2 = vld [vmem:[#allocation9 + $0x1c8] sm:$0xff] }
 0x1c5   : > { %4453 = vmatprep.subr.bf16.mxu0 %v4452_v5  ;;  %v1957_v5 = vld [vmem:[#allocation9 + $0xf0] sm:$0xff]  ;;  %v2305_v3 = vld [vmem:[#allocation9 + $0x1e8] sm:$0xff] }
 0x1c6   : > { %v4482_v9 = vpack.c.bf16 %v1960_v6, %v1957_v5  ;;  %v2304_v6 = vld [vmem:[#allocation9 + $0x1e0] sm:$0xff] }
 0x1c8   : > { %4455 = vmatpush1.bf16.msra.mxu0 %v4454_v10  ;;  %v4484_v10 = vpack.c.bf16 %v1967_v8, %v1964_v7  ;;  %v2311_v7 = vld [vmem:[#allocation9 + $0x218] sm:$0xff]  ;;  %v2314_v8 = vld [vmem:[#allocation9 + $0x230] sm:$0xff] }
 0x1c9   : > { %4457 = vmatprep.subr.bf16.mxu0 %v4456_v11  ;;  %v1963_v11 = vld [vmem:[#allocation9 + $0x120] sm:$0xff] }
 0x1ca   : > { %v4486_v17 = vpack.c.bf16 %v1966_v12, %v1963_v11  ;;  %v2310_v11 = vld [vmem:[#allocation9 + $0x210] sm:$0xff]  ;;  %v2313_v12 = vld [vmem:[#allocation9 + $0x228] sm:$0xff] }
 0x1cc   : > { %4459 = vmatpush1.bf16.msra.mxu0 %v4458_v18  ;;  %v4488_v18 = vpack.c.bf16 %v1973_v14, %v1970_v13  ;;  %v4518_v13 = vpack.c.bf16 %v2313_v12, %v2310_v11  ;;  %v2643_v11 = vld [vmem:[#allocation9 + $0x250] sm:$0xff]  ;;  %v2646_v12 = vld [vmem:[#allocation9 + $0x268] sm:$0xff] }
 0x1cd   : > { %4461 = vmatprep.subr.bf16.mxu0 %v4460_v19  ;;  %v1969_v19 = vld [vmem:[#allocation9 + $0x150] sm:$0xff] }
 0x1ce   : > { %v4490_v21 = vpack.c.bf16 %v1972_v20, %v1969_v19 }
 0x1d0   : > { %4463 = vmatpush1.bf16.msra.mxu0 %v4462_v22 }
 0x1d1   : > { %3863 = vmatprep.subr.mxu0 %v4960_v39 }
 0x21d   : > { %v5250_v53 = vpop.f32.mrb[2].mxu0 }
 0x21e   : > { %v5252_v37 = vpop.f32.mrb[3].mxu0 }
 0x21f   : > { %v5254_v38 = vpop.f32.mrb[2].mxu1 }
 0x220   : > { %v5256_v40 = vpop.f32.mrb[3].mxu1  ;;  %3840 = vmatpush3.msra.mxu1 %v5254_v38 }
 0x221   : > { %4464 = vmatprep.subr.bf16.mxu1 %v4961_v35 }
 0x23d   : > { %v3701_v41 = vpop.f32.mrb[4].mxu0 }
 0x23e   : > { %v3702_v42 = vpop.f32.mrb[5].mxu0 }
 0x23f   : > { %v3703_v43 = vadd.f32 %v3702_v42, %v3701_v41  ;;  %v1395_v44 = vpop.f32.mrb[4].mxu1  ;;  %v1625_v41 = vld [vmem:[#allocation9 + $0xb8] sm:$0xff] }
 0x240   : > { %v3833_v45 = vpop.f32.mrb[5].mxu1  ;;  %v4474_v42 = vpack.c.bf16 %v1625_v41, %v1622_v36  ;;  %v1974_v36 = vld [vmem:[#allocation9 + $0x178] sm:$0xff] }
 0x241   : > { %v5260_v46 = vadd.f32 %v3703_v43, %v1395_v44  ;;  %v1784_v43 = vpop.permute.xlu1 %1783 }
 0x245   : > { %v1781_v47 = vpop.permute.xlu1 %1780 }
 0x295   : > { %v1509_v51 = vpop.f32.mrb[6].mxu0 }
 0x296   : > { %v1513_v52 = vsel %vm5265_vm2, %v1509_v51, -inf  ;;  %v3838_v54 = vpop.f32.mrb[7].mxu0 }
 0x297   : > { %v1515_v55 = vsel %vm1514_vm3, %v1513_v52, -inf }
 0x298   : > { %1516 = vmax.xlane.f32.xlu0 %v1515_v55 }
 0x325   : > { %v1517_v56 = vpop.xlane.xlu0 %1516 }
 0x326   : > { %v1518_v57 = vsub.f32 %v1513_v52, %v1517_v56 }
 0x328   : > { %v1519_v58 = vmul.f32 1.442695, %v1518_v57 }
 0x32a   : > { %4736 = vpow2.f32 %v1519_v58 }
 0x334   : > { %v4737_v59 = vpop.eup %4736 }
 0x335   : > { %v1521_v60 = vsel %vm1514_vm3, %v4737_v59, 0.0 }
 0x336   : > { %1522 = vadd.xlane.f32.xlu0 %v1521_v60 }
 0x3c3   : > { %v1523_v23 = vpop.xlane.xlu0 %1522 }
 0x3c4   : > { %4738 = vrcp.f32 %v1523_v23  ;;  %v1953_v23 = vld [vmem:[#allocation9 + $0xd0] sm:$0xff] }
 0x3ce   : > { %v4739_v26 = vpop.eup %4738 }
 0x3cf   : > { %v1525_v28 = vmul.f32 %v4739_v26, %v4737_v59  ;;  %v4493_v26 = vpack.c.bf16 %v1956_v24, %v1953_v23  ;;  %v2303_v23 = vld [vmem:[#allocation9 + $0x1d8] sm:$0xff] }
 0x3d1   : > { %3842 = vmatmul.mubr.msk.f32.vlgmr.msra.gmra.mrb[6].mxu1 %vm1514_vm3, %v1525_v28  ;;  %v1959_v28 = vld [vmem:[#allocation9 + $0x100] sm:$0xff] }
 0x3d2   : > { %4466 = vmatpush3.bf16.msra.mxu1 %v4465_v27  ;;  %3860 = vmatprep.mubr.msk.f32.mxu1 %vm4962_vm0, %v4960_v39  ;;  %v4496_v15 = vpack.c.bf16 %v1962_v16, %v1959_v28  ;;  %v2312_v28 = vld [vmem:[#allocation9 + $0x220] sm:$0xff]  ;;  %v2315_v16 = vld [vmem:[#allocation9 + $0x238] sm:$0xff] }
 0x3d3   : > { %4467 = vmatprep.subr.bf16.mxu1 %v4961_v35 }
 0x3d6   : > { %4469 = vmatpush3.bf16.msra.mxu1 %v4468_v29  ;;  %v1965_v29 = vld [vmem:[#allocation9 + $0x130] sm:$0xff] }
 0x3d7   : > { %4470 = vmatprep.subr.bf16.mxu1 %v4961_v35  ;;  %v4499_v31 = vpack.c.bf16 %v1968_v30, %v1965_v29 }
 0x3da   : > { %4472 = vmatpush3.bf16.msra.mxu1 %v4471_v32  ;;  %v1971_v32 = vld [vmem:[#allocation9 + $0x160] sm:$0xff] }
 0x3db   : > { %4473 = vmatprep.subr.bf16.mxu1 %v4961_v35  ;;  %v4502_v41 = vpack.c.bf16 %v1974_v36, %v1971_v32 }
 0x3de   : > { %4475 = vmatpush3.bf16.msra.mxu1 %v4474_v42 }
 0x3df   : > { %3868 = vmatprep.subr.mxu1 %v4960_v39 }
 0x4a4   : > { %v1595_v44 = vpop.f32.mrb[6].mxu1 }
 0x4a5   : > { %v3843_v45 = vpop.f32.mrb[7].mxu1  ;;  %3639 = vmatmul.mubr.msk.f32.vlgmr.msra.gmra.mrb[8].mxu0 %vm1436_vm1, %v1595_v44  ;;  %3861 = vmatmul.mubr.msk.f32.vlgmr.msra.gmra.mrb[8].mxu1 %vm1436_vm1, %v1595_v44 }
 0x4a6   : > { %3864 = vmatpush3.xpose.msk.msra.mxu0 %vm1436_vm1, %v1784_v43  ;;  %3865 = vmatprep.mubr.msk.f32.mxu0 %vm4962_vm0, %v4960_v39 }
 0x4a7   : > { %3870 = vmatprep.mubr.msk.f32.mxu1 %vm4962_vm0, %v4960_v39  ;;  %4477 = vmatprep.subr.bf16.mxu0 %v4476_v0 }
 0x4a9   : > { %3866 = vmatmul.mubr.msk.f32.vlgmr.msra.gmra.mrb[10].mxu0 %vm1436_vm1, %v1781_v47 }
 0x4aa   : > { %2042 = vmatprep.mubr.f32.mxu0 %v4960_v39 }
 0x57c   : > { %v1855_v49 = vpop.f32.mrb[10].mxu0 }
 0x57d   : > { %v1859_v51 = vsel %vm5265_vm2, %v1855_v49, -inf  ;;  %v3867_v52 = vpop.f32.mrb[11].mxu0 }
 0x57e   : > { %v1860_v54 = vsel %vm1514_vm3, %v1859_v51, -inf }
 0x57f   : > { %1861 = vmax.xlane.f32.xlu0 %v1860_v54 }
 0x595   : > { %1872 = vrot.lane.b32.xlu0 %v5254_v38, %s4963_s21  ;;  %v4478_v38 = vpack.c.bf16 %v1954_v1, %v1951_v63  ;;  %v2302_v63 = vld [vmem:[#allocation9 + $0x1d0] sm:$0xff] }
 0x596   : > { %v2298_v1 = vld [vmem:[#allocation9 + $0x1b0] sm:$0xff] }
 0x597   : > { %4479 = vmatpush1.bf16.msra.mxu0 %v4478_v38  ;;  %v2308_v38 = vld [vmem:[#allocation9 + $0x200] sm:$0xff] }
 0x598   : > { %4481 = vmatprep.subr.bf16.mxu0 %v4480_v4  ;;  %v4510_v4 = vpack.c.bf16 %v2301_v2, %v2298_v1  ;;  %v4512_v5 = vpack.c.bf16 %v2308_v38, %v2305_v3  ;;  %v2653_v3 = vld [vmem:[#allocation9 + $0x2a0] sm:$0xff]  ;;  %v2656_v38 = vld [vmem:[#allocation9 + $0x2b8] sm:$0xff] }
 0x59b   : > { %4483 = vmatpush1.bf16.msra.mxu0 %v4482_v9 }
 0x59c   : > { %4485 = vmatprep.subr.bf16.mxu0 %v4484_v10  ;;  %v4516_v10 = vpack.c.bf16 %v2314_v8, %v2311_v7  ;;  %v2659_v7 = vld [vmem:[#allocation9 + $0x2d0] sm:$0xff]  ;;  %v2662_v8 = vld [vmem:[#allocation9 + $0x2e8] sm:$0xff] }
 0x59f   : > { %4487 = vmatpush1.bf16.msra.mxu0 %v4486_v17  ;;  %v2294_v17 = vld [vmem:[#allocation9 + $0x190] sm:$0xff] }
 0x5a0   : > { %4489 = vmatprep.subr.bf16.mxu0 %v4488_v18  ;;  %v2297_v18 = vld [vmem:[#allocation9 + $0x1a8] sm:$0xff] }
 0x5a1   : > { %v4521_v20 = vpack.c.bf16 %v2297_v18, %v2294_v17  ;;  %v2649_v18 = vld [vmem:[#allocation9 + $0x280] sm:$0xff] }
 0x5a3   : > { %4491 = vmatpush1.bf16.msra.mxu0 %v4490_v21 }
 0x5a4   : > { %3892 = vmatprep.subr.mxu0 %v4960_v39 }
 0x60c   : > { %v1862_v55 = vpop.xlane.xlu0 %1861 }
 0x60d   : > { %v1863_v56 = vsub.f32 %v1859_v51, %v1862_v55 }
 0x60f   : > { %v1864_v57 = vmul.f32 1.442695, %v1863_v56 }
 0x610   : > { %v1873_v58 = vpop.permute.xlu0 %1872 }
 0x611   : > { %4740 = vpow2.f32 %v1864_v57  ;;  %3869 = vmatpush3.msra.mxu1 %v1873_v58  ;;  %v2293_v57 = vld [vmem:[#allocation9 + $0x188] sm:$0xff]  ;;  %v2296_v58 = vld [vmem:[#allocation9 + $0x1a0] sm:$0xff] }
 0x612   : > { %4492 = vmatprep.subr.bf16.mxu1 %v4961_v35 }
 0x61b   : > { %v4741_v59 = vpop.eup %4740 }
 0x61c   : > { %v1866_v60 = vsel %vm1514_vm3, %v4741_v59, 0.0 }
 0x61d   : > { %1867 = vadd.xlane.f32.xlu1 %v1866_v60  ;;  %v4504_v60 = vpack.c.bf16 %v2296_v58, %v2293_v57  ;;  %v2644_v58 = vld [vmem:[#allocation9 + $0x258] sm:$0xff] }
 0x6aa   : > { %v1868_v22 = vpop.xlane.xlu1 %1867 }
 0x6ab   : > { %4742 = vrcp.f32 %v1868_v22  ;;  %v2300_v22 = vld [vmem:[#allocation9 + $0x1c0] sm:$0xff] }
 0x6ac   : > { %v4524_v24 = vpack.c.bf16 %v2303_v23, %v2300_v22  ;;  %v2658_v22 = vld [vmem:[#allocation9 + $0x2c8] sm:$0xff] }
 0x6b5   : > { %v4743_v25 = vpop.eup %4742 }
 0x6b6   : > { %v1870_v27 = vmul.f32 %v4743_v25, %v4741_v59  ;;  %v2292_v59 = vld [vmem:[#allocation9 + $0x180] sm:$0xff]  ;;  %v2306_v25 = vld [vmem:[#allocation9 + $0x1f0] sm:$0xff] }
 0x6b7   : > { %v4506_v0 = vpack.c.bf16 %v2295_v61, %v2292_v59  ;;  %v2648_v59 = vld [vmem:[#allocation9 + $0x278] sm:$0xff] }
 0x6b8   : > { %3871 = vmatmul.mubr.msk.f32.vlgmr.msra.gmra.mrb[10].mxu1 %vm1514_vm3, %v1870_v27 }
 0x6b9   : > { %4494 = vmatpush3.bf16.msra.mxu1 %v4493_v26  ;;  %3889 = vmatprep.mubr.msk.f32.mxu1 %vm4962_vm0, %v4960_v39  ;;  %v2309_v26 = vld [vmem:[#allocation9 + $0x208] sm:$0xff] }
 0x6ba   : > { %4495 = vmatprep.subr.bf16.mxu1 %v4961_v35  ;;  %v4527_v27 = vpack.c.bf16 %v2309_v26, %v2306_v25  ;;  %v2664_v25 = vld [vmem:[#allocation9 + $0x2f8] sm:$0xff] }
 0x6bd   : > { %4497 = vmatpush3.bf16.msra.mxu1 %v4496_v15  ;;  %v4530_v15 = vpack.c.bf16 %v2315_v16, %v2312_v28 }
 0x6be   : > { %4498 = vmatprep.subr.bf16.mxu1 %v4961_v35 }
 0x6c1   : > { %4500 = vmatpush3.bf16.msra.mxu1 %v4499_v31 }
 0x6c2   : > { %4501 = vmatprep.subr.bf16.mxu1 %v4961_v35 }
 0x6c5   : > { %4503 = vmatpush3.bf16.msra.mxu1 %v4502_v41 }
 0x6c6   : > { %3897 = vmatprep.subr.mxu1 %v4960_v39 }
 0x78b   : > { %v1944_v42 = vpop.f32.mrb[10].mxu1 }
 0x78c   : > { %v3872_v43 = vpop.f32.mrb[11].mxu1  ;;  %3644 = vmatmul.mubr.msk.f32.vlgmr.msra.gmra.mrb[8].mxu0 %vm1436_vm1, %v1944_v42  ;;  %3890 = vmatmul.mubr.msk.f32.vlgmr.msra.gmra.mrb[8].mxu1 %vm1436_vm1, %v1944_v42 }
 0x78d   : > { %3893 = vmatpush3.xpose.msk.msra.mxu0 %vm1436_vm1, %v5250_v53  ;;  %3898 = vmatpush3.msra.mxu1 %v5256_v40 }
 0x78e   : > { %3894 = vmatprep.mubr.msk.f32.mxu0 %vm4962_vm0, %v4960_v39  ;;  %3899 = vmatprep.mubr.msk.f32.mxu1 %vm4962_vm0, %v4960_v39 }
 0x78f   : > { %4520 = vmatprep.subr.bf16.mxu1 %v4961_v35  ;;  %4505 = vmatprep.subr.bf16.mxu0 %v4504_v60  ;;  %v2651_v60 = vld [vmem:[#allocation9 + $0x290] sm:$0xff] }
 0x790   : > { %3895 = vmatmul.mubr.msk.f32.vlgmr.msra.gmra.mrb[12].mxu0 %vm1436_vm1, %v5243_v34  ;;  %v4536_v61 = vpack.c.bf16 %v2651_v60, %v2648_v59  ;;  %v2994_v60 = vld [vmem:[#allocation9 + $0x360] sm:$0xff] }
 0x791   : > { %2383 = vmatprep.mubr.f32.mxu0 %v4960_v39  ;;  %4507 = vmatpush1.bf16.msra.mxu0 %v4506_v0  ;;  %v2654_v0 = vld [vmem:[#allocation9 + $0x2a8] sm:$0xff] }
 0x863   : > { %v2200_v44 = vpop.f32.mrb[12].mxu0 }
 0x864   : > { %v2204_v45 = vsel %vm5265_vm2, %v2200_v44, -inf  ;;  %v3896_v47 = vpop.f32.mrb[13].mxu0 }
 0x865   : > { %v2205_v49 = vsel %vm1514_vm3, %v2204_v45, -inf }
 0x866   : > { %2206 = vmax.xlane.f32.xlu0 %v2205_v49 }
 0x87c   : > { %2470 = vrot.lane.b32.xlu0 %v5243_v34, %s4963_s21  ;;  %v4508_v34 = vpack.c.bf16 %v2302_v63, %v2299_v62  ;;  %v2647_v62 = vld [vmem:[#allocation9 + $0x270] sm:$0xff]  ;;  %v2650_v63 = vld [vmem:[#allocation9 + $0x288] sm:$0xff] }
 0x87d   : > { %v4538_v1 = vpack.c.bf16 %v2650_v63, %v2647_v62  ;;  %v3004_v62 = vld [vmem:[#allocation9 + $0x3b0] sm:$0xff] }
 0x87e   : > { %4509 = vmatprep.subr.bf16.mxu0 %v4508_v34  ;;  %v2657_v34 = vld [vmem:[#allocation9 + $0x2c0] sm:$0xff] }
 0x87f   : > { %4511 = vmatpush1.bf16.msra.mxu0 %v4510_v4  ;;  %v4540_v2 = vpack.c.bf16 %v2657_v34, %v2654_v0  ;;  %v2660_v4 = vld [vmem:[#allocation9 + $0x2d8] sm:$0xff]  ;;  %v3000_v34 = vld [vmem:[#allocation9 + $0x390] sm:$0xff] }
 0x880   : > { %4513 = vmatprep.subr.bf16.mxu0 %v4512_v5  ;;  %v2663_v5 = vld [vmem:[#allocation9 + $0x2f0] sm:$0xff] }
 0x8f3   : > { %v2207_v51 = vpop.xlane.xlu0 %2206 }
 0x8f4   : > { %v2208_v52 = vsub.f32 %v2204_v45, %v2207_v51 }
 0x8f6   : > { %v2209_v54 = vmul.f32 1.442695, %v2208_v52 }
 0x8f7   : > { %v2471_v32 = vpop.permute.xlu0 %2470 }
 0x8f8   : > { %4744 = vpow2.f32 %v2209_v54  ;;  %v2642_v54 = vld [vmem:[#allocation9 + $0x248] sm:$0xff] }
 0x902   : > { %v4745_v55 = vpop.eup %4744 }
 0x903   : > { %v2211_v56 = vsel %vm1514_vm3, %v4745_v55, 0.0 }
 0x904   : > { %2212 = vadd.xlane.f32.xlu1 %v2211_v56  ;;  %v2641_v56 = vld [vmem:[#allocation9 + $0x240] sm:$0xff] }
 0x915   : > { %2473 = vrot.lane.b32.xlu1 %v5250_v53, %s4963_s21  ;;  %v2307_v53 = vld [vmem:[#allocation9 + $0x1f8] sm:$0xff] }
 0x916   : > { %v4514_v9 = vpack.c.bf16 %v2307_v53, %v2304_v6  ;;  %v4542_v6 = vpack.c.bf16 %v2656_v38, %v2653_v3  ;;  %v4544_v53 = vpack.c.bf16 %v2663_v5, %v2660_v4  ;;  %v2984_v38 = vld [vmem:[#allocation9 + $0x310] sm:$0xff]  ;;  %v2987_v4 = vld [vmem:[#allocation9 + $0x328] sm:$0xff] }
 0x918   : > { %4515 = vmatpush1.bf16.msra.mxu0 %v4514_v9  ;;  %v4546_v9 = vpack.c.bf16 %v2662_v8, %v2659_v7  ;;  %v2990_v7 = vld [vmem:[#allocation9 + $0x340] sm:$0xff]  ;;  %v2993_v8 = vld [vmem:[#allocation9 + $0x358] sm:$0xff] }
 0x919   : > { %4517 = vmatprep.subr.bf16.mxu0 %v4516_v10 }
 0x91c   : > { %4519 = vmatpush1.bf16.msra.mxu0 %v4518_v13 }
 0x91d   : > { %3921 = vmatprep.subr.mxu0 %v4960_v39 }
 0x991   : > { %v2213_v14 = vpop.xlane.xlu1 %2212 }
 0x992   : > { %4746 = vrcp.f32 %v2213_v14  ;;  %v4549_v14 = vpack.c.bf16 %v2646_v12, %v2643_v11  ;;  %v2999_v11 = vld [vmem:[#allocation9 + $0x388] sm:$0xff] }
 0x995   : > { %v2474_v30 = vpop.permute.xlu1 %2473 }
 0x99c   : > { %v4747_v19 = vpop.eup %4746 }
 0x99d   : > { %v2215_v21 = vmul.f32 %v4747_v19, %v4745_v55  ;;  %v2645_v55 = vld [vmem:[#allocation9 + $0x260] sm:$0xff]  ;;  %v2652_v19 = vld [vmem:[#allocation9 + $0x298] sm:$0xff] }
 0x99e   : > { %v4532_v57 = vpack.c.bf16 %v2645_v55, %v2642_v54  ;;  %v2988_v55 = vld [vmem:[#allocation9 + $0x330] sm:$0xff] }
 0x99f   : > { %3900 = vmatmul.mubr.msk.f32.vlgmr.msra.gmra.mrb[12].mxu1 %vm1514_vm3, %v2215_v21  ;;  %v2655_v21 = vld [vmem:[#allocation9 + $0x2b0] sm:$0xff] }
 0x9a0   : > { %4522 = vmatpush3.bf16.msra.mxu1 %v4521_v20  ;;  %3918 = vmatprep.mubr.msk.f32.mxu1 %vm4962_vm0, %v4960_v39  ;;  %v4552_v20 = vpack.c.bf16 %v2652_v19, %v2649_v18  ;;  %v4555_v23 = vpack.c.bf16 %v2658_v22, %v2655_v21 }
 0x9a1   : > { %4523 = vmatprep.subr.bf16.mxu1 %v4961_v35 }
 0x9a4   : > { %4525 = vmatpush3.bf16.msra.mxu1 %v4524_v24  ;;  %v2661_v24 = vld [vmem:[#allocation9 + $0x2e0] sm:$0xff] }
 0x9a5   : > { %4526 = vmatprep.subr.bf16.mxu1 %v4961_v35  ;;  %v4558_v26 = vpack.c.bf16 %v2664_v25, %v2661_v24 }
 0x9a8   : > { %4528 = vmatpush3.bf16.msra.mxu1 %v4527_v27 }
 0x9a9   : > { %4529 = vmatprep.subr.bf16.mxu1 %v4961_v35 }
 0x9ac   : > { %4531 = vmatpush3.bf16.msra.mxu1 %v4530_v15 }
 0x9ad   : > { %3926 = vmatprep.subr.mxu1 %v4960_v39 }
 0xa72   : > { %v2285_v29 = vpop.f32.mrb[12].mxu1 }
 0xa73   : > { %v3901_v31 = vpop.f32.mrb[13].mxu1  ;;  %3649 = vmatmul.mubr.msk.f32.vlgmr.msra.gmra.mrb[8].mxu0 %vm1436_vm1, %v2285_v29  ;;  %3919 = vmatmul.mubr.msk.f32.vlgmr.msra.gmra.mrb[8].mxu1 %vm1436_vm1, %v2285_v29 }
 0xa74   : > { %3922 = vmatpush3.xpose.msk.msra.mxu0 %vm1436_vm1, %v2474_v30  ;;  %3923 = vmatprep.mubr.msk.f32.mxu0 %vm4962_vm0, %v4960_v39 }
 0xa75   : > { %3928 = vmatprep.mubr.msk.f32.mxu1 %vm4962_vm0, %v4960_v39  ;;  %4533 = vmatprep.subr.bf16.mxu0 %v4532_v57  ;;  %v2998_v57 = vld [vmem:[#allocation9 + $0x380] sm:$0xff] }
 0xa77   : > { %3924 = vmatmul.mubr.msk.f32.vlgmr.msra.gmra.mrb[14].mxu0 %vm1436_vm1, %v2471_v32 }
 0xa78   : > { %2732 = vmatprep.mubr.f32.mxu0 %v4960_v39 }
 0xb4a   : > { %v2545_v36 = vpop.f32.mrb[14].mxu0 }
 0xb4b   : > { %v2549_v41 = vsel %vm5265_vm2, %v2545_v36, -inf  ;;  %v3925_v42 = vpop.f32.mrb[15].mxu0 }
 0xb4c   : > { %v2550_v43 = vsel %vm1514_vm3, %v2549_v41, -inf }
 0xb4d   : > { %2551 = vmax.xlane.f32.xlu1 %v2550_v43  ;;  %v2983_v43 = vld [vmem:[#allocation9 + $0x308] sm:$0xff] }
 0xb5e   : > { %2562 = vrot.lane.b32.xlu1 %v5256_v40, %s4963_s21  ;;  %v4534_v40 = vpack.c.bf16 %v2644_v58, %v2641_v56  ;;  %v2991_v56 = vld [vmem:[#allocation9 + $0x348] sm:$0xff] }
 0xb5f   : > { %v4566_v58 = vpack.c.bf16 %v2991_v56, %v2988_v55  ;;  %v3350_v55 = vld [vmem:[#allocation9 + $0x458] sm:$0xff]  ;;  %v3353_v56 = vld [vmem:[#allocation9 + $0x470] sm:$0xff] }
 0xb60   : > { %4535 = vmatpush1.bf16.msra.mxu0 %v4534_v40  ;;  %v2997_v40 = vld [vmem:[#allocation9 + $0x378] sm:$0xff] }
 0xb61   : > { %4537 = vmatprep.subr.bf16.mxu0 %v4536_v61  ;;  %v3001_v61 = vld [vmem:[#allocation9 + $0x398] sm:$0xff]  ;;  %v4570_v63 = vpack.c.bf16 %v2997_v40, %v2994_v60 }
 0xb62   : > { %v4572_v0 = vpack.c.bf16 %v3004_v62, %v3001_v61  ;;  %v3333_v61 = vld [vmem:[#allocation9 + $0x3d0] sm:$0xff]  ;;  %v3336_v62 = vld [vmem:[#allocation9 + $0x3e8] sm:$0xff] }
 0xb64   : > { %4539 = vmatpush1.bf16.msra.mxu0 %v4538_v1  ;;  %v3003_v1 = vld [vmem:[#allocation9 + $0x3a8] sm:$0xff] }
 0xb65   : > { %4541 = vmatprep.subr.bf16.mxu0 %v4540_v2  ;;  %v4574_v2 = vpack.c.bf16 %v3003_v1, %v3000_v34  ;;  %v3339_v1 = vld [vmem:[#allocation9 + $0x400] sm:$0xff] }
 0xb68   : > { %4543 = vmatpush1.bf16.msra.mxu0 %v4542_v6  ;;  %v4577_v6 = vpack.c.bf16 %v2987_v4, %v2984_v38  ;;  %v3345_v38 = vld [vmem:[#allocation9 + $0x430] sm:$0xff]  ;;  %v3348_v4 = vld [vmem:[#allocation9 + $0x448] sm:$0xff] }
 0xb69   : > { %4545 = vmatprep.subr.bf16.mxu0 %v4544_v53 }
 0xb6c   : > { %4547 = vmatpush1.bf16.msra.mxu0 %v4546_v9  ;;  %v4580_v9 = vpack.c.bf16 %v2993_v8, %v2990_v7 }
 0xb6d   : > { %3950 = vmatprep.subr.mxu0 %v4960_v39 }
 0xbda   : > { %v2552_v44 = vpop.xlane.xlu1 %2551 }
 0xbdb   : > { %v2553_v45 = vsub.f32 %v2549_v41, %v2552_v44  ;;  %v2986_v44 = vld [vmem:[#allocation9 + $0x320] sm:$0xff] }
 0xbdd   : > { %v2554_v47 = vmul.f32 1.442695, %v2553_v45  ;;  %v2982_v45 = vld [vmem:[#allocation9 + $0x300] sm:$0xff] }
 0xbde   : > { %v2563_v49 = vpop.permute.xlu1 %2562 }
 0xbdf   : > { %4748 = vpow2.f32 %v2554_v47  ;;  %3927 = vmatpush3.msra.mxu1 %v2563_v49  ;;  %v4560_v47 = vpack.c.bf16 %v2986_v44, %v2983_v43  ;;  %v2985_v49 = vld [vmem:[#allocation9 + $0x318] sm:$0xff]  ;;  %v3337_v43 = vld [vmem:[#allocation9 + $0x3f0] sm:$0xff] }
 0xbe0   : > { %4548 = vmatprep.subr.bf16.mxu1 %v4961_v35  ;;  %v4562_v54 = vpack.c.bf16 %v2985_v49, %v2982_v45  ;;  %v3340_v45 = vld [vmem:[#allocation9 + $0x408] sm:$0xff] }
 0xbe1   : > { %v3344_v49 = vld [vmem:[#allocation9 + $0x428] sm:$0xff] }
 0xbe9   : > { %v4749_v51 = vpop.eup %4748 }
 0xbea   : > { %v2556_v52 = vsel %vm1514_vm3, %v4749_v51, 0.0 }
 0xbeb   : > { %2557 = vadd.xlane.f32.xlu0 %v2556_v52  ;;  %v2992_v52 = vld [vmem:[#allocation9 + $0x350] sm:$0xff] }
 0xc78   : > { %v2558_v10 = vpop.xlane.xlu0 %2557 }
 0xc79   : > { %4750 = vrcp.f32 %v2558_v10  ;;  %v2996_v10 = vld [vmem:[#allocation9 + $0x370] sm:$0xff] }
 0xc7a   : > { %v4583_v12 = vpack.c.bf16 %v2999_v11, %v2996_v10  ;;  %v1420_v10 = vsub.s32 2, %v5262_v48  ;;  %v1408_v11 = vld [vmem:[#allocation10] sm:$0x7] }
 0xc83   : > { %v4751_v13 = vpop.eup %4750 }
 0xc84   : > { %v2560_v17 = vmul.f32 %v4751_v13, %v4749_v51  ;;  %v2989_v51 = vld [vmem:[#allocation9 + $0x338] sm:$0xff]  ;;  %v3002_v13 = vld [vmem:[#allocation9 + $0x3a0] sm:$0xff] }
 0xc86   : > { %3929 = vmatmul.mubr.msk.f32.vlgmr.msra.gmra.mrb[14].mxu1 %vm1514_vm3, %v2560_v17 }
 0xc87   : > { %4550 = vmatpush3.bf16.msra.mxu1 %v4549_v14  ;;  %3947 = vmatprep.mubr.msk.f32.mxu1 %vm4962_vm0, %v4960_v39  ;;  %v3005_v14 = vld [vmem:[#allocation9 + $0x3b8] sm:$0xff] }
 0xc88   : > { %4551 = vmatprep.subr.bf16.mxu1 %v4961_v35  ;;  %v4586_v17 = vpack.c.bf16 %v3005_v14, %v3002_v13  ;;  %v1421_v14 = vrot.slane %v1408_v11, %v1420_v10 }
 0xc8b   : > { %4553 = vmatpush3.bf16.msra.mxu1 %v4552_v20 }
 0xc8c   : > { %4554 = vmatprep.subr.bf16.mxu1 %v4961_v35 }
 0xc8f   : > { %4556 = vmatpush3.bf16.msra.mxu1 %v4555_v23 }
 0xc90   : > { %4557 = vmatprep.subr.bf16.mxu1 %v4961_v35 }
 0xc93   : > { %4559 = vmatpush3.bf16.msra.mxu1 %v4558_v26 }
 0xc94   : > { %3955 = vmatprep.subr.mxu1 %v4960_v39 }
 0xd59   : > { %v2634_v27 = vpop.f32.mrb[14].mxu1 }
 0xd5a   : > { %v3930_v28 = vpop.f32.mrb[15].mxu1  ;;  %3654 = vmatmul.mubr.msk.f32.vlgmr.msra.gmra.mrb[8].mxu0 %vm1436_vm1, %v2634_v27  ;;  %3948 = vmatmul.mubr.msk.f32.vlgmr.msra.gmra.mrb[8].mxu1 %vm1436_vm1, %v2634_v27 }
 0xd5b   : > { %3951 = vmatpush3.xpose.msk.msra.mxu0 %vm1436_vm1, %v5252_v37  ;;  %3956 = vmatpush3.msra.mxu1 %v5260_v46 }
 0xd5c   : > { %3952 = vmatprep.mubr.msk.f32.mxu0 %vm4962_vm0, %v4960_v39  ;;  %3957 = vmatprep.mubr.msk.f32.mxu1 %vm4962_vm0, %v4960_v39 }
 0xd5d   : > { %4576 = vmatprep.subr.bf16.mxu1 %v4961_v35  ;;  %4561 = vmatprep.subr.bf16.mxu0 %v4560_v47  ;;  %v4594_v47 = vpack.c.bf16 %v3340_v45, %v3337_v43 }
 0xd5e   : > { %3953 = vmatmul.mubr.msk.f32.vlgmr.msra.gmra.mrb[16].mxu0 %vm1436_vm1, %v5241_v33 }
 0xd5f   : > { %3073 = vmatprep.mubr.f32.mxu0 %v4960_v39  ;;  %4563 = vmatpush1.bf16.msra.mxu0 %v4562_v54  ;;  %v3343_v54 = vld [vmem:[#allocation9 + $0x420] sm:$0xff] }
 0xe31   : > { %v2890_v16 = vpop.f32.mrb[16].mxu0 }
 0xe32   : > { %v2894_v15 = vsel %vm5265_vm2, %v2890_v16, -inf  ;;  %v3954_v29 = vpop.f32.mrb[17].mxu0 }
 0xe33   : > { %v2895_v30 = vsel %vm1514_vm3, %v2894_v15, -inf  ;;  %v3332_v29 = vld [vmem:[#allocation9 + $0x3c8] sm:$0xff] }
 0xe34   : > { %2896 = vmax.xlane.f32.xlu0 %v2895_v30  ;;  %v3335_v30 = vld [vmem:[#allocation9 + $0x3e0] sm:$0xff] }
 0xe35   : > { %v4588_v50 = vpack.c.bf16 %v3335_v30, %v3332_v29 }
 0xe4a   : > { %3163 = vrot.lane.b32.xlu0 %v5252_v37, %s4963_s21  ;;  %v4564_v37 = vpack.c.bf16 %v2992_v52, %v2989_v51  ;;  %v3347_v51 = vld [vmem:[#allocation9 + $0x440] sm:$0xff] }
 0xe4b   : > { %v4596_v52 = vpack.c.bf16 %v3347_v51, %v3344_v49 }
 0xe4c   : > { %4565 = vmatprep.subr.bf16.mxu0 %v4564_v37 }
 0xe4d   : > { %4567 = vmatpush1.bf16.msra.mxu0 %v4566_v58  ;;  %v3352_v58 = vld [vmem:[#allocation9 + $0x468] sm:$0xff] }
 0xe4e   : > { %3160 = vrot.lane.b32.xlu0 %v5241_v33, %s4963_s21  ;;  %v2995_v33 = vld [vmem:[#allocation9 + $0x368] sm:$0xff] }
 0xe4f   : > { %v4568_v59 = vpack.c.bf16 %v2998_v57, %v2995_v33  ;;  %v4600_v33 = vpack.c.bf16 %v3353_v56, %v3350_v55  ;;  %v3349_v57 = vld [vmem:[#allocation9 + $0x450] sm:$0xff] }
 0xe51   : > { %4569 = vmatprep.subr.bf16.mxu0 %v4568_v59  ;;  %v4602_v59 = vpack.c.bf16 %v3352_v58, %v3349_v57 }
 0xe52   : > { %4571 = vmatpush1.bf16.msra.mxu0 %v4570_v63 }
 0xe53   : > { %4573 = vmatprep.subr.bf16.mxu0 %v4572_v0  ;;  %v4605_v0 = vpack.c.bf16 %v3336_v62, %v3333_v61 }
 0xe56   : > { %4575 = vmatpush1.bf16.msra.mxu0 %v4574_v2  ;;  %v3342_v2 = vld [vmem:[#allocation9 + $0x418] sm:$0xff] }
 0xe57   : > { %3979 = vmatprep.subr.mxu0 %v4960_v39 }
 0xec1   : > { %v2897_v31 = vpop.xlane.xlu0 %2896 }
 0xec2   : > { %v2898_v32 = vsub.f32 %v2894_v15, %v2897_v31  ;;  %v3331_v31 = vld [vmem:[#allocation9 + $0x3c0] sm:$0xff] }
 0xec4   : > { %v2899_v36 = vmul.f32 1.442695, %v2898_v32  ;;  %v3334_v32 = vld [vmem:[#allocation9 + $0x3d8] sm:$0xff] }
 0xec5   : > { %v3164_v18 = vpop.permute.xlu0 %3163 }
 0xec6   : > { %4752 = vpow2.f32 %v2899_v36  ;;  %v4590_v36 = vpack.c.bf16 %v3334_v32, %v3331_v31 }
 0xec9   : > { %v3161_v21 = vpop.permute.xlu0 %3160 }
 0xed0   : > { %v4753_v41 = vpop.eup %4752 }
 0xed1   : > { %v2901_v42 = vsel %vm1514_vm3, %v4753_v41, 0.0 }
 0xed2   : > { %2902 = vadd.xlane.f32.xlu1 %v2901_v42  ;;  %v3341_v42 = vld [vmem:[#allocation9 + $0x410] sm:$0xff] }
 0xf5f   : > { %v2903_v3 = vpop.xlane.xlu1 %2902 }
 0xf60   : > { %4754 = vrcp.f32 %v2903_v3  ;;  %v4608_v3 = vpack.c.bf16 %v3342_v2, %v3339_v1 }
 0xf6a   : > { %v4755_v5 = vpop.eup %4754 }
 0xf6b   : > { %v2905_v53 = vmul.f32 %v4755_v5, %v4753_v41  ;;  %v3338_v41 = vld [vmem:[#allocation9 + $0x3f8] sm:$0xff]  ;;  %v4611_v5 = vpack.c.bf16 %v3348_v4, %v3345_v38 }
 0xf6c   : > { %v4592_v44 = vpack.c.bf16 %v3341_v42, %v3338_v41 }
 0xf6d   : > { %3958 = vmatmul.mubr.msk.f32.vlgmr.msra.gmra.mrb[16].mxu1 %vm1514_vm3, %v2905_v53  ;;  %v3354_v53 = vld [vmem:[#allocation9 + $0x478] sm:$0xff] }
 0xf6e   : > { %4578 = vmatpush3.bf16.msra.mxu1 %v4577_v6  ;;  %3976 = vmatprep.mubr.msk.f32.mxu1 %vm4962_vm0, %v4960_v39  ;;  %v3351_v6 = vld [vmem:[#allocation9 + $0x460] sm:$0xff] }
 0xf6f   : > { %4579 = vmatprep.subr.bf16.mxu1 %v4961_v35  ;;  %v4614_v7 = vpack.c.bf16 %v3354_v53, %v3351_v6 }
 0xf72   : > { %4581 = vmatpush3.bf16.msra.mxu1 %v4580_v9 }
 0xf73   : > { %4582 = vmatprep.subr.bf16.mxu1 %v4961_v35 }
 0xf76   : > { %4584 = vmatpush3.bf16.msra.mxu1 %v4583_v12  ;;  %v1416_v12 = vsub.s32 1, %v5262_v48 }
 0xf77   : > { %4585 = vmatprep.subr.bf16.mxu1 %v4961_v35 }
 0xf7a   : > { %4587 = vmatpush3.bf16.msra.mxu1 %v4586_v17  ;;  %v1417_v17 = vrot.slane %v1408_v11, %v1416_v12 }
 0xf7b   : > { %3984 = vmatprep.subr.mxu1 %v4960_v39 }
0x1040   : > { %v2975_v19 = vpop.f32.mrb[16].mxu1 }
0x1041   : > { %v3959_v20 = vpop.f32.mrb[17].mxu1  ;;  %3659 = vmatmul.mubr.msk.f32.vlgmr.msra.gmra.mrb[8].mxu0 %vm1436_vm1, %v2975_v19  ;;  %3977 = vmatmul.mubr.msk.f32.vlgmr.msra.gmra.mrb[8].mxu1 %vm1436_vm1, %v2975_v19 }
0x1042   : > { %3980 = vmatpush3.xpose.msk.msra.mxu0 %vm1436_vm1, %v3164_v18  ;;  %3981 = vmatprep.mubr.msk.f32.mxu0 %vm4962_vm0, %v4960_v39 }
0x1043   : > { %3986 = vmatprep.mubr.msk.f32.mxu1 %vm4962_vm0, %v4960_v39  ;;  %4589 = vmatprep.subr.bf16.mxu0 %v4588_v50 }
0x1045   : > { %3982 = vmatmul.mubr.msk.f32.vlgmr.msra.gmra.mrb[18].mxu0 %vm1436_vm1, %v3161_v21 }
0x1046   : > { %3422 = vmatprep.mubr.f32.mxu0 %v4960_v39  ;;  %4591 = vmatpush1.bf16.msra.mxu0 %v4590_v36 }
0x1047   : > { %4593 = vmatprep.subr.bf16.mxu0 %v4592_v44 }
0x104a   : > { %4595 = vmatpush1.bf16.msra.mxu0 %v4594_v47 }
0x104b   : > { %4597 = vmatprep.subr.bf16.mxu0 %v4596_v52 }
0x1118   : > { %v3235_v22 = vpop.f32.mrb[18].mxu0 }
0x1119   : > { %v3239_v23 = vsel %vm5265_vm2, %v3235_v22, -inf  ;;  %v3983_v24 = vpop.f32.mrb[19].mxu0 }
0x111a   : > { %v3240_v25 = vsel %vm1514_vm3, %v3239_v23, -inf }
0x111b   : > { %3241 = vmax.xlane.f32.xlu0 %v3240_v25 }
0x11a8   : > { %v3242_v26 = vpop.xlane.xlu0 %3241 }
0x11a9   : > { %v3243_v27 = vsub.f32 %v3239_v23, %v3242_v26 }
0x11ab   : > { %v3244_v28 = vmul.f32 1.442695, %v3243_v27 }
0x11ad   : > { %4756 = vpow2.f32 %v3244_v28 }
0x11b7   : > { %v4757_v16 = vpop.eup %4756 }
0x11b8   : > { %v3246_v15 = vsel %vm1514_vm3, %v4757_v16, 0.0 }
0x11b9   : > { %3247 = vadd.xlane.f32.xlu1 %v3246_v15 }
0x11ca   : > { %3252 = vrot.lane.b32.xlu1 %v5260_v46, %s4963_s21  ;;  %v3346_v46 = vld [vmem:[#allocation9 + $0x438] sm:$0xff] }
0x11cb   : > { %v4598_v37 = vpack.c.bf16 %v3346_v46, %v3343_v54 }
0x11cd   : > { %4599 = vmatpush1.bf16.msra.mxu0 %v4598_v37 }
0x11ce   : > { %4601 = vmatprep.subr.bf16.mxu0 %v4600_v33 }
0x11d1   : > { %4603 = vmatpush1.bf16.msra.mxu0 %v4602_v59 }
0x1246   : > { %v3248_v60 = vpop.xlane.xlu1 %3247 }
0x1247   : > { %4758 = vrcp.f32 %v3248_v60 }
0x124a   : > { %v3253_v40 = vpop.permute.xlu1 %3252 }
0x124b   : > { %3985 = vmatpush3.msra.mxu1 %v3253_v40 }
0x124c   : > { %4604 = vmatprep.subr.bf16.mxu1 %v4961_v35 }
0x1251   : > { %v4759_v63 = vpop.eup %4758 }
0x1252   : > { %v3250_v34 = vmul.f32 %v4759_v63, %v4757_v16 }
0x1254   : > { %3987 = vmatmul.mubr.msk.f32.vlgmr.msra.gmra.mrb[18].mxu1 %vm1514_vm3, %v3250_v34 }
0x1255   : > { %4606 = vmatpush3.bf16.msra.mxu1 %v4605_v0  ;;  %4005 = vmatprep.mubr.msk.f32.mxu1 %vm4962_vm0, %v4960_v39  ;;  %v1412_v39 = vsub.s32 0, %v5262_v48 }
0x1256   : > { %4607 = vmatprep.subr.bf16.mxu1 %v4961_v35 }
0x1257   : > { %v1413_v13 = vrot.slane %v1408_v11, %v1412_v39 }
0x1259   : > { %4609 = vmatpush3.bf16.msra.mxu1 %v4608_v3 }
0x125a   : > { %4610 = vmatprep.subr.bf16.mxu1 %v4961_v35 }
0x125d   : > { %4612 = vmatpush3.bf16.msra.mxu1 %v4611_v5 }
0x125e   : > { %4613 = vmatprep.subr.bf16.mxu1 %v4961_v35 }
0x1261   : > { %4615 = vmatpush3.bf16.msra.mxu1 %v4614_v7 }
0x1327   : > { %v3324_v8 = vpop.f32.mrb[18].mxu1 }
0x1328   : > { %v3988_v9 = vpop.f32.mrb[19].mxu1  ;;  %3664 = vmatmul.mubr.msk.f32.vlgmr.msra.gmra.mrb[8].mxu0 %vm1436_vm1, %v3324_v8  ;;  %4006 = vmatmul.mubr.msk.f32.vlgmr.msra.gmra.mrb[8].mxu1 %vm1436_vm1, %v3324_v8 }
0x13fb   : > { %v3424_v35 = vpop.f32.mrb[8].mxu0  ;;  %v3495_v18 = vpop.f32.mrb[8].mxu1 }
0x13fc   : > { %v4616_v19 = vadd.f32 %v3424_v35, %v1413_v13  ;;  %v4618_v20 = vadd.f32 %v3495_v18, %v1421_v14  ;;  %v3426_v21 = vpop.f32.mrb[9].mxu0  ;;  %v4007_v22 = vpop.f32.mrb[9].mxu1 }
0x13fd   : > { %v4617_v23 = vadd.f32 %v3426_v21, %v1417_v17 }
0x13fe   : > { %3508 = vst [vmem:[%s255_s29] sm:$0xff] %v4616_v19  ;;  %3510 = vst [vmem:[%s255_s29 + $0x10] sm:$0xff] %v4618_v20 }
0x13ff   : > { %3509 = vst [vmem:[%s255_s29 + $0x8] sm:$0xff] %v4617_v23 }
0x1400   : > { %4889 = shalt.err (!%p4886_p4)
}
0x1401   : > { %s4890_s14 = scalar_lea.hbm %s5420_s8, 384  ;;  %s4894_s25 = scalar_lea.hbm %s5468_s4, 768 }
0x1402   : > { %p4891_p0 = scmp.ne.s32.totalorder %s5420_s8, %s4890_s14  ;;  %p4895_p8 = scmp.lt.u32.totalorder %s5420_s8, %s5468_s4 }
0x1403   : > { %p4896_p13 = scmp.lt.u32.totalorder %s4894_s25, %s4890_s14  ;;  %p4898_p10 = scmp.lt.u32.totalorder %s4890_s14, %s5420_s8 }
0x1404   : > { %p4892_p9 = pnand %p4891_p0, %p5132_p5 }
0x1405   : > { %p4897_p6 = por %p4896_p13, %p4895_p8 }
0x1406   : > { %p4893_p7 = pneg %p4892_p9 }
0x1407   : > { %p4899_p3 = por %p4898_p10, %p4897_p6 }
0x1409   : > { %p4900_p11 = pnand %p4899_p3, %p4893_p7 }
0x140b   : > { %4903 = shalt.err (!%p4900_p11)
}
0x140c   : > { %4665 = dma.vmem_to_hbm [thread:$0]  (%p5132_p5), %s5422_s5, 384, %s5420_s8, %s3512_s19  }
0x140d PF: > { %s3538_s21 = sand.u32 1, %s4938_s15   ;;  %p5488_p12 = scmp.ne.s32.totalorder %s5473_s22, 0 }
0x140e   : > { %p5489_p2 = scmp.ge.s32.totalorder %s4950_s18, 2  ;;  %s3539_s23 = scalar_lea.sflag [#allocation6], %s3538_s21 }
0x1410   : > { %p4682_p1 = pnand %p5489_p2, %p5488_p12 }
0x1412   : > { %4933 = dma.done.wait (!%p4682_p1), %s3539_s23, 384  }
0x1413   : > { %4935 = vsyncadd (!%p4682_p1), %s3539_s23, 4294966912  ;;  %p19_p4 = scmp.ge.s32.totalorder %s5100_s20, 4   ;;  %s5490_s15 = smov %s4942_s16 }
0x1414   : > { %s5491_s16 = smov %s4946_s17  ;;  %s5492_s17 = smov %s5128_s26 }
0x1415   : > { %s5493_s18 = smov %s5100_s20  ;;  %21 = sbr.rel (!%p19_p4) target bundleno = 7 (0x7), region = 93 }
0x141c   :  { %3544 = vsyncpa [#allocation5], 1 }
0x141d   :  { %3546 = vsyncpa [#allocation5 + $0x1], 1 }
0x141e   :  { %3547 = vsyncpa [#allocation8], 1 }
0x141f   :  { %3548 = vsyncpa [#allocation11], 1 }
0x1420   :  { %3549 = vsyncpa [#allocation6], 1 }
0x1421   :  { %3551 = vsyncpa [#allocation6 + $0x1], 1 }

</bundles_post_ra>
